<compile_context>
chip_gen: v6e
topology: v6e:2x2x1
jax: 0.10.0
libtpu: 0.0.40
codegen_flags: <defaults>
</compile_context>

<pallas_src>
import functools

import jax
import jax.numpy as jnp
from jax import lax
from jax.experimental import pallas as pl
from jax.experimental.pallas import tpu as pltpu

_MB = 1024 * 1024


def _pair(v):
    return (v, v) if isinstance(v, int) else tuple(v)


def _rup(x, m):
    return (x + m - 1) // m * m


def _cdiv(a, b):
    return (a + b - 1) // b


def _vmem_array_bytes(shape, itemsize):
    """Rough VMEM footprint of one buffer ((sublane, lane) tiling on last 2 dims)."""
    shape = tuple(int(d) for d in shape)
    if len(shape) < 2:
        shape = (1,) * (2 - len(shape)) + shape
    lead = 1
    for d in shape[:-2]:
        lead *= d
    sub = max(8, 32 // itemsize)
    return lead * _rup(shape[-2], sub) * _rup(shape[-1], 128) * itemsize


def _tpu_vmem_and_prefer256():
    vmem = 64 * _MB  # conservative default (v7x per-core VMEM)
    try:
        vmem = int(pltpu.get_tpu_info().vmem_capacity_bytes)
    except Exception:
        pass
    kind = ""
    try:
        kind = jax.devices()[0].device_kind.lower()
    except Exception:
        pass
    is_v5e = ("v5 lite" in kind) or ("v5e" in kind) or ("v5lite" in kind)
    return vmem, (not is_v5e)


def _conv_bn_relu_kernel(x_ref, w_ref, scale_ref, shift_ref, o_ref, acc_ref, *,
                         KH, KW, dh, dw, TOH, OWp, apply_relu):
    """One (image/slab, Cout tile, row block) grid step.

    x_ref:       (1, rows, Wpp, Cin) bf16  padded NHWC rows (halo included)
    w_ref:       (KH, KW, Cin, tn)   bf16
    scale/shift: (1, tn)             f32   folded BatchNorm (+ conv bias)
    o_ref:       (1, TOH*OWp, tn)    out dtype (flattened (row, col) block)
    acc_ref:     (TOH*OWp, tn)       f32   VMEM scratch accumulator
    """
    cin = x_ref.shape[-1]
    r = pl.program_id(2)
    row0 = pl.multiple_of(r * TOH, TOH)

    first = True
    for kh in range(KH):
        for kw in range(KW):
            # Shifted tap window, extracted straight from the resident slab.
            p = x_ref[0, pl.ds(row0 + kh * dh, TOH), kw * dw: kw * dw + OWp, :]
            contrib = jnp.dot(p.reshape(TOH * OWp, cin), w_ref[kh, kw],
                              preferred_element_type=jnp.float32)
            if first:
                acc_ref[...] = contrib
                first = False
            else:
                acc_ref[...] += contrib

    z = acc_ref[...] * scale_ref[...] + shift_ref[...]   # fused BatchNorm (+bias)
    if apply_relu:
        z = jnp.maximum(z, 0.0)                           # fused ReLU
    o_ref[...] = z[None].astype(o_ref.dtype)


def conv_bn_relu(x, weight, *, stride=1, padding=0, dilation=1, groups=1,
                 bias=None, bn_gamma=None, bn_beta=None, bn_mean=None,
                 bn_var=None, bn_eps=1e-5, use_bn=True, use_relu=True):
    """x: (N, Cin, H, W).  weight: (Cout, Cin, KH, KW) (PyTorch OIHW)."""
    if groups != 1:
        # TODO(synk): grouped convolution (groups > 1) is not lowered here.
        raise NotImplementedError("only groups=1 is supported")

    sh, sw = _pair(stride)
    ph, pw = _pair(padding)
    dh, dw = _pair(dilation)

    N, Cin, H, W = x.shape
    Cout, Cin_w, KH, KW = weight.shape
    assert Cin_w == Cin
    out_dtype = x.dtype

    OH = (H + 2 * ph - dh * (KH - 1) - 1) // sh + 1
    OW = (W + 2 * pw - dw * (KW - 1) - 1) // sw + 1

    # ---- NHWC / bf16 operands (MXU native; accumulation stays f32) ----
    xh = jnp.transpose(x, (0, 2, 3, 1)).astype(jnp.bfloat16)
    w4 = jnp.transpose(weight, (2, 3, 1, 0)).astype(jnp.bfloat16)  # (KH,KW,Cin,Cout)

    if sh == 1 and sw == 1:
        x_e, w_e = xh, w4
        KHe, KWe, dhe, dwe, phe, pwe = KH, KW, dh, dw, ph, pw
    else:
        # TODO(synk): strided convs fall back to host-side patch extraction
        # (one extra HBM pass) feeding the fused kernel as a 1x1 stride-1 conv.
        xpad = jnp.pad(xh, ((0, 0), (ph, ph), (pw, pw), (0, 0)))
        cols = []
        for kh in range(KH):
            for kw in range(KW):
                cols.append(
                    xpad[:,
                         kh * dh: kh * dh + sh * (OH - 1) + 1: sh,
                         kw * dw: kw * dw + sw * (OW - 1) + 1: sw,
                         :])
        x_e = jnp.concatenate(cols, axis=-1)               # (N, OH, OW, KH*KW*Cin)
        w_e = w4.reshape(1, 1, KH * KW * Cin, Cout)
        KHe, KWe, dhe, dwe, phe, pwe = 1, 1, 1, 1, 0, 0

    _, He, We, Ce = x_e.shape

    # ---- fold BatchNorm (inference) + conv bias into per-channel scale/shift ----
    # TODO(synk): training-mode BatchNorm (batch statistics / running-stat
    # updates) is not fused; this is the eval-mode forward.
    if use_bn:
        scale = bn_gamma.astype(jnp.float32) / jnp.sqrt(
            bn_var.astype(jnp.float32) + jnp.float32(bn_eps))
        shift = bn_beta.astype(jnp.float32) - bn_mean.astype(jnp.float32) * scale
    else:
        scale = jnp.ones((Cout,), jnp.float32)
        shift = jnp.zeros((Cout,), jnp.float32)
    if bias is not None:
        shift = shift + bias.astype(jnp.float32) * scale

    # ---- per-generation tiling & VMEM budget ----
    vmem_cap, prefer256 = _tpu_vmem_and_prefer256()
    budget = min(48 * _MB, vmem_cap // 2)          # double-buffered working set
    vmem_limit = int(max(32 * _MB, min(vmem_cap - 16 * _MB, budget + 16 * _MB)))

    Coutp = _rup(Cout, 128)                        # lane-dense stores
    if Coutp <= 512 and KHe * KWe * Ce * Coutp * 2 <= 4 * _MB:
        tn = Coutp                                 # Cout untiled: weights resident
    elif prefer256 and Coutp % 256 == 0:
        tn = 256                                   # fills v6e/v7x 256-wide MXU
    else:
        tn = 128
    J = Coutp // tn

    # TODO(synk): small-Cin stem layers (Cin=3/4) underfill the MXU contraction;
    # space-to-depth packing of stride/taps into channels is not implemented.

    out_isz = jnp.dtype(out_dtype).itemsize
    OWp = _rup(OW, 16)                             # sublane-aligned column count
    Wpp = (KWe - 1) * dwe + OWp                    # padded effective input width

    def _balance(t):
        return _cdiv(OH, _cdiv(OH, t))

    def _ws_bytes(toh_, whole_image):
        nrb_ = _cdiv(OH, toh_)
        m2 = toh_ * OWp
        rows = (nrb_ * toh_ if whole_image else toh_) + (KHe - 1) * dhe
        b = 2 * _vmem_array_bytes((rows, Wpp, Ce), 2)          # input (dbuf)
        b += 2 * _vmem_array_bytes((KHe * KWe, Ce, tn), 2)     # weights (dbuf)
        b += 4 * _vmem_array_bytes((1, tn), 4)                 # scale/shift
        b += 2 * _vmem_array_bytes((m2, tn), out_isz)          # output (dbuf)
        b += _vmem_array_bytes((m2, tn), 4)                    # f32 accumulator
        b += _vmem_array_bytes((m2, Ce), 2)                    # patch operand
        return b

    toh = _balance(min(OH, max(1, 1024 // OWp)))
    while toh > 1 and _ws_bytes(toh, True) > budget:
        toh = _balance(max(1, toh // 2))
    mode_whole_image = _ws_bytes(toh, True) <= budget
    if not mode_whole_image:
        toh = _balance(min(OH, max(1, 1024 // OWp)))
        while toh > 1 and _ws_bytes(toh, False) > budget:
            toh = _balance(max(1, toh // 2))

    nrb = _cdiv(OH, toh)
    OHp = nrb * toh
    M2 = toh * OWp

    # ---- pad effective input: conv padding + halo/alignment padding ----
    Hneed = OHp + (KHe - 1) * dhe
    xp = jnp.pad(x_e, ((0, 0),
                       (phe, Hneed - He - phe),
                       (pwe, Wpp - We - pwe),
                       (0, 0)))

    if mode_whole_image:
        x_in, NB, R = xp, N, nrb                   # image fetched once per n
    else:
        # Overlapping row slabs (only the (KH-1)*dh halo rows are duplicated).
        slab_rows = toh + (KHe - 1) * dhe
        slabs = [xp[:, r0 * toh: r0 * toh + slab_rows] for r0 in range(nrb)]
        x_in = jnp.stack(slabs, axis=1).reshape(N * nrb, slab_rows, Wpp, Ce)
        NB, R = N * nrb, 1

    w_in = jnp.pad(w_e, ((0, 0), (0, 0), (0, 0), (0, Coutp - Cout)))
    scale_in = jnp.pad(scale, (0, Coutp - Cout)).reshape(1, Coutp)
    shift_in = jnp.pad(shift, (0, Coutp - Cout)).reshape(1, Coutp)

    kernel = functools.partial(
        _conv_bn_relu_kernel, KH=KHe, KW=KWe, dh=dhe, dw=dwe,
        TOH=toh, OWp=OWp, apply_relu=use_relu)

    flops = 2 * N * OHp * OWp * KHe * KWe * Ce * Coutp
    bytes_accessed = (x_in.size * 2 + w_in.size * 2
                      + NB * R * M2 * Coutp * out_isz + 2 * Coutp * 4)

    out = pl.pallas_call(
        kernel,
        out_shape=jax.ShapeDtypeStruct((NB, R * M2, Coutp), out_dtype),
        grid_spec=pltpu.PrefetchScalarGridSpec(
            num_scalar_prefetch=0,
            grid=(NB, J, R),
            in_specs=[
                # Whole padded image / slab: index ignores (j, r) -> resident.
                pl.BlockSpec((1,) + tuple(x_in.shape[1:]),
                             lambda n, j, r: (n, 0, 0, 0)),
                pl.BlockSpec((KHe, KWe, Ce, tn), lambda n, j, r: (0, 0, 0, j)),
                pl.BlockSpec((1, tn), lambda n, j, r: (0, j)),
                pl.BlockSpec((1, tn), lambda n, j, r: (0, j)),
            ],
            out_specs=pl.BlockSpec((1, M2, tn), lambda n, j, r: (n, r, j)),
            scratch_shapes=[pltpu.VMEM((M2, tn), jnp.float32)],
        ),
        compiler_params=pltpu.CompilerParams(
            dimension_semantics=("parallel", "parallel", "parallel"),
            vmem_limit_bytes=vmem_limit),
        cost_estimate=pl.CostEstimate(
            flops=int(flops), transcendentals=0,
            bytes_accessed=int(bytes_accessed)),
    )(x_in, w_in, scale_in, shift_in)

    # (NB, R*M2, Coutp) -> (N, OHp, OWp, Coutp) -> crop -> NCHW
    out = out.reshape(N, nrb, toh, OWp, Coutp).reshape(N, OHp, OWp, Coutp)
    out = out[:, :OH, :OW, :Cout]
    return jnp.transpose(out, (0, 3, 1, 2))


def conv_bn_relu_ref(x, weight, bias, gamma, beta, mean, var, eps,
                     stride, padding, dilation, groups, use_bn, use_relu):
    """Pure-JAX reference matching the PyTorch ConvBnRelu forward (eval BN)."""
    sh, sw = _pair(stride)
    ph, pw = _pair(padding)
    dh, dw = _pair(dilation)
    z = lax.conv_general_dilated(
        x, weight,
        window_strides=(sh, sw),
        padding=[(ph, ph), (pw, pw)],
        rhs_dilation=(dh, dw),
        dimension_numbers=('NCHW', 'OIHW', 'NCHW'),
        feature_group_count=groups,
        precision=lax.Precision.HIGHEST)
    if bias is not None:
        z = z + bias.reshape(1, -1, 1, 1)
    if use_bn:
        z = ((z - mean.reshape(1, -1, 1, 1))
             / jnp.sqrt(var.reshape(1, -1, 1, 1) + eps)
             * gamma.reshape(1, -1, 1, 1)
             + beta.reshape(1, -1, 1, 1))
    if use_relu:
        z = jnp.maximum(z, 0.0)
    return z


if __name__ == "__main__":
    N, Cin, H, W = 2, 4, 16, 16
    Cout, KH, KW = 8, 3, 3
    eps = 1e-5

    key = jax.random.PRNGKey(0)
    kx, kw_, km, kv = jax.random.split(key, 4)

    # Round x / weights to bf16-representable values so the bf16 MXU products
    # are exact -> tight comparison against the f32 HIGHEST-precision reference.
    x = jax.random.normal(kx, (N, Cin, H, W), jnp.float32)
    x = x.astype(jnp.bfloat16).astype(jnp.float32)
    w = 0.1 * jax.random.normal(kw_, (Cout, Cin, KH, KW), jnp.float32)
    w = w.astype(jnp.bfloat16).astype(jnp.float32)

    gamma = jnp.linspace(0.5, 1.5, Cout).astype(jnp.float32)
    beta = jnp.linspace(-0.2, 0.2, Cout).astype(jnp.float32)
    running_mean = 0.1 * jax.random.normal(km, (Cout,), jnp.float32)
    running_var = 1.0 + 0.1 * jax.random.normal(kv, (Cout,), jnp.float32) ** 2

    # Main case: 3x3, stride 1, pad 1 (fused in-kernel patch extraction path).
    out = conv_bn_relu(
        x, w, stride=1, padding=1, dilation=1, groups=1,
        bias=None, bn_gamma=gamma, bn_beta=beta, bn_mean=running_mean,
        bn_var=running_var, bn_eps=eps, use_bn=True, use_relu=True)
    out = jax.block_until_ready(out)
    ref = conv_bn_relu_ref(
        x, w, None, gamma, beta, running_mean, running_var, eps,
        1, 1, 1, 1, True, True)
    assert out.shape == (N, Cout, H, W)
    err = float(jnp.max(jnp.abs(out - ref)))
    assert err < 1e-3, f"stride-1 mismatch vs reference: {err}"

    # Secondary case: stride 2 (host-side patch-extraction fallback path).
    out2 = conv_bn_relu(
        x, w, stride=2, padding=1, dilation=1, groups=1,
        bias=None, bn_gamma=gamma, bn_beta=beta, bn_mean=running_mean,
        bn_var=running_var, bn_eps=eps, use_bn=True, use_relu=True)
    out2 = jax.block_until_ready(out2)
    ref2 = conv_bn_relu_ref(
        x, w, None, gamma, beta, running_mean, running_var, eps,
        2, 1, 1, 1, True, True)
    assert out2.shape == ref2.shape == (N, Cout, 8, 8)
    err2 = float(jnp.max(jnp.abs(out2 - ref2)))
    assert err2 < 1e-3, f"stride-2 mismatch vs reference: {err2}"

    print("KERNEL_OK")
</pallas_src>

<mosaic_0001>
module attributes {stable_mosaic.version = 11 : i64} {
  func.func @_conv_bn_relu_kernel(%arg0: i32, %arg1: i32, %arg2: i32, %arg3: memref<1x18x18x4xbf16, #tpu.memory_space<vmem>>, %arg4: memref<3x3x4x128xbf16, #tpu.memory_space<vmem>>, %arg5: memref<1x128xf32, #tpu.memory_space<vmem>>, %arg6: memref<1x128xf32, #tpu.memory_space<vmem>>, %arg7: memref<1x256x128xf32, #tpu.memory_space<vmem>>, %arg8: memref<256x128xf32, #tpu.memory_space<vmem>>) attributes {dimension_semantics = [#tpu.dimension_semantics<parallel>, #tpu.dimension_semantics<parallel>, #tpu.dimension_semantics<parallel>], iteration_bounds = array<i64: 2, 1, 1>, scalar_prefetch = 0 : i64, scratch_operands = 1 : i64, tpu.core_type = #tpu.core_type<tc>, window_params = [{transform_indices = @transform_0, window_bounds = array<i64: 1, 18, 18, 4>}, {transform_indices = @transform_1, window_bounds = array<i64: 3, 3, 4, 128>}, {transform_indices = @transform_2, window_bounds = array<i64: 1, 128>}, {transform_indices = @transform_3, window_bounds = array<i64: 1, 128>}, {transform_indices = @transform_4, window_bounds = array<i64: 1, 256, 128>}]} {
    %c16_i32 = arith.constant 16 : i32
    %0 = arith.muli %arg2, %c16_i32 : i32
    %1 = tpu.assume_multiple %0, 16 : i32
    %c0_i32 = arith.constant 0 : i32
    %2 = arith.addi %1, %c0_i32 : i32
    %c0 = arith.constant 0 : index
    %3 = arith.index_cast %2 : i32 to index
    %c0_0 = arith.constant 0 : index
    %c0_1 = arith.constant 0 : index
    %4 = vector.load %arg3[%c0, %3, %c0_0, %c0_1] : memref<1x18x18x4xbf16, #tpu.memory_space<vmem>>, vector<1x16x16x4xbf16>
    %5 = vector.shape_cast %4 : vector<1x16x16x4xbf16> to vector<16x16x4xbf16>
    %6 = vector.shape_cast %5 : vector<16x16x4xbf16> to vector<256x4xbf16>
    %c0_2 = arith.constant 0 : index
    %c0_3 = arith.constant 0 : index
    %c0_4 = arith.constant 0 : index
    %c0_5 = arith.constant 0 : index
    %7 = vector.load %arg4[%c0_2, %c0_3, %c0_4, %c0_5] : memref<3x3x4x128xbf16, #tpu.memory_space<vmem>>, vector<1x1x4x128xbf16>
    %8 = vector.shape_cast %7 : vector<1x1x4x128xbf16> to vector<4x128xbf16>
    %cst = arith.constant dense<0.000000e+00> : vector<256x128xf32>
    %9 = tpu.matmul %6, %8, %cst {dimension_numbers = #tpu.dot_dimension_numbers<[1], [0], [0], [1], [0, 0, 1, 1], [], []>} : vector<256x4xbf16>, vector<4x128xbf16>, vector<256x128xf32> -> vector<256x128xf32>
    %c0_6 = arith.constant 0 : index
    %c0_7 = arith.constant 0 : index
    %10 = vector.load %arg8[%c0_6, %c0_7] : memref<256x128xf32, #tpu.memory_space<vmem>>, vector<256x128xf32>
    tpu.vector_store %arg8[%c0_6, %c0_7], %9 {strides = array<i32>} : memref<256x128xf32, #tpu.memory_space<vmem>>, vector<256x128xf32>,
    %c0_i32_8 = arith.constant 0 : i32
    %11 = arith.addi %1, %c0_i32_8 : i32
    %c0_9 = arith.constant 0 : index
    %12 = arith.index_cast %11 : i32 to index
    %c1 = arith.constant 1 : index
    %c0_10 = arith.constant 0 : index
    %13 = vector.load %arg3[%c0_9, %12, %c1, %c0_10] : memref<1x18x18x4xbf16, #tpu.memory_space<vmem>>, vector<1x16x16x4xbf16>
    %14 = vector.shape_cast %13 : vector<1x16x16x4xbf16> to vector<16x16x4xbf16>
    %15 = vector.shape_cast %14 : vector<16x16x4xbf16> to vector<256x4xbf16>
    %c0_11 = arith.constant 0 : index
    %c1_12 = arith.constant 1 : index
    %c0_13 = arith.constant 0 : index
    %c0_14 = arith.constant 0 : index
    %16 = vector.load %arg4[%c0_11, %c1_12, %c0_13, %c0_14] : memref<3x3x4x128xbf16, #tpu.memory_space<vmem>>, vector<1x1x4x128xbf16>
    %17 = vector.shape_cast %16 : vector<1x1x4x128xbf16> to vector<4x128xbf16>
    %cst_15 = arith.constant dense<0.000000e+00> : vector<256x128xf32>
    %18 = tpu.matmul %15, %17, %cst_15 {dimension_numbers = #tpu.dot_dimension_numbers<[1], [0], [0], [1], [0, 0, 1, 1], [], []>} : vector<256x4xbf16>, vector<4x128xbf16>, vector<256x128xf32> -> vector<256x128xf32>
    %c0_16 = arith.constant 0 : index
    %c0_17 = arith.constant 0 : index
    %19 = vector.load %arg8[%c0_16, %c0_17] : memref<256x128xf32, #tpu.memory_space<vmem>>, vector<256x128xf32>
    %20 = arith.addf %19, %18 : vector<256x128xf32>
    %c0_18 = arith.constant 0 : index
    %c0_19 = arith.constant 0 : index
    %21 = vector.load %arg8[%c0_18, %c0_19] : memref<256x128xf32, #tpu.memory_space<vmem>>, vector<256x128xf32>
    tpu.vector_store %arg8[%c0_18, %c0_19], %20 {strides = array<i32>} : memref<256x128xf32, #tpu.memory_space<vmem>>, vector<256x128xf32>,
    %c0_i32_20 = arith.constant 0 : i32
    %22 = arith.addi %1, %c0_i32_20 : i32
    %c0_21 = arith.constant 0 : index
    %23 = arith.index_cast %22 : i32 to index
    %c2 = arith.constant 2 : index
    %c0_22 = arith.constant 0 : index
    %24 = vector.load %arg3[%c0_21, %23, %c2, %c0_22] : memref<1x18x18x4xbf16, #tpu.memory_space<vmem>>, vector<1x16x16x4xbf16>
    %25 = vector.shape_cast %24 : vector<1x16x16x4xbf16> to vector<16x16x4xbf16>
    %26 = vector.shape_cast %25 : vector<16x16x4xbf16> to vector<256x4xbf16>
    %c0_23 = arith.constant 0 : index
    %c2_24 = arith.constant 2 : index
    %c0_25 = arith.constant 0 : index
    %c0_26 = arith.constant 0 : index
    %27 = vector.load %arg4[%c0_23, %c2_24, %c0_25, %c0_26] : memref<3x3x4x128xbf16, #tpu.memory_space<vmem>>, vector<1x1x4x128xbf16>
    %28 = vector.shape_cast %27 : vector<1x1x4x128xbf16> to vector<4x128xbf16>
    %cst_27 = arith.constant dense<0.000000e+00> : vector<256x128xf32>
    %29 = tpu.matmul %26, %28, %cst_27 {dimension_numbers = #tpu.dot_dimension_numbers<[1], [0], [0], [1], [0, 0, 1, 1], [], []>} : vector<256x4xbf16>, vector<4x128xbf16>, vector<256x128xf32> -> vector<256x128xf32>
    %c0_28 = arith.constant 0 : index
    %c0_29 = arith.constant 0 : index
    %30 = vector.load %arg8[%c0_28, %c0_29] : memref<256x128xf32, #tpu.memory_space<vmem>>, vector<256x128xf32>
    %31 = arith.addf %30, %29 : vector<256x128xf32>
    %c0_30 = arith.constant 0 : index
    %c0_31 = arith.constant 0 : index
    %32 = vector.load %arg8[%c0_30, %c0_31] : memref<256x128xf32, #tpu.memory_space<vmem>>, vector<256x128xf32>
    tpu.vector_store %arg8[%c0_30, %c0_31], %31 {strides = array<i32>} : memref<256x128xf32, #tpu.memory_space<vmem>>, vector<256x128xf32>,
    %c1_i32 = arith.constant 1 : i32
    %33 = arith.addi %1, %c1_i32 : i32
    %c0_32 = arith.constant 0 : index
    %34 = arith.index_cast %33 : i32 to index
    %c0_33 = arith.constant 0 : index
    %c0_34 = arith.constant 0 : index
    %35 = vector.load %arg3[%c0_32, %34, %c0_33, %c0_34] : memref<1x18x18x4xbf16, #tpu.memory_space<vmem>>, vector<1x16x16x4xbf16>
    %36 = vector.shape_cast %35 : vector<1x16x16x4xbf16> to vector<16x16x4xbf16>
    %37 = vector.shape_cast %36 : vector<16x16x4xbf16> to vector<256x4xbf16>
    %c1_35 = arith.constant 1 : index
    %c0_36 = arith.constant 0 : index
    %c0_37 = arith.constant 0 : index
    %c0_38 = arith.constant 0 : index
    %38 = vector.load %arg4[%c1_35, %c0_36, %c0_37, %c0_38] : memref<3x3x4x128xbf16, #tpu.memory_space<vmem>>, vector<1x1x4x128xbf16>
    %39 = vector.shape_cast %38 : vector<1x1x4x128xbf16> to vector<4x128xbf16>
    %cst_39 = arith.constant dense<0.000000e+00> : vector<256x128xf32>
    %40 = tpu.matmul %37, %39, %cst_39 {dimension_numbers = #tpu.dot_dimension_numbers<[1], [0], [0], [1], [0, 0, 1, 1], [], []>} : vector<256x4xbf16>, vector<4x128xbf16>, vector<256x128xf32> -> vector<256x128xf32>
    %c0_40 = arith.constant 0 : index
    %c0_41 = arith.constant 0 : index
    %41 = vector.load %arg8[%c0_40, %c0_41] : memref<256x128xf32, #tpu.memory_space<vmem>>, vector<256x128xf32>
    %42 = arith.addf %41, %40 : vector<256x128xf32>
    %c0_42 = arith.constant 0 : index
    %c0_43 = arith.constant 0 : index
    %43 = vector.load %arg8[%c0_42, %c0_43] : memref<256x128xf32, #tpu.memory_space<vmem>>, vector<256x128xf32>
    tpu.vector_store %arg8[%c0_42, %c0_43], %42 {strides = array<i32>} : memref<256x128xf32, #tpu.memory_space<vmem>>, vector<256x128xf32>,
    %c1_i32_44 = arith.constant 1 : i32
    %44 = arith.addi %1, %c1_i32_44 : i32
    %c0_45 = arith.constant 0 : index
    %45 = arith.index_cast %44 : i32 to index
    %c1_46 = arith.constant 1 : index
    %c0_47 = arith.constant 0 : index
    %46 = vector.load %arg3[%c0_45, %45, %c1_46, %c0_47] : memref<1x18x18x4xbf16, #tpu.memory_space<vmem>>, vector<1x16x16x4xbf16>
    %47 = vector.shape_cast %46 : vector<1x16x16x4xbf16> to vector<16x16x4xbf16>
    %48 = vector.shape_cast %47 : vector<16x16x4xbf16> to vector<256x4xbf16>
    %c1_48 = arith.constant 1 : index
    %c1_49 = arith.constant 1 : index
    %c0_50 = arith.constant 0 : index
    %c0_51 = arith.constant 0 : index
    %49 = vector.load %arg4[%c1_48, %c1_49, %c0_50, %c0_51] : memref<3x3x4x128xbf16, #tpu.memory_space<vmem>>, vector<1x1x4x128xbf16>
    %50 = vector.shape_cast %49 : vector<1x1x4x128xbf16> to vector<4x128xbf16>
    %cst_52 = arith.constant dense<0.000000e+00> : vector<256x128xf32>
    %51 = tpu.matmul %48, %50, %cst_52 {dimension_numbers = #tpu.dot_dimension_numbers<[1], [0], [0], [1], [0, 0, 1, 1], [], []>} : vector<256x4xbf16>, vector<4x128xbf16>, vector<256x128xf32> -> vector<256x128xf32>
    %c0_53 = arith.constant 0 : index
    %c0_54 = arith.constant 0 : index
    %52 = vector.load %arg8[%c0_53, %c0_54] : memref<256x128xf32, #tpu.memory_space<vmem>>, vector<256x128xf32>
    %53 = arith.addf %52, %51 : vector<256x128xf32>
    %c0_55 = arith.constant 0 : index
    %c0_56 = arith.constant 0 : index
    %54 = vector.load %arg8[%c0_55, %c0_56] : memref<256x128xf32, #tpu.memory_space<vmem>>, vector<256x128xf32>
    tpu.vector_store %arg8[%c0_55, %c0_56], %53 {strides = array<i32>} : memref<256x128xf32, #tpu.memory_space<vmem>>, vector<256x128xf32>,
    %c1_i32_57 = arith.constant 1 : i32
    %55 = arith.addi %1, %c1_i32_57 : i32
    %c0_58 = arith.constant 0 : index
    %56 = arith.index_cast %55 : i32 to index
    %c2_59 = arith.constant 2 : index
    %c0_60 = arith.constant 0 : index
    %57 = vector.load %arg3[%c0_58, %56, %c2_59, %c0_60] : memref<1x18x18x4xbf16, #tpu.memory_space<vmem>>, vector<1x16x16x4xbf16>
    %58 = vector.shape_cast %57 : vector<1x16x16x4xbf16> to vector<16x16x4xbf16>
    %59 = vector.shape_cast %58 : vector<16x16x4xbf16> to vector<256x4xbf16>
    %c1_61 = arith.constant 1 : index
    %c2_62 = arith.constant 2 : index
    %c0_63 = arith.constant 0 : index
    %c0_64 = arith.constant 0 : index
    %60 = vector.load %arg4[%c1_61, %c2_62, %c0_63, %c0_64] : memref<3x3x4x128xbf16, #tpu.memory_space<vmem>>, vector<1x1x4x128xbf16>
    %61 = vector.shape_cast %60 : vector<1x1x4x128xbf16> to vector<4x128xbf16>
    %cst_65 = arith.constant dense<0.000000e+00> : vector<256x128xf32>
    %62 = tpu.matmul %59, %61, %cst_65 {dimension_numbers = #tpu.dot_dimension_numbers<[1], [0], [0], [1], [0, 0, 1, 1], [], []>} : vector<256x4xbf16>, vector<4x128xbf16>, vector<256x128xf32> -> vector<256x128xf32>
    %c0_66 = arith.constant 0 : index
    %c0_67 = arith.constant 0 : index
    %63 = vector.load %arg8[%c0_66, %c0_67] : memref<256x128xf32, #tpu.memory_space<vmem>>, vector<256x128xf32>
    %64 = arith.addf %63, %62 : vector<256x128xf32>
    %c0_68 = arith.constant 0 : index
    %c0_69 = arith.constant 0 : index
    %65 = vector.load %arg8[%c0_68, %c0_69] : memref<256x128xf32, #tpu.memory_space<vmem>>, vector<256x128xf32>
    tpu.vector_store %arg8[%c0_68, %c0_69], %64 {strides = array<i32>} : memref<256x128xf32, #tpu.memory_space<vmem>>, vector<256x128xf32>,
    %c2_i32 = arith.constant 2 : i32
    %66 = arith.addi %1, %c2_i32 : i32
    %c0_70 = arith.constant 0 : index
    %67 = arith.index_cast %66 : i32 to index
    %c0_71 = arith.constant 0 : index
    %c0_72 = arith.constant 0 : index
    %68 = vector.load %arg3[%c0_70, %67, %c0_71, %c0_72] : memref<1x18x18x4xbf16, #tpu.memory_space<vmem>>, vector<1x16x16x4xbf16>
    %69 = vector.shape_cast %68 : vector<1x16x16x4xbf16> to vector<16x16x4xbf16>
    %70 = vector.shape_cast %69 : vector<16x16x4xbf16> to vector<256x4xbf16>
    %c2_73 = arith.constant 2 : index
    %c0_74 = arith.constant 0 : index
    %c0_75 = arith.constant 0 : index
    %c0_76 = arith.constant 0 : index
    %71 = vector.load %arg4[%c2_73, %c0_74, %c0_75, %c0_76] : memref<3x3x4x128xbf16, #tpu.memory_space<vmem>>, vector<1x1x4x128xbf16>
    %72 = vector.shape_cast %71 : vector<1x1x4x128xbf16> to vector<4x128xbf16>
    %cst_77 = arith.constant dense<0.000000e+00> : vector<256x128xf32>
    %73 = tpu.matmul %70, %72, %cst_77 {dimension_numbers = #tpu.dot_dimension_numbers<[1], [0], [0], [1], [0, 0, 1, 1], [], []>} : vector<256x4xbf16>, vector<4x128xbf16>, vector<256x128xf32> -> vector<256x128xf32>
    %c0_78 = arith.constant 0 : index
    %c0_79 = arith.constant 0 : index
    %74 = vector.load %arg8[%c0_78, %c0_79] : memref<256x128xf32, #tpu.memory_space<vmem>>, vector<256x128xf32>
    %75 = arith.addf %74, %73 : vector<256x128xf32>
    %c0_80 = arith.constant 0 : index
    %c0_81 = arith.constant 0 : index
    %76 = vector.load %arg8[%c0_80, %c0_81] : memref<256x128xf32, #tpu.memory_space<vmem>>, vector<256x128xf32>
    tpu.vector_store %arg8[%c0_80, %c0_81], %75 {strides = array<i32>} : memref<256x128xf32, #tpu.memory_space<vmem>>, vector<256x128xf32>,
    %c2_i32_82 = arith.constant 2 : i32
    %77 = arith.addi %1, %c2_i32_82 : i32
    %c0_83 = arith.constant 0 : index
    %78 = arith.index_cast %77 : i32 to index
    %c1_84 = arith.constant 1 : index
    %c0_85 = arith.constant 0 : index
    %79 = vector.load %arg3[%c0_83, %78, %c1_84, %c0_85] : memref<1x18x18x4xbf16, #tpu.memory_space<vmem>>, vector<1x16x16x4xbf16>
    %80 = vector.shape_cast %79 : vector<1x16x16x4xbf16> to vector<16x16x4xbf16>
    %81 = vector.shape_cast %80 : vector<16x16x4xbf16> to vector<256x4xbf16>
    %c2_86 = arith.constant 2 : index
    %c1_87 = arith.constant 1 : index
    %c0_88 = arith.constant 0 : index
    %c0_89 = arith.constant 0 : index
    %82 = vector.load %arg4[%c2_86, %c1_87, %c0_88, %c0_89] : memref<3x3x4x128xbf16, #tpu.memory_space<vmem>>, vector<1x1x4x128xbf16>
    %83 = vector.shape_cast %82 : vector<1x1x4x128xbf16> to vector<4x128xbf16>
    %cst_90 = arith.constant dense<0.000000e+00> : vector<256x128xf32>
    %84 = tpu.matmul %81, %83, %cst_90 {dimension_numbers = #tpu.dot_dimension_numbers<[1], [0], [0], [1], [0, 0, 1, 1], [], []>} : vector<256x4xbf16>, vector<4x128xbf16>, vector<256x128xf32> -> vector<256x128xf32>
    %c0_91 = arith.constant 0 : index
    %c0_92 = arith.constant 0 : index
    %85 = vector.load %arg8[%c0_91, %c0_92] : memref<256x128xf32, #tpu.memory_space<vmem>>, vector<256x128xf32>
    %86 = arith.addf %85, %84 : vector<256x128xf32>
    %c0_93 = arith.constant 0 : index
    %c0_94 = arith.constant 0 : index
    %87 = vector.load %arg8[%c0_93, %c0_94] : memref<256x128xf32, #tpu.memory_space<vmem>>, vector<256x128xf32>
    tpu.vector_store %arg8[%c0_93, %c0_94], %86 {strides = array<i32>} : memref<256x128xf32, #tpu.memory_space<vmem>>, vector<256x128xf32>,
    %c2_i32_95 = arith.constant 2 : i32
    %88 = arith.addi %1, %c2_i32_95 : i32
    %c0_96 = arith.constant 0 : index
    %89 = arith.index_cast %88 : i32 to index
    %c2_97 = arith.constant 2 : index
    %c0_98 = arith.constant 0 : index
    %90 = vector.load %arg3[%c0_96, %89, %c2_97, %c0_98] : memref<1x18x18x4xbf16, #tpu.memory_space<vmem>>, vector<1x16x16x4xbf16>
    %91 = vector.shape_cast %90 : vector<1x16x16x4xbf16> to vector<16x16x4xbf16>
    %92 = vector.shape_cast %91 : vector<16x16x4xbf16> to vector<256x4xbf16>
    %c2_99 = arith.constant 2 : index
    %c2_100 = arith.constant 2 : index
    %c0_101 = arith.constant 0 : index
    %c0_102 = arith.constant 0 : index
    %93 = vector.load %arg4[%c2_99, %c2_100, %c0_101, %c0_102] : memref<3x3x4x128xbf16, #tpu.memory_space<vmem>>, vector<1x1x4x128xbf16>
    %94 = vector.shape_cast %93 : vector<1x1x4x128xbf16> to vector<4x128xbf16>
    %cst_103 = arith.constant dense<0.000000e+00> : vector<256x128xf32>
    %95 = tpu.matmul %92, %94, %cst_103 {dimension_numbers = #tpu.dot_dimension_numbers<[1], [0], [0], [1], [0, 0, 1, 1], [], []>} : vector<256x4xbf16>, vector<4x128xbf16>, vector<256x128xf32> -> vector<256x128xf32>
    %c0_104 = arith.constant 0 : index
    %c0_105 = arith.constant 0 : index
    %96 = vector.load %arg8[%c0_104, %c0_105] : memref<256x128xf32, #tpu.memory_space<vmem>>, vector<256x128xf32>
    %97 = arith.addf %96, %95 : vector<256x128xf32>
    %c0_106 = arith.constant 0 : index
    %c0_107 = arith.constant 0 : index
    %98 = vector.load %arg8[%c0_106, %c0_107] : memref<256x128xf32, #tpu.memory_space<vmem>>, vector<256x128xf32>
    tpu.vector_store %arg8[%c0_106, %c0_107], %97 {strides = array<i32>} : memref<256x128xf32, #tpu.memory_space<vmem>>, vector<256x128xf32>,
    %c0_108 = arith.constant 0 : index
    %c0_109 = arith.constant 0 : index
    %99 = vector.load %arg8[%c0_108, %c0_109] : memref<256x128xf32, #tpu.memory_space<vmem>>, vector<256x128xf32>
    %c0_110 = arith.constant 0 : index
    %c0_111 = arith.constant 0 : index
    %100 = vector.load %arg5[%c0_110, %c0_111] : memref<1x128xf32, #tpu.memory_space<vmem>>, vector<1x128xf32>
    %101 = vector.broadcast %100 : vector<1x128xf32> to vector<256x128xf32>
    %102 = arith.mulf %99, %101 : vector<256x128xf32>
    %c0_112 = arith.constant 0 : index
    %c0_113 = arith.constant 0 : index
    %103 = vector.load %arg6[%c0_112, %c0_113] : memref<1x128xf32, #tpu.memory_space<vmem>>, vector<1x128xf32>
    %104 = vector.broadcast %103 : vector<1x128xf32> to vector<256x128xf32>
    %105 = arith.addf %102, %104 : vector<256x128xf32>
    %cst_114 = arith.constant 0.000000e+00 : f32
    %106 = vector.broadcast %cst_114 : f32 to vector<256x128xf32>
    %107 = arith.maximumf %105, %106 : vector<256x128xf32>
    %108 = vector.shape_cast %107 : vector<256x128xf32> to vector<1x256x128xf32>
    %c0_115 = arith.constant 0 : index
    %c0_116 = arith.constant 0 : index
    %c0_117 = arith.constant 0 : index
    %109 = vector.load %arg7[%c0_115, %c0_116, %c0_117] : memref<1x256x128xf32, #tpu.memory_space<vmem>>, vector<1x256x128xf32>
    tpu.vector_store %arg7[%c0_115, %c0_116, %c0_117], %108 {strides = array<i32>} : memref<1x256x128xf32, #tpu.memory_space<vmem>>, vector<1x256x128xf32>,
    return
  }
  func.func @transform_0(%arg0: i32, %arg1: i32, %arg2: i32) -> (i32, i32, i32, i32) {
    %c0_i32 = arith.constant 0 : i32
    %c0_i32_0 = arith.constant 0 : i32
    %c0_i32_1 = arith.constant 0 : i32
    %c0_i32_2 = arith.constant 0 : i32
    return %arg0, %c0_i32, %c0_i32_0, %c0_i32_1 : i32, i32, i32, i32
  }
  func.func @transform_1(%arg0: i32, %arg1: i32, %arg2: i32) -> (i32, i32, i32, i32) {
    %c0_i32 = arith.constant 0 : i32
    %c0_i32_0 = arith.constant 0 : i32
    %c0_i32_1 = arith.constant 0 : i32
    %c0_i32_2 = arith.constant 0 : i32
    return %c0_i32, %c0_i32_0, %c0_i32_1, %arg1 : i32, i32, i32, i32
  }
  func.func @transform_2(%arg0: i32, %arg1: i32, %arg2: i32) -> (i32, i32) {
    %c0_i32 = arith.constant 0 : i32
    %c0_i32_0 = arith.constant 0 : i32
    return %c0_i32, %arg1 : i32, i32
  }
  func.func @transform_3(%arg0: i32, %arg1: i32, %arg2: i32) -> (i32, i32) {
    %c0_i32 = arith.constant 0 : i32
    %c0_i32_0 = arith.constant 0 : i32
    return %c0_i32, %arg1 : i32, i32
  }
  func.func @transform_4(%arg0: i32, %arg1: i32, %arg2: i32) -> (i32, i32, i32) {
    %c0_i32 = arith.constant 0 : i32
    return %arg0, %arg2, %arg1 : i32, i32, i32
  }
}

</mosaic_0001>

<bundles_post_ra>
// kernel: tpu_custom_call.1
= control target key start
LH: loop header
LB: loop body
LE: loop exit
PB: predicated region body
PF: predicated region fallthrough
CT: control target
= control target key end

     0   :  { %9 = vsyncpa [#allocation4], 0  ;;  %s9024_s0 = inlined_call_operand.vmem [shape: bf16[2,18,18,4], index: 0, kind: input, shape index: {}]   ;;  %s9025_s1 = inlined_call_operand.vmem [shape: bf16[3,3,4,128], index: 1, kind: input, shape index: {}]   ;;  %s9026_s2 = inlined_call_operand.vmem [shape: f32[1,128], index: 2, kind: input, shape index: {}]   ;;  %s9027_s3 = inlined_call_operand.vmem [shape: f32[1,128], index: 3, kind: input, shape index: {}]   ;;  %s9028_s4 = inlined_call_operand.hbm [shape: f32[2,256,128], index: 4, kind: output, shape index: {}]  }
   0x1   :  { %11 = vsyncpa [#allocation4 + $0x1], 0  ;;  %s7173_s15 = smov 0   ;;  %s7175_s16 = smov 0  }
   0x2   :  { %s7177_s17 = smov 0   ;;  %s7179_s18 = smov 0  }
   0x3   :  { %s7181_s19 = smov 0   ;;  %s7183_s20 = smov 0  }
   0x4 LB: > { %s5872_s21 = sadd.s32 4294967295, %s7143_s20   ;;  %s5873_s22 = sadd.s32 4294967294, %s7143_s20   ;;  %s7143_s20 = sphi %s7183_s20, %s17_s20   ;;  %s7139_s19 = sphi %s7181_s19, %s9139_s19   ;;  %s7135_s18 = sphi %s7179_s18, %s9138_s18   ;;  %s7131_s17 = sphi %s7177_s17, %s9137_s17   ;;  %s7127_s16 = sphi %s7175_s16, %s9136_s16   ;;  %s7123_s15 = sphi %s7173_s15, %s9135_s15  }
   0x5   : > { %s36_s23 = sadd.s32 1, %s7139_s19  ;;  %s151_s24 = sadd.s32 1, %s7131_s17 }
   0x6   : > { %p38_p0 = scmp.ge.s32.totalorder %s36_s23, 2  ;;  %p161_p1 = scmp.ne.s32.totalorder %s7131_s17, %s7127_s16 }
   0x7   : > { %p162_p2 = scmp.eq.s32.totalorder %s5872_s21, 1  ;;  %p167_p3 = scmp.ne.s32.totalorder %s7127_s16, %s7123_s15 }
   0x8   : > { %s9141_s23 = smov (%p38_p0, %s36_s23), 0  ;;  %p168_p5 = scmp.eq.s32.totalorder %s5873_s22, 1 }
   0x9   : > { %p7213_p4 = por %p162_p2, %p161_p1  ;;  %s144_s26 = ssub.s32 %s7139_s19, %s9141_s23 }
   0xa   : > { %p5879_p6 = scmp.ge.s32.totalorder %s7143_s20, 1  ;;  %p149_p7 = scmp.eq.s32.totalorder %s144_s26, 0 }
   0xb   : > { %p7220_p8 = por %p168_p5, %p167_p3  ;;  %p213_p9 = scmp.lt.s32.totalorder %s7143_s20, 3 }
   0xc   : > { %s7226_s28 = scalar_select %p149_p7, %s7131_s17, %s151_s24  }
   0xd   : > { %p214_p10 = pnand %p5879_p6, %p213_p9 }
   0xf   : > { %217 = sbr.rel (%p214_p10) target bundleno = 573 (0x23d), region = 36 }
  0x14   : > { %v302_v0 = vld [vmem:[%s9025_s1] sm:$0x3]  ;;  %vm432_vm0 = vcmask 1041408   ;;  %p249_p11 = scmp.lt.s32.totalorder %s7135_s18, 1  ;;  %v5914_v2 = vld [vmem:[%s9025_s1 + $0x2] sm:$0x3] }
  0x15   : > { %6952 = vmatprep.subr.msk.bf16.mxu1 %vm432_vm0, %v302_v0  ;;  %6951 = vmatprep.subr.msk.bf16.mxu0 %vm432_vm0, %v302_v0  ;;  %v434_v1 = vsel %vm432_vm0, %v302_v0, 0  ;;  %v5963_v3 = vld [vmem:[%s9025_s1 + $0x4] sm:$0x3]  ;;  %vm383_vm1 = vcmask 31744   ;;  %v6028_v8 = vld [vmem:[%s9025_s1 + $0x6] sm:$0x3] }
  0x16   : > { %6950 = vmatpush3.bf16.msra.mxu1 %v434_v1  ;;  %6644 = vmatpush3.bf16.msra.mxu0 %v434_v1  ;;  %s250_s9 = scalar_select %p249_p11, %s7135_s18, 1  ;;  %v1732_v7 = vsel %vm432_vm0, %v5963_v3, 0  ;;  %v1163_v10 = vsel %vm432_vm0, %v5914_v2, 0  ;;  %v6109_v11 = vld [vmem:[%s9025_s1 + $0x8] sm:$0x3]  ;;  %vm1518_vm2 = vcmask 1042432  }
  0x17   : > { %6953 = vmatprep.subr.msk.bf16.mxu1 %vm432_vm0, %v5914_v2  ;;  %6954 = vmatprep.subr.msk.bf16.mxu0 %vm432_vm0, %v5963_v3  ;;  %vm677_vm3 = vsmask.f32 3328  ;;  %vm678_vm4 = vsmask.f32 7440  ;;  %v7279_v18 = vld [vmem:[%s9025_s1 + $0xa] sm:$0x3] }
  0x18   : > { %s6961_s10 = smul.u32 216, %s250_s9  ;;  %vm1519_vm5 = vcmask 1046532   ;;  %v7284_v19 = vsel %vm432_vm0, %v6028_v8, 0  ;;  %v7289_v21 = vsel %vm432_vm0, %v6109_v11, 0  ;;  %v7295_v24 = vsel %vm432_vm0, %v7279_v18, 0  ;;  %vm7320_vm7 = vmor %vm677_vm3, %vm678_vm4  ;;  %s6489_s24 = sshll.u32 %s7135_s18, 12 }
  0x19   : > { %vm7306_vm6 = vmor %vm1518_vm2, %vm1519_vm5  ;;  %s8971_s5 = scalar_lea.hbm %s9028_s4, %s6489_s24  ;;  %s7145_s7 = smov [#allocation3]  }
  0x1a   : > { %s7247_s13 = scalar_lea.vmem %s9024_s0, %s6961_s10  ;;  %s246_s10 = sand.u32 1, %s7127_s16  }
  0x1b   : > { %v7019_v4 = vld [vmem:[%s7247_s13] sm:$0xff]   ;;  %v7021_v6 = vld [vmem:[%s7247_s13 + $0xc] sm:$0xff]   ;;  %v7023_v12 = vld [vmem:[%s7247_s13 + $0x18] sm:$0xff]   ;;  %s5880_s21 = sshll.u32 %s246_s10, 8  ;;  %s8979_s18 = scalar_lea.sflag [#allocation4], %s246_s10 }
  0x1c   : > { %v7020_v5 = vld [vmem:[%s7247_s13 + $0x60] sm:$0xff]   ;;  %6645 = vmatprep.mubr.msk.bf16.mxu0 %vm383_vm1, %v7019_v4  ;;  %v7022_v9 = vld [vmem:[%s7247_s13 + $0x6c] sm:$0xff]   ;;  %v7024_v13 = vld [vmem:[%s7247_s13 + $0x78] sm:$0xff]   ;;  %s8823_s22 = scalar_lea.vmem [#allocation3], %s5880_s21  ;;  %s7071_s8 = sshll.u32 %s7145_s7, 4  ;;  %s7072_s8 = int_to_ptr.vmem [resolvable:$false] %s7071_s8 }
  0x1d   : > { %6661 = vmatprep.mubr.msk.bf16.mxu1 %vm383_vm1, %v7020_v5  ;;  %6646 = vmatmul.mubr.msk.bf16.vlgmr.msra.gmra.mxu0 %vm383_vm1, %v7021_v6  ;;  %v7025_v14 = vld [vmem:[%s7247_s13 + $0x24] sm:$0xff]   ;;  %v7027_v16 = vld [vmem:[%s7247_s13 + $0x30] sm:$0xff]   ;;  %v7029_v20 = vld [vmem:[%s7247_s13 + $0x3c] sm:$0xff]   ;;  %s5746_s26 = sshll.u32 %s8823_s22, 4  ;;  %s7073_s9 = scalar_lea.vmem %s7072_s8, 8192  ;;  %s8973_s26 = int_to_ptr.vmem [resolvable:$true] %s5746_s26 }
  0x1e   : > { %6662 = vmatmul.mubr.msk.bf16.vlgmr.msra.gmra.mxu1 %vm383_vm1, %v7022_v9  ;;  %6712 = vmatpush3.bf16.msra.mxu0 %v1732_v7  ;;  %v7026_v15 = vld [vmem:[%s7247_s13 + $0x84] sm:$0xff]   ;;  %v7028_v17 = vld [vmem:[%s7247_s13 + $0x90] sm:$0xff]   ;;  %v7030_v22 = vld [vmem:[%s7247_s13 + $0x9c] sm:$0xff]   ;;  %s7067_s6 = scalar_lea.vmem %s8973_s26, 4096  ;;  %p7074_p1 = scmp.lt.s32.totalorder %s8973_s26, %s7072_s8 }
  0x1f   : > { %6678 = vmatpush3.bf16.msra.mxu1 %v1163_v10  ;;  %6649 = vmatprep.mubr.msk.bf16.mxu0 %vm383_vm1, %v7023_v12  ;;  %v7031_v23 = vld [vmem:[%s7247_s13 + $0x48] sm:$0xff]   ;;  %v629_v26 = vld [vmem:[%s7247_s13] sm:$0xf]  ;;  %v630_v27 = vld [vmem:[%s7247_s13 + $0x4] sm:$0xf]  ;;  %p7068_p12 = scmp.ne.s32.totalorder %s8973_s26, %s7067_s6  ;;  %p7075_p2 = scmp.lt.s32.totalorder %s7073_s9, %s7067_s6 }
  0x20   : > { %6665 = vmatprep.mubr.msk.bf16.mxu1 %vm383_vm1, %v7024_v13  ;;  %6955 = vmatprep.subr.msk.bf16.mxu1 %vm432_vm0, %v6028_v8  ;;  %v7032_v25 = vld [vmem:[%s7247_s13 + $0xa8] sm:$0xff]   ;;  %v681_v29 = vshrl.u32 %v629_v26, 16  ;;  %v684_v30 = vshll.u32 %v629_v26, 16  ;;  %v690_v31 = vshll.u32 %v630_v27, 16  ;;  %v694_v32 = vshrl.u32 %v630_v27, 16  ;;  %v7033_v2 = vld [vmem:[%s7247_s13 + $0x54] sm:$0xff]  }
  0x21   : > { %6956 = vmatprep.subr.msk.bf16.mxu0 %vm432_vm0, %v6109_v11  ;;  %v631_v28 = vld [vmem:[%s7247_s13 + $0x8] sm:$0x1]  ;;  %v1422_v33 = vld [vmem:[%s7247_s13] sm:$0xe]  ;;  %v1423_v35 = vld [vmem:[%s7247_s13 + $0x4] sm:$0xf]  ;;  %p7069_p13 = pnand %p7068_p12, %p7213_p4  ;;  %p7076_p3 = por %p7075_p2, %p7074_p1 }
  0x22   : > { %v700_v34 = vshll.u32 %v631_v28, 16  ;;  %v1424_v36 = vld [vmem:[%s7247_s13 + $0x8] sm:$0x1]  ;;  %v5947_v37 = vrot.slane %v1422_v33, 9  ;;  %v683_v38 = vrot.slane %v681_v29, 4  ;;  %v686_v39 = vrot.slane %v684_v30, 5 }
  0x23   : > { %v692_v40 = vrot.slane %v690_v31, 5  ;;  %v696_v41 = vrot.slane %v694_v32, 4  ;;  %v632_v43 = vld [vmem:[%s7247_s13 + $0xc] sm:$0xf]  ;;  %v1523_v45 = vrot.slane %v1423_v35, 5  ;;  %v1526_v46 = vrot.slane %v1424_v36, 5  ;;  %p7070_p0 = pneg %p7069_p13 }
  0x24   : > { %v702_v44 = vrot.slane %v700_v34, 5  ;;  %v633_v47 = vld [vmem:[%s7247_s13 + $0x10] sm:$0xf]  ;;  %v705_v48 = vshrl.u32 %v632_v43, 16  ;;  %v687_v49 = vor.u32 %v686_v39, %v683_v38  ;;  %v634_v51 = vld [vmem:[%s7247_s13 + $0x14] sm:$0x1] }
  0x25   : > { %6650 = vmatmul.mubr.msk.bf16.gmra.mxu0 %vm383_vm1, %v7025_v14  ;;  %v697_v50 = vor.u32 %v696_v41, %v692_v40  ;;  %v708_v52 = vshll.u32 %v632_v43, 16  ;;  %v714_v53 = vshll.u32 %v633_v47, 16  ;;  %v1425_v54 = vld [vmem:[%s7247_s13 + $0xc] sm:$0xe]  ;;  %v1524_v56 = vsel %vm7306_vm6, %v5947_v37, %v1523_v45  ;;  %v1426_v60 = vld [vmem:[%s7247_s13 + $0x10] sm:$0xf]  ;;  %p7077_p5 = pnand %p7076_p3, %p7070_p0 }
  0x26   : > { %6666 = vmatmul.mubr.msk.bf16.gmra.mxu1 %vm383_vm1, %v7026_v15  ;;  %6653 = vmatprep.mubr.msk.bf16.mxu0 %vm383_vm1, %v7027_v16  ;;  %v1525_v57 = vrot.slane %v1523_v45, 4  ;;  %v707_v58 = vrot.slane %v705_v48, 4  ;;  %v718_v59 = vshrl.u32 %v633_v47, 16  ;;  %v688_v61 = vrot.slane %v687_v49, 4  ;;  %v1427_v1 = vld [vmem:[%s7247_s13 + $0x14] sm:$0x1] }
  0x27   : > { %6669 = vmatprep.mubr.msk.bf16.mxu1 %vm383_vm1, %v7028_v17  ;;  %v698_v62 = vrot.slane %v697_v50, 4  ;;  %v710_v63 = vrot.slane %v708_v52, 5  ;;  %v716_v0 = vrot.slane %v714_v53, 5  ;;  %v724_v5 = vshll.u32 %v634_v51, 16  ;;  %v635_v7 = vld [vmem:[%s7247_s13 + $0x18] sm:$0xf] }
  0x28   : > { %v1527_v3 = vsel %vm7306_vm6, %v1525_v57, %v1526_v46  ;;  %v720_v4 = vrot.slane %v718_v59, 4  ;;  %v5948_v6 = vrot.slane %v1425_v54, 9  ;;  %v7034_v8 = vld [vmem:[%s7247_s13 + $0xb4] sm:$0xff]   ;;  %v693_v9 = vsel %vm7320_vm7, %v688_v61, %v692_v40  ;;  %v636_v13 = vld [vmem:[%s7247_s13 + $0x1c] sm:$0xf] }
  0x29   : > { %v703_v10 = vsel %vm7320_vm7, %v698_v62, %v702_v44  ;;  %v5964_v11 = vcombine.low %v1524_v56, %v1527_v3  ;;  %v711_v12 = vor.u32 %v710_v63, %v707_v58  ;;  %v726_v16 = vrot.slane %v724_v5, 5  ;;  %v1428_v27 = vld [vmem:[%s7247_s13 + $0x18] sm:$0xe]  ;;  %v1429_v32 = vld [vmem:[%s7247_s13 + $0x1c] sm:$0xf] }
  0x2a   : > { %v5915_v14 = vcombine.low %v693_v9, %v703_v10  ;;  %v721_v15 = vor.u32 %v720_v4, %v716_v0  ;;  %v1530_v17 = vrot.slane %v1426_v60, 5  ;;  %v732_v26 = vshll.u32 %v635_v7, 16  ;;  %v1430_v37 = vld [vmem:[%s7247_s13 + $0x20] sm:$0x1]  ;;  %v638_v43 = vld [vmem:[%s7247_s13 + $0x24] sm:$0xf] }
  0x2b   : > { %v738_v31 = vshll.u32 %v636_v13, 16  ;;  %v742_v36 = vshrl.u32 %v636_v13, 16  ;;  %v639_v48 = vld [vmem:[%s7247_s13 + $0x28] sm:$0xf]  ;;  %v5949_v50 = vrot.slane %v1428_v27, 9  ;;  %v1537_v51 = vrot.slane %v1429_v32, 5 }
  0x2c   : > { %v722_v28 = vrot.slane %v721_v15, 4  ;;  %v1531_v29 = vsel %vm7306_vm6, %v5948_v6, %v1530_v17  ;;  %v1532_v30 = vrot.slane %v1530_v17, 4  ;;  %v734_v35 = vrot.slane %v732_v26, 5  ;;  %v640_v53 = vld [vmem:[%s7247_s13 + $0x2c] sm:$0x1] }
  0x2d   : > { %6654 = vmatmul.mubr.msk.bf16.gmra.mxu0 %vm383_vm1, %v7029_v20  ;;  %v637_v20 = vld [vmem:[%s7247_s13 + $0x20] sm:$0x1]  ;;  %v740_v40 = vrot.slane %v738_v31, 5  ;;  %v744_v47 = vrot.slane %v742_v36, 4  ;;  %v1540_v52 = vrot.slane %v1430_v37, 5  ;;  %v753_v57 = vshrl.u32 %v638_v43, 16 }
  0x2e   : > { %6670 = vmatmul.mubr.msk.bf16.gmra.mxu1 %vm383_vm1, %v7030_v22  ;;  %6657 = vmatprep.mubr.msk.bf16.mxu0 %vm383_vm1, %v7031_v23  ;;  %v712_v22 = vrot.slane %v711_v12, 4  ;;  %v1533_v23 = vrot.slane %v1427_v1, 5  ;;  %v727_v38 = vsel %vm7320_vm7, %v722_v28, %v726_v16  ;;  %v748_v41 = vshll.u32 %v637_v20, 16  ;;  %v1431_v59 = vld [vmem:[%s7247_s13 + $0x24] sm:$0xe] }
  0x2f   : > { %6673 = vmatprep.mubr.msk.bf16.mxu1 %vm383_vm1, %v7032_v25  ;;  %v729_v25 = vshrl.u32 %v635_v7, 16  ;;  %v745_v56 = vor.u32 %v744_v47, %v740_v40  ;;  %v756_v58 = vshll.u32 %v638_v43, 16  ;;  %v1538_v60 = vsel %vm7306_vm6, %v5949_v50, %v1537_v51  ;;  %v1433_v5 = vld [vmem:[%s7247_s13 + $0x2c] sm:$0x1]  ;;  %v641_v10 = vld [vmem:[%s7247_s13 + $0x30] sm:$0xf] }
  0x30   : > { %v717_v33 = vsel %vm7320_vm7, %v712_v22, %v716_v0  ;;  %v1534_v39 = vsel %vm7306_vm6, %v1532_v30, %v1533_v23  ;;  %v750_v49 = vrot.slane %v748_v41, 5  ;;  %v1539_v61 = vrot.slane %v1537_v51, 4  ;;  %v1432_v0 = vld [vmem:[%s7247_s13 + $0x28] sm:$0xf]  ;;  %v642_v15 = vld [vmem:[%s7247_s13 + $0x34] sm:$0xf] }
  0x31   : > { %v731_v34 = vrot.slane %v729_v25, 4  ;;  %v5916_v44 = vcombine.low %v717_v33, %v727_v38  ;;  %v5965_v45 = vcombine.low %v1531_v29, %v1534_v39  ;;  %v762_v62 = vshll.u32 %v639_v48, 16  ;;  %v643_v23 = vld [vmem:[%s7247_s13 + $0x38] sm:$0x1]  ;;  %v1434_v28 = vld [vmem:[%s7247_s13 + $0x30] sm:$0xe] }
  0x32   : > { %v766_v63 = vshrl.u32 %v639_v48, 16  ;;  %v755_v3 = vrot.slane %v753_v57, 4  ;;  %v758_v4 = vrot.slane %v756_v58, 5  ;;  %v1541_v6 = vsel %vm7306_vm6, %v1539_v61, %v1540_v52  ;;  %v1435_v32 = vld [vmem:[%s7247_s13 + $0x34] sm:$0xf] }
  0x33   : > { %v735_v46 = vor.u32 %v734_v35, %v731_v34  ;;  %v764_v7 = vrot.slane %v762_v62, 5  ;;  %v772_v9 = vshll.u32 %v640_v53, 16  ;;  %v5966_v12 = vcombine.low %v1538_v60, %v1541_v6  ;;  %v1436_v37 = vld [vmem:[%s7247_s13 + $0x38] sm:$0x1]  ;;  %v644_v41 = vld [vmem:[%s7247_s13 + $0x3c] sm:$0xf] }
  0x34   : > { %v759_v13 = vor.u32 %v758_v4, %v755_v3  ;;  %v1544_v22 = vrot.slane %v1432_v0, 5  ;;  %v777_v26 = vshrl.u32 %v641_v10, 16  ;;  %v780_v27 = vshll.u32 %v641_v10, 16  ;;  %v645_v47 = vld [vmem:[%s7247_s13 + $0x40] sm:$0xf] }
  0x35   : > { %6658 = vmatmul.mubr.msk.bf16.gmra.mxu0 %vm383_vm1, %v7033_v2  ;;  %v736_v54 = vrot.slane %v735_v46, 4  ;;  %v746_v2 = vrot.slane %v745_v56, 4  ;;  %v774_v20 = vrot.slane %v772_v9, 5  ;;  %v786_v31 = vshll.u32 %v642_v15, 16  ;;  %v646_v52 = vld [vmem:[%s7247_s13 + $0x44] sm:$0x1] }
  0x36   : > { %6674 = vmatmul.mubr.msk.bf16.gmra.mxu1 %vm383_vm1, %v7034_v8  ;;  %6713 = vmatprep.mubr.msk.bf16.mxu0 %vm383_vm1, %v5964_v11  ;;  %v768_v8 = vrot.slane %v766_v63, 4  ;;  %v760_v25 = vrot.slane %v759_v13, 4  ;;  %v1546_v30 = vrot.slane %v1544_v22, 4  ;;  %v779_v34 = vrot.slane %v777_v26, 4  ;;  %v1437_v58 = vld [vmem:[%s7247_s13 + $0x3c] sm:$0xe] }
  0x37   : > { %6679 = vmatprep.mubr.msk.bf16.mxu1 %vm383_vm1, %v5915_v14  ;;  %v741_v1 = vsel %vm7320_vm7, %v736_v54, %v740_v40  ;;  %v751_v11 = vsel %vm7320_vm7, %v746_v2, %v750_v49  ;;  %v5950_v14 = vrot.slane %v1431_v59, 9  ;;  %v782_v35 = vrot.slane %v780_v27, 5  ;;  %v1438_v63 = vld [vmem:[%s7247_s13 + $0x40] sm:$0xf]  ;;  %v1439_v4 = vld [vmem:[%s7247_s13 + $0x44] sm:$0x1] }
  0x38   : > { %v5917_v16 = vcombine.low %v741_v1, %v751_v11  ;;  %v769_v17 = vor.u32 %v768_v8, %v764_v7  ;;  %v765_v33 = vsel %vm7320_vm7, %v760_v25, %v764_v7  ;;  %v790_v36 = vshrl.u32 %v642_v15, 16  ;;  %v647_v9 = vld [vmem:[%s7247_s13 + $0x48] sm:$0xf] }
  0x39   : > { %v1545_v29 = vsel %vm7306_vm6, %v5950_v14, %v1544_v22  ;;  %v788_v39 = vrot.slane %v786_v31, 5  ;;  %v796_v40 = vshll.u32 %v643_v23, 16  ;;  %v5951_v49 = vrot.slane %v1434_v28, 9  ;;  %v648_v14 = vld [vmem:[%s7247_s13 + $0x4c] sm:$0xf] }
  0x3a   : > { %v792_v46 = vrot.slane %v790_v36, 4  ;;  %v1551_v50 = vrot.slane %v1435_v32, 5  ;;  %v1554_v51 = vrot.slane %v1436_v37, 5  ;;  %v801_v56 = vshrl.u32 %v644_v41, 16  ;;  %v649_v22 = vld [vmem:[%s7247_s13 + $0x50] sm:$0x1] }
  0x3b   : > { %v798_v48 = vrot.slane %v796_v40, 5  ;;  %v804_v57 = vshll.u32 %v644_v41, 16  ;;  %v810_v61 = vshll.u32 %v645_v47, 16  ;;  %v814_v62 = vshrl.u32 %v645_v47, 16  ;;  %v1440_v27 = vld [vmem:[%s7247_s13 + $0x48] sm:$0xe] }
  0x3c   : > { %v793_v54 = vor.u32 %v792_v46, %v788_v39  ;;  %v1552_v59 = vsel %vm7306_vm6, %v5951_v49, %v1551_v50  ;;  %v1553_v60 = vrot.slane %v1551_v50, 4  ;;  %v803_v2 = vrot.slane %v801_v56, 4  ;;  %v1441_v31 = vld [vmem:[%s7247_s13 + $0x4c] sm:$0xf]  ;;  %v1442_v36 = vld [vmem:[%s7247_s13 + $0x50] sm:$0x1] }
  0x3d   : > { %6714 = vmatmul.mubr.msk.bf16.vlgmr.msra.gmra.mxu0 %vm383_vm1, %v5965_v45  ;;  %v783_v45 = vor.u32 %v782_v35, %v779_v34  ;;  %v806_v3 = vrot.slane %v804_v57, 5  ;;  %v812_v6 = vrot.slane %v810_v61, 5  ;;  %v816_v7 = vrot.slane %v814_v62, 4  ;;  %v650_v40 = vld [vmem:[%s7247_s13 + $0x54] sm:$0xf] }
  0x3e   : > { %6680 = vmatmul.mubr.msk.bf16.vlgmr.msra.gmra.mxu1 %vm383_vm1, %v5916_v44  ;;  %6780 = vmatpush3.bf16.msra.mxu0 %v7289_v21  ;;  %v1547_v21 = vrot.slane %v1433_v5, 5  ;;  %v794_v1 = vrot.slane %v793_v54, 4  ;;  %v1555_v5 = vsel %vm7306_vm6, %v1553_v60, %v1554_v51  ;;  %v820_v8 = vshll.u32 %v646_v52, 16  ;;  %v651_v46 = vld [vmem:[%s7247_s13 + $0x58] sm:$0xf] }
  0x3f   : > { %6746 = vmatpush3.bf16.msra.mxu1 %v7284_v19  ;;  %6717 = vmatprep.mubr.msk.bf16.mxu0 %vm383_vm1, %v5966_v12  ;;  %v770_v19 = vrot.slane %v769_v17, 4  ;;  %v784_v53 = vrot.slane %v783_v45, 4  ;;  %v5968_v11 = vcombine.low %v1552_v59, %v1555_v5  ;;  %v807_v12 = vor.u32 %v806_v3, %v803_v2  ;;  %v652_v51 = vld [vmem:[%s7247_s13 + $0x5c] sm:$0x1]  ;;  %v1443_v57 = vld [vmem:[%s7247_s13 + $0x54] sm:$0xe] }
  0x40   : > { %6957 = vmatprep.subr.msk.bf16.mxu1 %vm432_vm0, %v7279_v18  ;;  %6683 = vmatprep.mubr.msk.bf16.mxu1 %vm383_vm1, %v5917_v16  ;;  %v1548_v38 = vsel %vm7306_vm6, %v1546_v30, %v1547_v21  ;;  %v799_v10 = vsel %vm7320_vm7, %v794_v1, %v798_v48  ;;  %v5952_v13 = vrot.slane %v1437_v58, 9  ;;  %v817_v16 = vor.u32 %v816_v7, %v812_v6  ;;  %v1444_v62 = vld [vmem:[%s7247_s13 + $0x58] sm:$0xf]  ;;  %v1445_v3 = vld [vmem:[%s7247_s13 + $0x5c] sm:$0x1] }
  0x41   : > { %v775_v18 = vsel %vm7320_vm7, %v770_v19, %v774_v20  ;;  %v5967_v44 = vcombine.low %v1545_v29, %v1548_v38  ;;  %v789_v0 = vsel %vm7320_vm7, %v784_v53, %v788_v39  ;;  %v822_v17 = vrot.slane %v820_v8, 5  ;;  %v653_v8 = vld [vmem:[%s7247_s13 + $0x60] sm:$0xf] }
  0x42   : > { %v5918_v43 = vcombine.low %v765_v33, %v775_v18  ;;  %v5919_v15 = vcombine.low %v789_v0, %v799_v10  ;;  %v1558_v20 = vrot.slane %v1438_v63, 5  ;;  %v808_v23 = vrot.slane %v807_v12, 4 }
  0x43   : > { %v1561_v25 = vrot.slane %v1439_v4, 5  ;;  %v825_v21 = vshrl.u32 %v647_v9, 16  ;;  %v828_v26 = vshll.u32 %v647_v9, 16  ;;  %v818_v28 = vrot.slane %v817_v16, 4 }
  0x44   : > { %v1559_v19 = vsel %vm7306_vm6, %v5952_v13, %v1558_v20  ;;  %v1560_v29 = vrot.slane %v1558_v20, 4  ;;  %v834_v30 = vshll.u32 %v648_v14, 16  ;;  %v813_v32 = vsel %vm7320_vm7, %v808_v23, %v812_v6  ;;  %v654_v13 = vld [vmem:[%s7247_s13 + $0x64] sm:$0xf]  ;;  %v655_v20 = vld [vmem:[%s7247_s13 + $0x68] sm:$0x1] }
  0x45   : > { %6718 = vmatmul.mubr.msk.bf16.gmra.mxu0 %vm383_vm1, %v5967_v44  ;;  %v827_v33 = vrot.slane %v825_v21, 4  ;;  %v830_v34 = vrot.slane %v828_v26, 5  ;;  %v838_v35 = vshrl.u32 %v648_v14, 16  ;;  %v823_v37 = vsel %vm7320_vm7, %v818_v28, %v822_v17  ;;  %v1446_v26 = vld [vmem:[%s7247_s13 + $0x60] sm:$0xe] }
  0x46   : > { %6684 = vmatmul.mubr.msk.bf16.gmra.mxu1 %vm383_vm1, %v5918_v43  ;;  %6721 = vmatprep.mubr.msk.bf16.mxu0 %vm383_vm1, %v5968_v11  ;;  %v1562_v18 = vsel %vm7306_vm6, %v1560_v29, %v1561_v25  ;;  %v836_v38 = vrot.slane %v834_v30, 5  ;;  %v844_v39 = vshll.u32 %v649_v22, 16  ;;  %v5920_v41 = vcombine.low %v813_v32, %v823_v37  ;;  %v1447_v30 = vld [vmem:[%s7247_s13 + $0x64] sm:$0xf] }
  0x47   : > { %6687 = vmatprep.mubr.msk.bf16.mxu1 %vm383_vm1, %v5919_v15  ;;  %v5969_v43 = vcombine.low %v1559_v19, %v1562_v18  ;;  %v831_v44 = vor.u32 %v830_v34, %v827_v33  ;;  %v840_v45 = vrot.slane %v838_v35, 4  ;;  %v5953_v48 = vrot.slane %v1440_v27, 9  ;;  %v1448_v35 = vld [vmem:[%s7247_s13 + $0x68] sm:$0x1] }
  0x48   : > { %v846_v47 = vrot.slane %v844_v39, 5  ;;  %v1565_v49 = vrot.slane %v1441_v31, 5  ;;  %v1568_v50 = vrot.slane %v1442_v36, 5  ;;  %v849_v54 = vshrl.u32 %v650_v40, 16  ;;  %v656_v39 = vld [vmem:[%s7247_s13 + $0x6c] sm:$0xf] }
  0x49   : > { %v832_v52 = vrot.slane %v831_v44, 4  ;;  %v841_v53 = vor.u32 %v840_v45, %v836_v38  ;;  %v852_v56 = vshll.u32 %v650_v40, 16  ;;  %v858_v60 = vshll.u32 %v651_v46, 16  ;;  %v657_v45 = vld [vmem:[%s7247_s13 + $0x70] sm:$0xf] }
  0x4a   : > { %v1566_v58 = vsel %vm7306_vm6, %v5953_v48, %v1565_v49  ;;  %v1567_v59 = vrot.slane %v1565_v49, 4  ;;  %v862_v61 = vshrl.u32 %v651_v46, 16  ;;  %v851_v1 = vrot.slane %v849_v54, 4 }
  0x4b   : > { %v837_v63 = vsel %vm7320_vm7, %v832_v52, %v836_v38  ;;  %v842_v0 = vrot.slane %v841_v53, 4  ;;  %v854_v2 = vrot.slane %v852_v56, 5  ;;  %v860_v5 = vrot.slane %v858_v60, 5  ;;  %v1449_v56 = vld [vmem:[%s7247_s13 + $0x6c] sm:$0xe] }
  0x4c   : > { %v1569_v4 = vsel %vm7306_vm6, %v1567_v59, %v1568_v50  ;;  %v864_v6 = vrot.slane %v862_v61, 4  ;;  %v868_v7 = vshll.u32 %v652_v51, 16  ;;  %v5954_v12 = vrot.slane %v1443_v57, 9  ;;  %v658_v50 = vld [vmem:[%s7247_s13 + $0x74] sm:$0x1] }
  0x4d   : > { %6722 = vmatmul.mubr.msk.bf16.gmra.mxu0 %vm383_vm1, %v5969_v43  ;;  %v847_v9 = vsel %vm7320_vm7, %v842_v0, %v846_v47  ;;  %v5970_v10 = vcombine.low %v1566_v58, %v1569_v4  ;;  %v855_v11 = vor.u32 %v854_v2, %v851_v1  ;;  %v1572_v17 = vrot.slane %v1444_v62, 5  ;;  %v1450_v61 = vld [vmem:[%s7247_s13 + $0x70] sm:$0xf]  ;;  %v1451_v2 = vld [vmem:[%s7247_s13 + $0x74] sm:$0x1] }
  0x4e   : > { %6688 = vmatmul.mubr.msk.bf16.gmra.mxu1 %vm383_vm1, %v5920_v41  ;;  %v5921_v14 = vcombine.low %v837_v63, %v847_v9  ;;  %v865_v15 = vor.u32 %v864_v6, %v860_v5  ;;  %v870_v16 = vrot.slane %v868_v7, 5  ;;  %v1575_v23 = vrot.slane %v1445_v3, 5  ;;  %v659_v7 = vld [vmem:[%s7247_s13 + $0x78] sm:$0xf] }
  0x4f   : > { %6725 = vmatprep.mubr.msk.bf16.mxu0 %vm383_vm1, %v5970_v10  ;;  %v856_v22 = vrot.slane %v855_v11, 4  ;;  %v873_v25 = vshrl.u32 %v653_v8, 16  ;;  %v876_v21 = vshll.u32 %v653_v8, 16  ;;  %v1573_v28 = vsel %vm7306_vm6, %v5954_v12, %v1572_v17  ;;  %v660_v12 = vld [vmem:[%s7247_s13 + $0x7c] sm:$0xf] }
  0x50   : > { %6691 = vmatprep.mubr.msk.bf16.mxu1 %vm383_vm1, %v5921_v14  ;;  %v866_v27 = vrot.slane %v865_v15, 4  ;;  %v1574_v19 = vrot.slane %v1572_v17, 4  ;;  %v882_v29 = vshll.u32 %v654_v13, 16  ;;  %v886_v34 = vshrl.u32 %v654_v13, 16  ;;  %v661_v17 = vld [vmem:[%s7247_s13 + $0x80] sm:$0x1] }
  0x51   : > { %v861_v31 = vsel %vm7320_vm7, %v856_v22, %v860_v5  ;;  %v875_v32 = vrot.slane %v873_v25, 4  ;;  %v878_v33 = vrot.slane %v876_v21, 5  ;;  %v892_v38 = vshll.u32 %v655_v20, 16  ;;  %v1452_v21 = vld [vmem:[%s7247_s13 + $0x78] sm:$0xe] }
  0x52   : > { %v871_v36 = vsel %vm7320_vm7, %v866_v27, %v870_v16  ;;  %v1576_v37 = vsel %vm7306_vm6, %v1574_v19, %v1575_v23  ;;  %v884_v18 = vrot.slane %v882_v29, 5  ;;  %v888_v44 = vrot.slane %v886_v34, 4  ;;  %v1453_v29 = vld [vmem:[%s7247_s13 + $0x7c] sm:$0xf]  ;;  %v1454_v34 = vld [vmem:[%s7247_s13 + $0x80] sm:$0x1] }
  0x53   : > { %v5922_v40 = vcombine.low %v861_v31, %v871_v36  ;;  %v5971_v41 = vcombine.low %v1573_v28, %v1576_v37  ;;  %v879_v43 = vor.u32 %v878_v33, %v875_v32  ;;  %v894_v46 = vrot.slane %v892_v38, 5  ;;  %v662_v38 = vld [vmem:[%s7247_s13 + $0x84] sm:$0xf] }
  0x54   : > { %v5955_v47 = vrot.slane %v1446_v26, 9  ;;  %v1579_v48 = vrot.slane %v1447_v30, 5  ;;  %v1582_v49 = vrot.slane %v1448_v35, 5  ;;  %v889_v52 = vor.u32 %v888_v44, %v884_v18  ;;  %v663_v44 = vld [vmem:[%s7247_s13 + $0x88] sm:$0xf] }
  0x55   : > { %6726 = vmatmul.mubr.msk.bf16.gmra.mxu0 %vm383_vm1, %v5971_v41  ;;  %v880_v51 = vrot.slane %v879_v43, 4  ;;  %v897_v53 = vshrl.u32 %v656_v39, 16  ;;  %v900_v54 = vshll.u32 %v656_v39, 16  ;;  %v906_v59 = vshll.u32 %v657_v45, 16 }
  0x56   : > { %6692 = vmatmul.mubr.msk.bf16.gmra.mxu1 %vm383_vm1, %v5922_v40  ;;  %v1580_v57 = vsel %vm7306_vm6, %v5955_v47, %v1579_v48  ;;  %v1581_v58 = vrot.slane %v1579_v48, 4  ;;  %v910_v60 = vshrl.u32 %v657_v45, 16  ;;  %v890_v63 = vrot.slane %v889_v52, 4 }
  0x57   : > { %v885_v62 = vsel %vm7320_vm7, %v880_v51, %v884_v18  ;;  %v899_v0 = vrot.slane %v897_v53, 4  ;;  %v902_v1 = vrot.slane %v900_v54, 5  ;;  %v908_v4 = vrot.slane %v906_v59, 5  ;;  %v1455_v54 = vld [vmem:[%s7247_s13 + $0x84] sm:$0xe] }
  0x58   : > { %v1583_v3 = vsel %vm7306_vm6, %v1581_v58, %v1582_v49  ;;  %v912_v5 = vrot.slane %v910_v60, 4  ;;  %v916_v6 = vshll.u32 %v658_v50, 16  ;;  %v895_v8 = vsel %vm7320_vm7, %v890_v63, %v894_v46  ;;  %v664_v49 = vld [vmem:[%s7247_s13 + $0x8c] sm:$0x1]  ;;  %v1456_v60 = vld [vmem:[%s7247_s13 + $0x88] sm:$0xf] }
  0x59   : > { %v5972_v9 = vcombine.low %v1580_v57, %v1583_v3  ;;  %v903_v10 = vor.u32 %v902_v1, %v899_v0  ;;  %v5956_v11 = vrot.slane %v1449_v56, 9  ;;  %v5923_v13 = vcombine.low %v885_v62, %v895_v8  ;;  %v1457_v1 = vld [vmem:[%s7247_s13 + $0x8c] sm:$0x1] }
  0x5a   : > { %v913_v14 = vor.u32 %v912_v5, %v908_v4  ;;  %v918_v15 = vrot.slane %v916_v6, 5  ;;  %v1586_v16 = vrot.slane %v1450_v61, 5  ;;  %v1589_v22 = vrot.slane %v1451_v2, 5  ;;  %v665_v6 = vld [vmem:[%s7247_s13 + $0x90] sm:$0xf] }
  0x5b   : > { %6729 = vmatprep.mubr.msk.bf16.mxu0 %vm383_vm1, %v5972_v9  ;;  %v904_v20 = vrot.slane %v903_v10, 4  ;;  %v921_v23 = vshrl.u32 %v659_v7, 16  ;;  %v924_v25 = vshll.u32 %v659_v7, 16  ;;  %6695 = vmatprep.mubr.msk.bf16.mxu1 %vm383_vm1, %v5923_v13  ;;  %v930_v19 = vshll.u32 %v660_v12, 16 }
  0x5c   : > { %v914_v26 = vrot.slane %v913_v14, 4  ;;  %v1587_v27 = vsel %vm7306_vm6, %v5956_v11, %v1586_v16  ;;  %v1588_v28 = vrot.slane %v1586_v16, 4  ;;  %v934_v33 = vshrl.u32 %v660_v12, 16  ;;  %v666_v11 = vld [vmem:[%s7247_s13 + $0x94] sm:$0xf] }
  0x5d   : > { %v909_v30 = vsel %vm7320_vm7, %v904_v20, %v908_v4  ;;  %v923_v31 = vrot.slane %v921_v23, 4  ;;  %v926_v32 = vrot.slane %v924_v25, 5  ;;  %v932_v37 = vrot.slane %v930_v19, 5  ;;  %v667_v12 = vld [vmem:[%s7247_s13 + $0x98] sm:$0x1] }
  0x5e   : > { %v919_v35 = vsel %vm7320_vm7, %v914_v26, %v918_v15  ;;  %v1590_v36 = vsel %vm7306_vm6, %v1588_v28, %v1589_v22  ;;  %v940_v18 = vshll.u32 %v661_v17, 16  ;;  %v936_v43 = vrot.slane %v934_v33, 4  ;;  %v1458_v25 = vld [vmem:[%s7247_s13 + $0x90] sm:$0xe] }
  0x5f   : > { %v5924_v39 = vcombine.low %v909_v30, %v919_v35  ;;  %v5973_v40 = vcombine.low %v1587_v27, %v1590_v36  ;;  %v927_v41 = vor.u32 %v926_v32, %v923_v31  ;;  %v5957_v46 = vrot.slane %v1452_v21, 9  ;;  %v1459_v21 = vld [vmem:[%s7247_s13 + $0x94] sm:$0xf] }
  0x60   : > { %v942_v45 = vrot.slane %v940_v18, 5  ;;  %v1593_v47 = vrot.slane %v1453_v29, 5  ;;  %v1596_v48 = vrot.slane %v1454_v34, 5  ;;  %v937_v51 = vor.u32 %v936_v43, %v932_v37  ;;  %v1460_v29 = vld [vmem:[%s7247_s13 + $0x98] sm:$0x1] }
  0x61   : > { %6696 = vmatmul.mubr.msk.bf16.gmra.mxu1 %vm383_vm1, %v5924_v39  ;;  %6730 = vmatmul.mubr.msk.bf16.gmra.mxu0 %vm383_vm1, %v5973_v40  ;;  %v928_v50 = vrot.slane %v927_v41, 4  ;;  %v945_v52 = vshrl.u32 %v662_v38, 16  ;;  %v948_v53 = vshll.u32 %v662_v38, 16  ;;  %v954_v58 = vshll.u32 %v663_v44, 16  ;;  %v668_v34 = vld [vmem:[%s7247_s13 + $0x9c] sm:$0xf] }
  0x62   : > { %v1594_v56 = vsel %vm7306_vm6, %v5957_v46, %v1593_v47  ;;  %v1595_v57 = vrot.slane %v1593_v47, 4  ;;  %v958_v59 = vshrl.u32 %v663_v44, 16  ;;  %v938_v62 = vrot.slane %v937_v51, 4  ;;  %v669_v43 = vld [vmem:[%s7247_s13 + $0xa0] sm:$0xf] }
  0x63   : > { %v933_v61 = vsel %vm7320_vm7, %v928_v50, %v932_v37  ;;  %v947_v63 = vrot.slane %v945_v52, 4  ;;  %v950_v0 = vrot.slane %v948_v53, 5  ;;  %v956_v3 = vrot.slane %v954_v58, 5  ;;  %v670_v44 = vld [vmem:[%s7247_s13 + $0xa4] sm:$0x1] }
  0x64   : > { %v1597_v2 = vsel %vm7306_vm6, %v1595_v57, %v1596_v48  ;;  %v960_v4 = vrot.slane %v958_v59, 4  ;;  %v964_v5 = vshll.u32 %v664_v49, 16  ;;  %v943_v7 = vsel %vm7320_vm7, %v938_v62, %v942_v45  ;;  %v1461_v49 = vld [vmem:[%s7247_s13 + $0x9c] sm:$0xe] }
  0x65   : > { %v5974_v8 = vcombine.low %v1594_v56, %v1597_v2  ;;  %v951_v9 = vor.u32 %v950_v0, %v947_v63  ;;  %v5958_v10 = vrot.slane %v1455_v54, 9  ;;  %v5925_v13 = vcombine.low %v933_v61, %v943_v7  ;;  %v1462_v54 = vld [vmem:[%s7247_s13 + $0xa0] sm:$0xf]  ;;  %v7528_v56 = vld [vmem:[%s9025_s1 + $0xc] sm:$0x3] }
  0x66   : > { %v961_v14 = vor.u32 %v960_v4, %v956_v3  ;;  %v966_v15 = vrot.slane %v964_v5, 5  ;;  %v1600_v16 = vrot.slane %v1456_v60, 5  ;;  %v1603_v20 = vrot.slane %v1457_v1, 5  ;;  %v1463_v61 = vld [vmem:[%s7247_s13 + $0xa4] sm:$0x1]  ;;  %6958 = vmatprep.subr.msk.bf16.mxu0 %vm432_vm0, %v7528_v56 }
  0x67   : > { %6733 = vmatprep.mubr.msk.bf16.mxu0 %vm383_vm1, %v5974_v8  ;;  %v952_v17 = vrot.slane %v951_v9, 4  ;;  %v969_v22 = vshrl.u32 %v665_v6, 16  ;;  %v972_v23 = vshll.u32 %v665_v6, 16  ;;  %6699 = vmatprep.mubr.msk.bf16.mxu1 %vm383_vm1, %v5925_v13  ;;  %v978_v19 = vshll.u32 %v666_v11, 16  ;;  %v671_v6 = vld [vmem:[%s7247_s13 + $0xa8] sm:$0xf] }
  0x68   : > { %v962_v26 = vrot.slane %v961_v14, 4  ;;  %v1601_v27 = vsel %vm7306_vm6, %v5958_v10, %v1600_v16  ;;  %v1602_v28 = vrot.slane %v1600_v16, 4  ;;  %v982_v33 = vshrl.u32 %v666_v11, 16  ;;  %v672_v11 = vld [vmem:[%s7247_s13 + $0xac] sm:$0xf] }
  0x69   : > { %v957_v30 = vsel %vm7320_vm7, %v952_v17, %v956_v3  ;;  %v971_v31 = vrot.slane %v969_v22, 4  ;;  %v974_v32 = vrot.slane %v972_v23, 5  ;;  %v980_v37 = vrot.slane %v978_v19, 5 }
  0x6a   : > { %v967_v35 = vsel %vm7320_vm7, %v962_v26, %v966_v15  ;;  %v1604_v36 = vsel %vm7306_vm6, %v1602_v28, %v1603_v20  ;;  %v988_v18 = vshll.u32 %v667_v12, 16  ;;  %v984_v41 = vrot.slane %v982_v33, 4  ;;  %v673_v12 = vld [vmem:[%s7247_s13 + $0xb0] sm:$0x1] }
  0x6b   : > { %v5926_v38 = vcombine.low %v957_v30, %v967_v35  ;;  %v5975_v39 = vcombine.low %v1601_v27, %v1604_v36  ;;  %v975_v40 = vor.u32 %v974_v32, %v971_v31  ;;  %v5959_v46 = vrot.slane %v1458_v25, 9  ;;  %v1464_v25 = vld [vmem:[%s7247_s13 + $0xa8] sm:$0xe] }
  0x6c   : > { %v990_v45 = vrot.slane %v988_v18, 5  ;;  %v1607_v47 = vrot.slane %v1459_v21, 5  ;;  %v1610_v48 = vrot.slane %v1460_v29, 5  ;;  %v985_v51 = vor.u32 %v984_v41, %v980_v37  ;;  %v1465_v21 = vld [vmem:[%s7247_s13 + $0xac] sm:$0xf] }
  0x6d   : > { %6700 = vmatmul.mubr.msk.bf16.gmra.mxu1 %vm383_vm1, %v5926_v38  ;;  %6734 = vmatmul.mubr.msk.bf16.gmra.mxu0 %vm383_vm1, %v5975_v39  ;;  %v976_v50 = vrot.slane %v975_v40, 4  ;;  %v993_v52 = vshrl.u32 %v668_v34, 16  ;;  %v996_v53 = vshll.u32 %v668_v34, 16  ;;  %v1002_v59 = vshll.u32 %v669_v43, 16  ;;  %v1466_v29 = vld [vmem:[%s7247_s13 + $0xb0] sm:$0x1] }
  0x6e   : > { %v1608_v57 = vsel %vm7306_vm6, %v5959_v46, %v1607_v47  ;;  %v1609_v58 = vrot.slane %v1607_v47, 4  ;;  %v1006_v60 = vshrl.u32 %v669_v43, 16  ;;  %v986_v63 = vrot.slane %v985_v51, 4  ;;  %v674_v34 = vld [vmem:[%s7247_s13 + $0xb4] sm:$0xf] }
  0x6f   : > { %v981_v62 = vsel %vm7320_vm7, %v976_v50, %v980_v37  ;;  %v995_v0 = vrot.slane %v993_v52, 4  ;;  %v998_v1 = vrot.slane %v996_v53, 5  ;;  %v1004_v3 = vrot.slane %v1002_v59, 5  ;;  %v675_v43 = vld [vmem:[%s7247_s13 + $0xb8] sm:$0xf] }
  0x70   : > { %v1611_v2 = vsel %vm7306_vm6, %v1609_v58, %v1610_v48  ;;  %v1008_v4 = vrot.slane %v1006_v60, 4  ;;  %v1012_v5 = vshll.u32 %v670_v44, 16  ;;  %v991_v7 = vsel %vm7320_vm7, %v986_v63, %v990_v45  ;;  %v676_v44 = vld [vmem:[%s7247_s13 + $0xbc] sm:$0x1] }
  0x71   : > { %v5976_v8 = vcombine.low %v1608_v57, %v1611_v2  ;;  %v999_v9 = vor.u32 %v998_v1, %v995_v0  ;;  %v5960_v10 = vrot.slane %v1461_v49, 9  ;;  %v5927_v13 = vcombine.low %v981_v62, %v991_v7  ;;  %v1467_v49 = vld [vmem:[%s7247_s13 + $0xb4] sm:$0xe]  ;;  %v1469_v1 = vld [vmem:[%s7247_s13 + $0xbc] sm:$0x1] }
  0x72   : > { %v1009_v14 = vor.u32 %v1008_v4, %v1004_v3  ;;  %v1014_v15 = vrot.slane %v1012_v5, 5  ;;  %v1614_v16 = vrot.slane %v1462_v54, 5  ;;  %v1617_v20 = vrot.slane %v1463_v61, 5  ;;  %v1468_v54 = vld [vmem:[%s7247_s13 + $0xb8] sm:$0xf] }
  0x73   : > { %6737 = vmatprep.mubr.msk.bf16.mxu0 %vm383_vm1, %v5976_v8  ;;  %v1000_v17 = vrot.slane %v999_v9, 4  ;;  %v1017_v22 = vshrl.u32 %v671_v6, 16  ;;  %v1020_v23 = vshll.u32 %v671_v6, 16  ;;  %6703 = vmatprep.mubr.msk.bf16.mxu1 %vm383_vm1, %v5927_v13  ;;  %v1026_v19 = vshll.u32 %v672_v11, 16  ;;  %v6061_v6 = vld [vmem:[%s7247_s13 + $0xc] sm:$0xf] }
  0x74   : > { %v1010_v26 = vrot.slane %v1009_v14, 4  ;;  %v1615_v27 = vsel %vm7306_vm6, %v5960_v10, %v1614_v16  ;;  %v1616_v28 = vrot.slane %v1614_v16, 4  ;;  %v1030_v33 = vshrl.u32 %v672_v11, 16  ;;  %v6062_v11 = vld [vmem:[%s7247_s13 + $0x10] sm:$0xf] }
  0x75   : > { %v1005_v30 = vsel %vm7320_vm7, %v1000_v17, %v1004_v3  ;;  %v1019_v31 = vrot.slane %v1017_v22, 4  ;;  %v1022_v32 = vrot.slane %v1020_v23, 5  ;;  %v1028_v37 = vrot.slane %v1026_v19, 5  ;;  %v6063_v16 = vld [vmem:[%s7247_s13 + $0x14] sm:$0x1] }
  0x76   : > { %v1015_v35 = vsel %vm7320_vm7, %v1010_v26, %v1014_v15  ;;  %v1618_v36 = vsel %vm7306_vm6, %v1616_v28, %v1617_v20  ;;  %v1036_v18 = vshll.u32 %v673_v12, 16  ;;  %v1032_v41 = vrot.slane %v1030_v33, 4  ;;  %v6065_v19 = vld [vmem:[%s7247_s13 + $0x1c] sm:$0xf] }
  0x77   : > { %v5928_v38 = vcombine.low %v1005_v30, %v1015_v35  ;;  %v5977_v39 = vcombine.low %v1615_v27, %v1618_v36  ;;  %v1023_v40 = vor.u32 %v1022_v32, %v1019_v31  ;;  %v5961_v46 = vrot.slane %v1464_v25, 9  ;;  %v6064_v25 = vld [vmem:[%s7247_s13 + $0x18] sm:$0xf]  ;;  %v7035_v30 = vld [vmem:[%s7247_s13 + $0xc] sm:$0xff]  }
  0x78   : > { %v1038_v45 = vrot.slane %v1036_v18, 5  ;;  %v1621_v47 = vrot.slane %v1465_v21, 5  ;;  %v1624_v48 = vrot.slane %v1466_v29, 5  ;;  %v1033_v51 = vor.u32 %v1032_v41, %v1028_v37  ;;  %v6066_v18 = vld [vmem:[%s7247_s13 + $0x20] sm:$0x1] }
  0x79   : > { %6704 = vmatmul.mubr.msk.bf16.gmra.mxu1 %vm383_vm1, %v5928_v38  ;;  %6738 = vmatmul.mubr.msk.bf16.gmra.mxu0 %vm383_vm1, %v5977_v39  ;;  %v1024_v50 = vrot.slane %v1023_v40, 4  ;;  %v1041_v52 = vshrl.u32 %v674_v34, 16  ;;  %v1044_v53 = vshll.u32 %v674_v34, 16  ;;  %v1050_v59 = vshll.u32 %v675_v43, 16 }
  0x7a   : > { %v1622_v57 = vsel %vm7306_vm6, %v5961_v46, %v1621_v47  ;;  %v1623_v58 = vrot.slane %v1621_v47, 4  ;;  %v1054_v60 = vshrl.u32 %v675_v43, 16  ;;  %v1034_v62 = vrot.slane %v1033_v51, 4  ;;  %v6067_v43 = vld [vmem:[%s7247_s13 + $0x24] sm:$0xf] }
  0x7b   : > { %v1029_v61 = vsel %vm7320_vm7, %v1024_v50, %v1028_v37  ;;  %v1043_v63 = vrot.slane %v1041_v52, 4  ;;  %v1046_v0 = vrot.slane %v1044_v53, 5  ;;  %v1052_v3 = vrot.slane %v1050_v59, 5  ;;  %v6069_v59 = vld [vmem:[%s7247_s13 + $0x2c] sm:$0x1] }
  0x7c   : > { %v1625_v2 = vsel %vm7306_vm6, %v1623_v58, %v1624_v48  ;;  %v1056_v4 = vrot.slane %v1054_v60, 4  ;;  %v1060_v5 = vshll.u32 %v676_v44, 16  ;;  %v1039_v7 = vsel %vm7320_vm7, %v1034_v62, %v1038_v45  ;;  %v6068_v44 = vld [vmem:[%s7247_s13 + $0x28] sm:$0xf] }
  0x7d   : > { %v5978_v8 = vcombine.low %v1622_v57, %v1625_v2  ;;  %v1047_v9 = vor.u32 %v1046_v0, %v1043_v63  ;;  %v5962_v10 = vrot.slane %v1467_v49, 9  ;;  %v5929_v12 = vcombine.low %v1029_v61, %v1039_v7  ;;  %v7036_v0 = vld [vmem:[%s7247_s13 + $0x18] sm:$0xff]  }
  0x7e   : > { %v1057_v13 = vor.u32 %v1056_v4, %v1052_v3  ;;  %v1062_v14 = vrot.slane %v1060_v5, 5  ;;  %v1628_v15 = vrot.slane %v1468_v54, 5  ;;  %v1631_v20 = vrot.slane %v1469_v1, 5  ;;  %v6070_v5 = vld [vmem:[%s7247_s13 + $0x30] sm:$0xf] }
  0x7f   : > { %6741 = vmatprep.mubr.msk.bf16.mxu0 %vm383_vm1, %v5978_v8  ;;  %v1048_v17 = vrot.slane %v1047_v9, 4  ;;  %v2466_v22 = vshrl.u32 %v6061_v6, 16  ;;  %v2469_v23 = vshll.u32 %v6061_v6, 16  ;;  %6707 = vmatprep.mubr.msk.bf16.mxu1 %vm383_vm1, %v5929_v12  ;;  %v2475_v28 = vshll.u32 %v6062_v11, 16 }
  0x80   : > { %v1058_v21 = vrot.slane %v1057_v13, 4  ;;  %v1629_v26 = vsel %vm7306_vm6, %v5962_v10, %v1628_v15  ;;  %v1630_v27 = vrot.slane %v1628_v15, 4  ;;  %v2479_v33 = vshrl.u32 %v6062_v11, 16  ;;  %v7037_v11 = vld [vmem:[%s7247_s13 + $0x24] sm:$0xff]  }
  0x81   : > { %v1053_v29 = vsel %vm7320_vm7, %v1048_v17, %v1052_v3  ;;  %v2468_v31 = vrot.slane %v2466_v22, 4  ;;  %v2471_v32 = vrot.slane %v2469_v23, 5  ;;  %v2477_v36 = vrot.slane %v2475_v28, 5 }
  0x82   : > { %v1063_v34 = vsel %vm7320_vm7, %v1058_v21, %v1062_v14  ;;  %v1632_v35 = vsel %vm7306_vm6, %v1630_v27, %v1631_v20  ;;  %v2485_v37 = vshll.u32 %v6063_v16, 16  ;;  %v2481_v41 = vrot.slane %v2479_v33, 4  ;;  %v6071_v14 = vld [vmem:[%s7247_s13 + $0x34] sm:$0xf] }
  0x83   : > { %v5930_v38 = vcombine.low %v1053_v29, %v1063_v34  ;;  %v5979_v39 = vcombine.low %v1629_v26, %v1632_v35  ;;  %v2472_v40 = vor.u32 %v2471_v32, %v2468_v31  ;;  %v2490_v46 = vshrl.u32 %v6064_v25, 16  ;;  %v6074_v35 = vld [vmem:[%s7247_s13 + $0x40] sm:$0xf] }
  0x84   : > { %v2487_v45 = vrot.slane %v2485_v37, 5  ;;  %v2493_v47 = vshll.u32 %v6064_v25, 16  ;;  %v2499_v48 = vshll.u32 %v6065_v19, 16  ;;  %v2482_v50 = vor.u32 %v2481_v41, %v2477_v36  ;;  %v6072_v25 = vld [vmem:[%s7247_s13 + $0x38] sm:$0x1] }
  0x85   : > { %6708 = vmatmul.mubr.msk.bf16.gmra.mxu1 %vm383_vm1, %v5930_v38  ;;  %6742 = vmatmul.mubr.msk.bf16.gmra.mxu0 %vm383_vm1, %v5979_v39  ;;  %v2473_v49 = vrot.slane %v2472_v40, 4  ;;  %v2503_v51 = vshrl.u32 %v6065_v19, 16  ;;  %v2509_v52 = vshll.u32 %v6066_v18, 16  ;;  %v2492_v53 = vrot.slane %v2490_v46, 4  ;;  %v6075_v39 = vld [vmem:[%s7247_s13 + $0x44] sm:$0x1] }
  0x86   : > { %6747 = vmatprep.mubr.msk.bf16.mxu1 %vm383_vm1, %v7035_v30  ;;  %v2495_v54 = vrot.slane %v2493_v47, 5  ;;  %v2501_v57 = vrot.slane %v2499_v48, 5  ;;  %v3940_v58 = vsel %vm432_vm0, %v7528_v56, 0  ;;  %v2483_v61 = vrot.slane %v2482_v50, 4  ;;  %v6073_v30 = vld [vmem:[%s7247_s13 + $0x3c] sm:$0xf] }
  0x87   : > { %v2478_v60 = vsel %vm7320_vm7, %v2473_v49, %v2477_v36  ;;  %v2505_v62 = vrot.slane %v2503_v51, 4  ;;  %v2511_v63 = vrot.slane %v2509_v52, 5  ;;  %v2514_v2 = vshrl.u32 %v6067_v43, 16  ;;  %v6076_v49 = vld [vmem:[%s7247_s13 + $0x48] sm:$0xf]  ;;  %v7039_v52 = vld [vmem:[%s7247_s13 + $0x3c] sm:$0xff]  }
  0x88   : > { %v2496_v1 = vor.u32 %v2495_v54, %v2492_v53  ;;  %v2517_v3 = vshll.u32 %v6067_v43, 16  ;;  %v2523_v4 = vshll.u32 %v6068_v44, 16  ;;  %v2488_v6 = vsel %vm7320_vm7, %v2483_v61, %v2487_v45  ;;  %v7038_v45 = vld [vmem:[%s7247_s13 + $0x30] sm:$0xff]  }
  0x89   : > { %v2506_v7 = vor.u32 %v2505_v62, %v2501_v57  ;;  %v2527_v56 = vshrl.u32 %v6068_v44, 16  ;;  %v2533_v8 = vshll.u32 %v6069_v59, 16  ;;  %v6110_v9 = vcombine.low %v2478_v60, %v2488_v6 }
  0x8a   : > { %v2497_v10 = vrot.slane %v2496_v1, 4  ;;  %v2516_v12 = vrot.slane %v2514_v2, 4  ;;  %v2519_v13 = vrot.slane %v2517_v3, 5  ;;  %v2525_v16 = vrot.slane %v2523_v4, 5 }
  0x8b   : > { %v2507_v15 = vrot.slane %v2506_v7, 4  ;;  %v2529_v17 = vrot.slane %v2527_v56, 4  ;;  %v2535_v20 = vrot.slane %v2533_v8, 5  ;;  %6781 = vmatprep.mubr.msk.bf16.mxu0 %vm383_vm1, %v6110_v9  ;;  %v2538_v21 = vshrl.u32 %v6070_v5, 16  ;;  %v6079_v7 = vld [vmem:[%s7247_s13 + $0x54] sm:$0xf] }
  0x8c   : > { %v2502_v22 = vsel %vm7320_vm7, %v2497_v10, %v2501_v57  ;;  %v2520_v23 = vor.u32 %v2519_v13, %v2516_v12  ;;  %v2541_v26 = vshll.u32 %v6070_v5, 16  ;;  %v2547_v19 = vshll.u32 %v6071_v14, 16  ;;  %v6077_v57 = vld [vmem:[%s7247_s13 + $0x4c] sm:$0xf] }
  0x8d   : > { %6748 = vmatmul.mubr.msk.bf16.vlgmr.msra.gmra.mxu1 %vm383_vm1, %v7036_v0  ;;  %v2512_v27 = vsel %vm7320_vm7, %v2507_v15, %v2511_v63  ;;  %v2530_v28 = vor.u32 %v2529_v17, %v2525_v16  ;;  %v2551_v29 = vshrl.u32 %v6071_v14, 16  ;;  %v2540_v33 = vrot.slane %v2538_v21, 4  ;;  %v6078_v0 = vld [vmem:[%s7247_s13 + $0x50] sm:$0x1]  ;;  %v7040_v13 = vld [vmem:[%s7247_s13 + $0x48] sm:$0xff]  }
  0x8e   : > { %v6111_v31 = vcombine.low %v2502_v22, %v2512_v27  ;;  %6814 = vmatpush3.bf16.msra.mxu1 %v7295_v24  ;;  %6751 = vmatprep.mubr.msk.bf16.mxu1 %vm383_vm1, %v7037_v11  ;;  %v2521_v32 = vrot.slane %v2520_v23, 4  ;;  %v2543_v34 = vrot.slane %v2541_v26, 5  ;;  %v2549_v37 = vrot.slane %v2547_v19, 5  ;;  %v6080_v11 = vld [vmem:[%s7247_s13 + $0x58] sm:$0xf] }
  0x8f   : > { %v2531_v36 = vrot.slane %v2530_v28, 4  ;;  %v2553_v18 = vrot.slane %v2551_v29, 4  ;;  %v2557_v38 = vshll.u32 %v6072_v25, 16  ;;  %v2562_v41 = vshrl.u32 %v6073_v30, 16  ;;  %v7041_v22 = vld [vmem:[%s7247_s13 + $0x54] sm:$0xff]  }
  0x90   : > { %6782 = vmatmul.mubr.msk.bf16.vlgmr.msra.gmra.mxu0 %vm383_vm1, %v6111_v31  ;;  %v2526_v40 = vsel %vm7320_vm7, %v2521_v32, %v2525_v16  ;;  %v2544_v24 = vor.u32 %v2543_v34, %v2540_v33  ;;  %v2565_v43 = vshll.u32 %v6073_v30, 16  ;;  %v2571_v48 = vshll.u32 %v6074_v35, 16  ;;  %v6081_v23 = vld [vmem:[%s7247_s13 + $0x5c] sm:$0x1]  ;;  %v6082_v29 = vld [vmem:[%s7247_s13 + $0x60] sm:$0xf] }
  0x91   : > { %6848 = vmatpush3.bf16.msra.mxu0 %v3940_v58  ;;  %v2536_v44 = vsel %vm7320_vm7, %v2531_v36, %v2535_v20  ;;  %v2554_v46 = vor.u32 %v2553_v18, %v2549_v37  ;;  %v2559_v47 = vrot.slane %v2557_v38, 5  ;;  %v2564_v53 = vrot.slane %v2562_v41, 4  ;;  %v6083_v34 = vld [vmem:[%s7247_s13 + $0x64] sm:$0xf]  ;;  %v6084_v41 = vld [vmem:[%s7247_s13 + $0x68] sm:$0x1] }
  0x92   : > { %v6112_v50 = vcombine.low %v2526_v40, %v2536_v44  ;;  %v2545_v51 = vrot.slane %v2544_v24, 4  ;;  %v2567_v54 = vrot.slane %v2565_v43, 5  ;;  %v2573_v60 = vrot.slane %v2571_v48, 5  ;;  %v6085_v43 = vld [vmem:[%s7247_s13 + $0x6c] sm:$0xf] }
  0x93   : > { %v2555_v59 = vrot.slane %v2554_v46, 4  ;;  %v2575_v61 = vshrl.u32 %v6074_v35, 16  ;;  %v2581_v58 = vshll.u32 %v6075_v39, 16  ;;  %v2586_v1 = vshrl.u32 %v6076_v49, 16  ;;  %v6086_v48 = vld [vmem:[%s7247_s13 + $0x70] sm:$0xf] }
  0x94   : > { %6785 = vmatprep.mubr.msk.bf16.mxu0 %vm383_vm1, %v6112_v50  ;;  %v2550_v62 = vsel %vm7320_vm7, %v2545_v51, %v2549_v37  ;;  %v2568_v63 = vor.u32 %v2567_v54, %v2564_v53  ;;  %v2589_v2 = vshll.u32 %v6076_v49, 16  ;;  %v2595_v6 = vshll.u32 %v6077_v57, 16 }
  0x95   : > { %6752 = vmatmul.mubr.msk.bf16.gmra.mxu1 %vm383_vm1, %v7038_v45  ;;  %v2560_v3 = vsel %vm7320_vm7, %v2555_v59, %v2559_v47  ;;  %v2577_v4 = vrot.slane %v2575_v61, 4  ;;  %v2583_v5 = vrot.slane %v2581_v58, 5  ;;  %v2588_v9 = vrot.slane %v2586_v1, 4 }
  0x96   : > { %v6113_v56 = vcombine.low %v2550_v62, %v2560_v3  ;;  %6755 = vmatprep.mubr.msk.bf16.mxu1 %vm383_vm1, %v7039_v52  ;;  %v2569_v8 = vrot.slane %v2568_v63, 4  ;;  %v2591_v10 = vrot.slane %v2589_v2, 5  ;;  %v2597_v14 = vrot.slane %v2595_v6, 5  ;;  %v7042_v63 = vld [vmem:[%s7247_s13 + $0x60] sm:$0xff]   ;;  %v6087_v3 = vld [vmem:[%s7247_s13 + $0x74] sm:$0x1] }
  0x97   : > { %v2578_v12 = vor.u32 %v2577_v4, %v2573_v60  ;;  %v2599_v15 = vshrl.u32 %v6077_v57, 16  ;;  %v2605_v16 = vshll.u32 %v6078_v0, 16  ;;  %v2610_v25 = vshrl.u32 %v6079_v7, 16  ;;  %v7043_v6 = vld [vmem:[%s7247_s13 + $0x6c] sm:$0xff]  }
  0x98   : > { %6786 = vmatmul.mubr.msk.bf16.gmra.mxu0 %vm383_vm1, %v6113_v56  ;;  %v2574_v17 = vsel %vm7320_vm7, %v2569_v8, %v2573_v60  ;;  %v2592_v20 = vor.u32 %v2591_v10, %v2588_v9  ;;  %v2613_v21 = vshll.u32 %v6079_v7, 16  ;;  %v2619_v19 = vshll.u32 %v6080_v11, 16  ;;  %v6088_v9 = vld [vmem:[%s7247_s13 + $0x78] sm:$0xf] }
  0x99   : > { %v2579_v26 = vrot.slane %v2578_v12, 4  ;;  %v2601_v27 = vrot.slane %v2599_v15, 4  ;;  %v2607_v28 = vrot.slane %v2605_v16, 5  ;;  %v2612_v31 = vrot.slane %v2610_v25, 4 }
  0x9a   : > { %v2593_v30 = vrot.slane %v2592_v20, 4  ;;  %v2615_v32 = vrot.slane %v2613_v21, 5  ;;  %v2623_v33 = vshrl.u32 %v6080_v11, 16  ;;  %v2621_v37 = vrot.slane %v2619_v19, 5 }
  0x9b   : > { %v2584_v35 = vsel %vm7320_vm7, %v2579_v26, %v2583_v5  ;;  %v2602_v36 = vor.u32 %v2601_v27, %v2597_v14  ;;  %v2629_v18 = vshll.u32 %v6081_v23, 16  ;;  %v2634_v46 = vshrl.u32 %v6082_v29, 16 }
  0x9c   : > { %v6114_v38 = vcombine.low %v2574_v17, %v2584_v35  ;;  %v2598_v39 = vsel %vm7320_vm7, %v2593_v30, %v2597_v14  ;;  %v2616_v40 = vor.u32 %v2615_v32, %v2612_v31  ;;  %v2625_v24 = vrot.slane %v2623_v33, 4  ;;  %v6089_v14 = vld [vmem:[%s7247_s13 + $0x7c] sm:$0xf]  ;;  %v6091_v30 = vld [vmem:[%s7247_s13 + $0x84] sm:$0xf] }
  0x9d   : > { %6756 = vmatmul.mubr.msk.bf16.gmra.mxu1 %vm383_vm1, %v7040_v13  ;;  %v2603_v44 = vrot.slane %v2602_v36, 4  ;;  %v2631_v45 = vrot.slane %v2629_v18, 5  ;;  %v2637_v47 = vshll.u32 %v6082_v29, 16  ;;  %v2643_v51 = vshll.u32 %v6083_v34, 16  ;;  %v7677_v31 = vld [vmem:[%s9025_s1 + $0xe] sm:$0x3] }
  0x9e   : > { %6789 = vmatprep.mubr.msk.bf16.mxu0 %vm383_vm1, %v6114_v38  ;;  %6759 = vmatprep.mubr.msk.bf16.mxu1 %vm383_vm1, %v7041_v22  ;;  %v2617_v49 = vrot.slane %v2616_v40, 4  ;;  %v2626_v50 = vor.u32 %v2625_v24, %v2621_v37  ;;  %v2647_v52 = vshrl.u32 %v6083_v34, 16  ;;  %v2636_v54 = vrot.slane %v2634_v46, 4  ;;  %v6090_v22 = vld [vmem:[%s7247_s13 + $0x80] sm:$0x1]  ;;  %v7045_v46 = vld [vmem:[%s7247_s13 + $0x84] sm:$0xff]  }
  0x9f   : > { %v2608_v53 = vsel %vm7320_vm7, %v2603_v44, %v2607_v28  ;;  %v2639_v57 = vrot.slane %v2637_v47, 5  ;;  %v2653_v59 = vshll.u32 %v6084_v41, 16  ;;  %v2645_v62 = vrot.slane %v2643_v51, 5  ;;  %v6092_v36 = vld [vmem:[%s7247_s13 + $0x88] sm:$0xf]  ;;  %6959 = vmatprep.subr.msk.bf16.mxu1 %vm432_vm0, %v7677_v31 }
  0xa0   : > { %v6115_v60 = vcombine.low %v2598_v39, %v2608_v53  ;;  %v2622_v61 = vsel %vm7320_vm7, %v2617_v49, %v2621_v37  ;;  %v2627_v58 = vrot.slane %v2626_v50, 4  ;;  %v2649_v1 = vrot.slane %v2647_v52, 4  ;;  %v7044_v39 = vld [vmem:[%s7247_s13 + $0x78] sm:$0xff]   ;;  %v6093_v24 = vld [vmem:[%s7247_s13 + $0x8c] sm:$0x1] }
  0xa1   : > { %v2640_v0 = vor.u32 %v2639_v57, %v2636_v54  ;;  %v2655_v2 = vrot.slane %v2653_v59, 5  ;;  %v2658_v4 = vshrl.u32 %v6085_v43, 16  ;;  %v2661_v7 = vshll.u32 %v6085_v43, 16  ;;  %v6094_v41 = vld [vmem:[%s7247_s13 + $0x90] sm:$0xf] }
  0xa2   : > { %6790 = vmatmul.mubr.msk.bf16.gmra.mxu0 %vm383_vm1, %v6115_v60  ;;  %v2632_v5 = vsel %vm7320_vm7, %v2627_v58, %v2631_v45  ;;  %v2667_v56 = vshll.u32 %v6086_v48, 16  ;;  %v2671_v8 = vshrl.u32 %v6086_v48, 16  ;;  %v2650_v12 = vor.u32 %v2649_v1, %v2645_v62  ;;  %v7696_v52 = vld [vmem:[%s9025_s1 + $0x10] sm:$0x3]  ;;  %v6095_v60 = vld [vmem:[%s7247_s13 + $0x94] sm:$0xf] }
  0xa3   : > { %v6116_v10 = vcombine.low %v2622_v61, %v2632_v5  ;;  %v2641_v11 = vrot.slane %v2640_v0, 4  ;;  %v2660_v13 = vrot.slane %v2658_v4, 4  ;;  %v2663_v15 = vrot.slane %v2661_v7, 5  ;;  %6960 = vmatprep.subr.msk.bf16.mxu0 %vm432_vm0, %v7696_v52  ;;  %v6096_v0 = vld [vmem:[%s7247_s13 + $0x98] sm:$0x1] }
  0xa4   : > { %v2669_v16 = vrot.slane %v2667_v56, 5  ;;  %v2673_v17 = vrot.slane %v2671_v8, 4  ;;  %v2677_v20 = vshll.u32 %v6087_v3, 16  ;;  %v2651_v25 = vrot.slane %v2650_v12, 4  ;;  %v6097_v1 = vld [vmem:[%s7247_s13 + $0x9c] sm:$0xf] }
  0xa5   : > { %6793 = vmatprep.mubr.msk.bf16.mxu0 %vm383_vm1, %v6116_v10  ;;  %6760 = vmatmul.mubr.msk.bf16.gmra.mxu1 %vm383_vm1, %v7042_v63  ;;  %v2646_v23 = vsel %vm7320_vm7, %v2641_v11, %v2645_v62  ;;  %v2682_v21 = vshrl.u32 %v6088_v9, 16  ;;  %v2685_v26 = vshll.u32 %v6088_v9, 16  ;;  %v2664_v27 = vor.u32 %v2663_v15, %v2660_v13 }
  0xa6   : > { %6763 = vmatprep.mubr.msk.bf16.mxu1 %vm383_vm1, %v7043_v6  ;;  %v2674_v28 = vor.u32 %v2673_v17, %v2669_v16  ;;  %v2679_v19 = vrot.slane %v2677_v20, 5  ;;  %v2691_v29 = vshll.u32 %v6089_v14, 16  ;;  %v2656_v32 = vsel %vm7320_vm7, %v2651_v25, %v2655_v2  ;;  %v7047_v20 = vld [vmem:[%s7247_s13 + $0x9c] sm:$0xff]  }
  0xa7   : > { %v2684_v33 = vrot.slane %v2682_v21, 4  ;;  %v2687_v34 = vrot.slane %v2685_v26, 5  ;;  %v2695_v35 = vshrl.u32 %v6089_v14, 16  ;;  %v6117_v37 = vcombine.low %v2646_v23, %v2656_v32 }
  0xa8   : > { %v2665_v18 = vrot.slane %v2664_v27, 4  ;;  %v2675_v38 = vrot.slane %v2674_v28, 4  ;;  %v2693_v40 = vrot.slane %v2691_v29, 5  ;;  %v2701_v45 = vshll.u32 %v6090_v22, 16  ;;  %v6098_v22 = vld [vmem:[%s7247_s13 + $0xa0] sm:$0xf] }
  0xa9   : > { %v2688_v43 = vor.u32 %v2687_v34, %v2684_v33  ;;  %v2697_v44 = vrot.slane %v2695_v35, 4  ;;  %v2706_v47 = vshrl.u32 %v6091_v30, 16  ;;  %v2709_v50 = vshll.u32 %v6091_v30, 16  ;;  %v6099_v29 = vld [vmem:[%s7247_s13 + $0xa4] sm:$0x1] }
  0xaa   : > { %6794 = vmatmul.mubr.msk.bf16.gmra.mxu0 %vm383_vm1, %v6117_v37  ;;  %v2670_v48 = vsel %vm7320_vm7, %v2665_v18, %v2669_v16  ;;  %v2680_v49 = vsel %vm7320_vm7, %v2675_v38, %v2679_v19  ;;  %v2715_v51 = vshll.u32 %v6092_v36, 16  ;;  %v2703_v59 = vrot.slane %v2701_v45, 5  ;;  %v7046_v16 = vld [vmem:[%s7247_s13 + $0x90] sm:$0xff]  }
  0xab   : > { %v6118_v53 = vcombine.low %v2670_v48, %v2680_v49  ;;  %v2689_v54 = vrot.slane %v2688_v43, 4  ;;  %v2698_v57 = vor.u32 %v2697_v44, %v2693_v40  ;;  %v2708_v61 = vrot.slane %v2706_v47, 4  ;;  %v6102_v48 = vld [vmem:[%s7247_s13 + $0xb0] sm:$0x1] }
  0xac   : > { %v2711_v58 = vrot.slane %v2709_v50, 5  ;;  %v2717_v62 = vrot.slane %v2715_v51, 5  ;;  %v2719_v63 = vshrl.u32 %v6092_v36, 16  ;;  %v2725_v4 = vshll.u32 %v6093_v24, 16  ;;  %v6100_v36 = vld [vmem:[%s7247_s13 + $0xa8] sm:$0xf] }
  0xad   : > { %6797 = vmatprep.mubr.msk.bf16.mxu0 %vm383_vm1, %v6118_v53  ;;  %6764 = vmatmul.mubr.msk.bf16.gmra.mxu1 %vm383_vm1, %v7044_v39  ;;  %v2694_v2 = vsel %vm7320_vm7, %v2689_v54, %v2693_v40  ;;  %v2699_v3 = vrot.slane %v2698_v57, 4  ;;  %v2730_v5 = vshrl.u32 %v6094_v41, 16  ;;  %v2733_v56 = vshll.u32 %v6094_v41, 16  ;;  %v6101_v40 = vld [vmem:[%s7247_s13 + $0xac] sm:$0xf] }
  0xae   : > { %6767 = vmatprep.mubr.msk.bf16.mxu1 %vm383_vm1, %v7045_v46  ;;  %v2712_v6 = vor.u32 %v2711_v58, %v2708_v61  ;;  %v2721_v7 = vrot.slane %v2719_v63, 4  ;;  %v2739_v8 = vshll.u32 %v6095_v60, 16  ;;  %v2727_v10 = vrot.slane %v2725_v4, 5  ;;  %v7048_v53 = vld [vmem:[%s7247_s13 + $0xa8] sm:$0xff]   ;;  %v6104_v63 = vld [vmem:[%s7247_s13 + $0xb8] sm:$0xf] }
  0xaf   : > { %v2704_v9 = vsel %vm7320_vm7, %v2699_v3, %v2703_v59  ;;  %v2732_v11 = vrot.slane %v2730_v5, 4  ;;  %v2743_v12 = vshrl.u32 %v6095_v60, 16  ;;  %v2735_v17 = vrot.slane %v2733_v56, 5  ;;  %v6103_v59 = vld [vmem:[%s7247_s13 + $0xb4] sm:$0xf] }
  0xb0   : > { %v6119_v13 = vcombine.low %v2694_v2, %v2704_v9  ;;  %v2713_v14 = vrot.slane %v2712_v6, 4  ;;  %v2722_v15 = vor.u32 %v2721_v7, %v2717_v62  ;;  %v2741_v23 = vrot.slane %v2739_v8, 5  ;;  %v7049_v6 = vld [vmem:[%s7247_s13 + $0xb4] sm:$0xff]   ;;  %v6105_v7 = vld [vmem:[%s7247_s13 + $0xbc] sm:$0x1] }
  0xb1   : > { %v2745_v25 = vrot.slane %v2743_v12, 4  ;;  %v2749_v21 = vshll.u32 %v6096_v0, 16  ;;  %v2754_v26 = vshrl.u32 %v6097_v1, 16  ;;  %v2736_v19 = vor.u32 %v2735_v17, %v2732_v11 }
  0xb2   : > { %6798 = vmatmul.mubr.msk.bf16.gmra.mxu0 %vm383_vm1, %v6119_v13  ;;  %v2718_v27 = vsel %vm7320_vm7, %v2713_v14, %v2717_v62  ;;  %v2723_v28 = vrot.slane %v2722_v15, 4  ;;  %v2757_v30 = vshll.u32 %v6097_v1, 16  ;;  %v2763_v35 = vshll.u32 %v6098_v22, 16  ;;  %v6106_v13 = vld [vmem:[%s7247_s13 + $0xc0] sm:$0xf] }
  0xb3   : > { %v2746_v32 = vor.u32 %v2745_v25, %v2741_v23  ;;  %v2751_v33 = vrot.slane %v2749_v21, 5  ;;  %v2756_v34 = vrot.slane %v2754_v26, 4  ;;  %v2737_v18 = vrot.slane %v2736_v19, 4  ;;  %v6108_v26 = vld [vmem:[%s7247_s13 + $0xc8] sm:$0x1] }
  0xb4   : > { %v2728_v37 = vsel %vm7320_vm7, %v2723_v28, %v2727_v10  ;;  %v2759_v38 = vrot.slane %v2757_v30, 5  ;;  %v2767_v39 = vshrl.u32 %v6098_v22, 16  ;;  %v2765_v43 = vrot.slane %v2763_v35, 5  ;;  %v6142_v30 = vld [vmem:[%s7247_s13 + $0xc] sm:$0xe] }
  0xb5   : > { %v6120_v24 = vcombine.low %v2718_v27, %v2728_v37  ;;  %6768 = vmatmul.mubr.msk.bf16.gmra.mxu1 %vm383_vm1, %v7046_v16  ;;  %v2747_v41 = vrot.slane %v2746_v32, 4  ;;  %v2773_v44 = vshll.u32 %v6099_v29, 16  ;;  %v2742_v45 = vsel %vm7320_vm7, %v2737_v18, %v2741_v23  ;;  %v6143_v32 = vld [vmem:[%s7247_s13 + $0x10] sm:$0xf]  ;;  %v6144_v37 = vld [vmem:[%s7247_s13 + $0x14] sm:$0x1] }
  0xb6   : > { %6771 = vmatprep.mubr.msk.bf16.mxu1 %vm383_vm1, %v7047_v20  ;;  %v2760_v46 = vor.u32 %v2759_v38, %v2756_v34  ;;  %v2769_v47 = vrot.slane %v2767_v39, 4  ;;  %v2778_v49 = vshrl.u32 %v6100_v36, 16  ;;  %v2781_v54 = vshll.u32 %v6100_v36, 16  ;;  %v6107_v20 = vld [vmem:[%s7247_s13 + $0xc4] sm:$0xf] }
  0xb7   : > { %6801 = vmatprep.mubr.msk.bf16.mxu0 %vm383_vm1, %v6120_v24  ;;  %v2752_v50 = vsel %vm7320_vm7, %v2747_v41, %v2751_v33  ;;  %v2775_v51 = vrot.slane %v2773_v44, 5  ;;  %v2787_v57 = vshll.u32 %v6101_v40, 16  ;;  %v2791_v2 = vshrl.u32 %v6101_v40, 16  ;;  %v6145_v24 = vld [vmem:[%s7247_s13 + $0x18] sm:$0xe] }
  0xb8   : > { %v6121_v60 = vcombine.low %v2742_v45, %v2752_v50  ;;  %v2761_v61 = vrot.slane %v2760_v46, 4  ;;  %v2770_v58 = vor.u32 %v2769_v47, %v2765_v43  ;;  %v2780_v62 = vrot.slane %v2778_v49, 4  ;;  %v6146_v47 = vld [vmem:[%s7247_s13 + $0x1c] sm:$0xf] }
  0xb9   : > { %v2783_v0 = vrot.slane %v2781_v54, 5  ;;  %v2789_v1 = vrot.slane %v2787_v57, 5  ;;  %v2797_v3 = vshll.u32 %v6102_v48, 16  ;;  %v2802_v56 = vshrl.u32 %v6103_v59, 16  ;;  %v6147_v48 = vld [vmem:[%s7247_s13 + $0x20] sm:$0x1] }
  0xba   : > { %6802 = vmatmul.mubr.msk.bf16.gmra.mxu0 %vm383_vm1, %v6121_v60  ;;  %v2766_v4 = vsel %vm7320_vm7, %v2761_v61, %v2765_v43  ;;  %v2771_v5 = vrot.slane %v2770_v58, 4  ;;  %v2805_v8 = vshll.u32 %v6103_v59, 16  ;;  %v2793_v10 = vrot.slane %v2791_v2, 4  ;;  %v7050_v43 = vld [vmem:[%s7247_s13 + $0xc0] sm:$0xff]   ;;  %v6149_v58 = vld [vmem:[%s7247_s13 + $0x28] sm:$0xf] }
  0xbb   : > { %v2784_v9 = vor.u32 %v2783_v0, %v2780_v62  ;;  %v2799_v11 = vrot.slane %v2797_v3, 5  ;;  %v2811_v12 = vshll.u32 %v6104_v63, 16  ;;  %v2804_v15 = vrot.slane %v2802_v56, 4  ;;  %v6148_v54 = vld [vmem:[%s7247_s13 + $0x24] sm:$0xe] }
  0xbc   : > { %v2776_v14 = vsel %vm7320_vm7, %v2771_v5, %v2775_v51  ;;  %v2807_v16 = vrot.slane %v2805_v8, 5  ;;  %v2815_v17 = vshrl.u32 %v6104_v63, 16  ;;  %v2794_v25 = vor.u32 %v2793_v10, %v2789_v1  ;;  %v6150_v2 = vld [vmem:[%s7247_s13 + $0x2c] sm:$0x1]  ;;  %v6151_v3 = vld [vmem:[%s7247_s13 + $0x30] sm:$0xe] }
  0xbd   : > { %v6122_v22 = vcombine.low %v2766_v4, %v2776_v14  ;;  %6772 = vmatmul.mubr.msk.bf16.gmra.mxu1 %vm383_vm1, %v7048_v53  ;;  %v2785_v23 = vrot.slane %v2784_v9, 4  ;;  %v2813_v21 = vrot.slane %v2811_v12, 5  ;;  %v2821_v19 = vshll.u32 %v6105_v7, 16  ;;  %v6153_v12 = vld [vmem:[%s7247_s13 + $0x38] sm:$0x1] }
  0xbe   : > { %6775 = vmatprep.mubr.msk.bf16.mxu1 %vm383_vm1, %v7049_v6  ;;  %v2808_v27 = vor.u32 %v2807_v16, %v2804_v15  ;;  %v2817_v28 = vrot.slane %v2815_v17, 4  ;;  %v2826_v29 = vshrl.u32 %v6106_v13, 16  ;;  %v2795_v34 = vrot.slane %v2794_v25, 4  ;;  %v7051_v16 = vld [vmem:[%s7247_s13 + $0x18] sm:$0xff]  }
  0xbf   : > { %6805 = vmatprep.mubr.msk.bf16.mxu0 %vm383_vm1, %v6122_v22  ;;  %v2790_v33 = vsel %vm7320_vm7, %v2785_v23, %v2789_v1  ;;  %v2829_v35 = vshll.u32 %v6106_v13, 16  ;;  %v2835_v36 = vshll.u32 %v6107_v20, 16  ;;  %v2823_v39 = vrot.slane %v2821_v19, 5  ;;  %v6154_v13 = vld [vmem:[%s7247_s13 + $0x3c] sm:$0xe] }
  0xc0   : > { %v2809_v18 = vrot.slane %v2808_v27, 4  ;;  %v2818_v38 = vor.u32 %v2817_v28, %v2813_v21  ;;  %v2828_v40 = vrot.slane %v2826_v29, 4  ;;  %v2800_v41 = vsel %vm7320_vm7, %v2795_v34, %v2799_v11  ;;  %v6152_v11 = vld [vmem:[%s7247_s13 + $0x34] sm:$0xf]  ;;  %v6155_v22 = vld [vmem:[%s7247_s13 + $0x40] sm:$0xf] }
  0xc1   : > { %v2831_v44 = vrot.slane %v2829_v35, 5  ;;  %v2837_v45 = vrot.slane %v2835_v36, 5  ;;  %v2839_v46 = vshrl.u32 %v6107_v20, 16  ;;  %v6123_v49 = vcombine.low %v2790_v33, %v2800_v41  ;;  %v6156_v23 = vld [vmem:[%s7247_s13 + $0x44] sm:$0x1] }
  0xc2   : > { %v2814_v50 = vsel %vm7320_vm7, %v2809_v18, %v2813_v21  ;;  %v2819_v51 = vrot.slane %v2818_v38, 4  ;;  %v2845_v53 = vshll.u32 %v6108_v26, 16  ;;  %v6190_v60 = vrot.slane %v6142_v30, 9  ;;  %v6158_v28 = vld [vmem:[%s7247_s13 + $0x4c] sm:$0xf] }
  0xc3   : > { %v2832_v57 = vor.u32 %v2831_v44, %v2828_v40  ;;  %v2841_v59 = vrot.slane %v2839_v46, 4  ;;  %v3305_v61 = vrot.slane %v6143_v32, 5  ;;  %6806 = vmatmul.mubr.msk.bf16.gmra.mxu0 %vm383_vm1, %v6123_v49  ;;  %v3308_v0 = vrot.slane %v6144_v37, 5  ;;  %v6159_v32 = vld [vmem:[%s7247_s13 + $0x50] sm:$0x1] }
  0xc4   : > { %v2824_v62 = vsel %vm7320_vm7, %v2819_v51, %v2823_v39  ;;  %v2847_v63 = vrot.slane %v2845_v53, 5  ;;  %v6191_v1 = vrot.slane %v6145_v24, 9  ;;  %v3312_v8 = vrot.slane %v6146_v47, 5  ;;  %v6160_v37 = vld [vmem:[%s7247_s13 + $0x54] sm:$0xe] }
  0xc5   : > { %v6124_v4 = vcombine.low %v2814_v50, %v2824_v62  ;;  %6776 = vmatmul.mubr.msk.bf16.gmra.mxu1 %vm383_vm1, %v7050_v43  ;;  %v2833_v5 = vrot.slane %v2832_v57, 4  ;;  %v2842_v6 = vor.u32 %v2841_v59, %v2837_v45  ;;  %v3306_v7 = vsel %vm7306_vm6, %v6190_v60, %v3305_v61  ;;  %v6161_v18 = vld [vmem:[%s7247_s13 + $0x58] sm:$0xf]  ;;  %v6162_v41 = vld [vmem:[%s7247_s13 + $0x5c] sm:$0x1]  ;;  %v7052_v59 = vld [vmem:[%s7247_s13 + $0x24] sm:$0xff]  }
  0xc6   : > { %v3307_v56 = vrot.slane %v3305_v61, 4  ;;  %v3315_v9 = vrot.slane %v6147_v48, 5  ;;  %v4730_v10 = vsel %vm432_vm0, %v7677_v31, 0  ;;  %v7779_v17 = vsel %vm432_vm0, %v7696_v52, 0  ;;  %v6157_v31 = vld [vmem:[%s7247_s13 + $0x48] sm:$0xe] }
  0xc7   : > { %6809 = vmatprep.mubr.msk.bf16.mxu0 %vm383_vm1, %v6124_v4  ;;  %v2838_v14 = vsel %vm7320_vm7, %v2833_v5, %v2837_v45  ;;  %v2843_v15 = vrot.slane %v2842_v6, 4  ;;  %v6192_v20 = vrot.slane %v6148_v54, 9  ;;  %v3313_v21 = vsel %vm7306_vm6, %v6191_v1, %v3312_v8  ;;  %v6163_v43 = vld [vmem:[%s7247_s13 + $0x60] sm:$0xe]  ;;  %v6164_v53 = vld [vmem:[%s7247_s13 + $0x64] sm:$0xf] }
  0xc8   : > { %v3309_v25 = vsel %vm7306_vm6, %v3307_v56, %v3308_v0  ;;  %v3314_v26 = vrot.slane %v3312_v8, 4  ;;  %v3319_v27 = vrot.slane %v6149_v58, 5  ;;  %v3322_v29 = vrot.slane %v6150_v2, 5  ;;  %v6165_v54 = vld [vmem:[%s7247_s13 + $0x68] sm:$0x1] }
  0xc9   : > { %v2848_v19 = vsel %vm7320_vm7, %v2843_v15, %v2847_v63  ;;  %v6207_v52 = vcombine.low %v3306_v7, %v3309_v25  ;;  %v6193_v30 = vrot.slane %v6151_v3, 9  ;;  %v3326_v39 = vrot.slane %v6152_v11, 5  ;;  %v6166_v57 = vld [vmem:[%s7247_s13 + $0x6c] sm:$0xe]  ;;  %v6167_v63 = vld [vmem:[%s7247_s13 + $0x70] sm:$0xf] }
  0xca   : > { %v6125_v33 = vcombine.low %v2838_v14, %v2848_v19  ;;  %v3316_v34 = vsel %vm7306_vm6, %v3314_v26, %v3315_v9  ;;  %v3320_v35 = vsel %vm7306_vm6, %v6192_v20, %v3319_v27  ;;  %v3321_v36 = vrot.slane %v3319_v27, 4  ;;  %v6168_v0 = vld [vmem:[%s7247_s13 + $0x74] sm:$0x1]  ;;  %v6169_v1 = vld [vmem:[%s7247_s13 + $0x78] sm:$0xe] }
  0xcb   : > { %6815 = vmatprep.mubr.msk.bf16.mxu1 %vm383_vm1, %v6207_v52  ;;  %v6208_v38 = vcombine.low %v3313_v21, %v3316_v34  ;;  %v3329_v40 = vrot.slane %v6153_v12, 5  ;;  %v6194_v24 = vrot.slane %v6154_v13, 9  ;;  %v3333_v45 = vrot.slane %v6155_v22, 5  ;;  %v6170_v6 = vld [vmem:[%s7247_s13 + $0x7c] sm:$0xf]  ;;  %v7053_v12 = vld [vmem:[%s7247_s13 + $0x30] sm:$0xff]  }
  0xcc   : > { %6810 = vmatmul.mubr.msk.bf16.gmra.mxu0 %vm383_vm1, %v6125_v33  ;;  %v3323_v44 = vsel %vm7306_vm6, %v3321_v36, %v3322_v29  ;;  %v3336_v46 = vrot.slane %v6156_v23, 5  ;;  %v6195_v47 = vrot.slane %v6157_v31, 9  ;;  %v7808_v49 = vsel %vm7306_vm6, %v6193_v30, %v3326_v39  ;;  %v6172_v11 = vld [vmem:[%s7247_s13 + $0x84] sm:$0xe]  ;;  %v6173_v20 = vld [vmem:[%s7247_s13 + $0x88] sm:$0xf] }
  0xcd   : > { %6849 = vmatprep.mubr.msk.bf16.mxu0 %vm383_vm1, %v7051_v16  ;;  %6816 = vmatmul.mubr.msk.bf16.vlgmr.msra.gmra.mxu1 %vm383_vm1, %v6208_v38  ;;  %v6209_v48 = vcombine.low %v3320_v35, %v3323_v44  ;;  %v3328_v50 = vrot.slane %v3326_v39, 4  ;;  %v3340_v51 = vrot.slane %v6158_v28, 5  ;;  %v3334_v60 = vsel %vm7306_vm6, %v6194_v24, %v3333_v45  ;;  %v6174_v21 = vld [vmem:[%s7247_s13 + $0x8c] sm:$0x1]  ;;  %v6175_v52 = vld [vmem:[%s7247_s13 + $0x90] sm:$0xe] }
  0xce   : > { %6882 = vmatpush3.bf16.msra.mxu1 %v4730_v10  ;;  %v3335_v61 = vrot.slane %v3333_v45, 4  ;;  %v3343_v58 = vrot.slane %v6159_v32, 5  ;;  %v6196_v62 = vrot.slane %v6160_v37, 9  ;;  %v3347_v5 = vrot.slane %v6161_v18, 5  ;;  %v6171_v10 = vld [vmem:[%s7247_s13 + $0x80] sm:$0x1] }
  0xcf   : > { %6819 = vmatprep.mubr.msk.bf16.mxu1 %vm383_vm1, %v6209_v48  ;;  %v3330_v2 = vsel %vm7306_vm6, %v3328_v50, %v3329_v40  ;;  %v7824_v3 = vsel %vm7306_vm6, %v6195_v47, %v3340_v51  ;;  %v3342_v4 = vrot.slane %v3340_v51, 4  ;;  %v3350_v8 = vrot.slane %v6162_v41, 5  ;;  %v6176_v35 = vld [vmem:[%s7247_s13 + $0x94] sm:$0xf]  ;;  %v7861_v36 = vld [vmem:[%s7247_s13 + $0x98] sm:$0x1] }
  0xd0   : > { %v6210_v7 = vcombine.low %v7808_v49, %v3330_v2  ;;  %v3337_v56 = vsel %vm7306_vm6, %v3335_v61, %v3336_v46  ;;  %v6197_v9 = vrot.slane %v6163_v43, 9  ;;  %v7839_v15 = vsel %vm7306_vm6, %v6196_v62, %v3347_v5  ;;  %v6178_v37 = vld [vmem:[%s7247_s13 + $0x9c] sm:$0xe]  ;;  %v6179_v41 = vld [vmem:[%s7247_s13 + $0xa0] sm:$0xf] }
  0xd1   : > { %v6211_v13 = vcombine.low %v3334_v60, %v3337_v56  ;;  %v7835_v14 = vsel %vm7306_vm6, %v3342_v4, %v3343_v58  ;;  %v3349_v16 = vrot.slane %v3347_v5, 4  ;;  %v3354_v23 = vrot.slane %v6164_v53, 5  ;;  %v6180_v43 = vld [vmem:[%s7247_s13 + $0xa4] sm:$0x1]  ;;  %v6181_v44 = vld [vmem:[%s7247_s13 + $0xa8] sm:$0xe] }
  0xd2   : > { %v6212_v22 = vcombine.low %v7824_v3, %v7835_v14  ;;  %v3357_v31 = vrot.slane %v6165_v54, 5  ;;  %v6198_v25 = vrot.slane %v6166_v57, 9  ;;  %v3361_v27 = vrot.slane %v6167_v63, 5  ;;  %v6182_v49 = vld [vmem:[%s7247_s13 + $0xac] sm:$0xf]  ;;  %v7054_v61 = vld [vmem:[%s7247_s13 + $0x3c] sm:$0xff]  }
  0xd3   : > { %v7847_v26 = vsel %vm7306_vm6, %v3349_v16, %v3350_v8  ;;  %v3364_v28 = vrot.slane %v6168_v0, 5  ;;  %v6199_v19 = vrot.slane %v6169_v1, 9  ;;  %v7855_v30 = vsel %vm7306_vm6, %v6197_v9, %v3354_v23  ;;  %v6184_v60 = vld [vmem:[%s7247_s13 + $0xb4] sm:$0xe]  ;;  %v6185_v2 = vld [vmem:[%s7247_s13 + $0xb8] sm:$0xf] }
  0xd4   : > { %6850 = vmatmul.mubr.msk.bf16.vlgmr.msra.gmra.mxu0 %vm383_vm1, %v7052_v59  ;;  %v6213_v29 = vcombine.low %v7839_v15, %v7847_v26  ;;  %v3356_v32 = vrot.slane %v3354_v23, 4  ;;  %v3368_v34 = vrot.slane %v6170_v6, 5  ;;  %v7868_v18 = vsel %vm7306_vm6, %v6198_v25, %v3361_v27  ;;  %v6183_v59 = vld [vmem:[%s7247_s13 + $0xb0] sm:$0x1]  ;;  %v7055_v4 = vld [vmem:[%s7247_s13 + $0x48] sm:$0xff]   ;;  %v7056_v26 = vld [vmem:[%s7247_s13 + $0x54] sm:$0xff]  }
  0xd5   : > { %6916 = vmatpush3.bf16.msra.mxu0 %v7779_v17  ;;  %6853 = vmatprep.mubr.msk.bf16.mxu0 %vm383_vm1, %v7053_v12  ;;  %v3363_v38 = vrot.slane %v3361_v27, 4  ;;  %v3371_v40 = vrot.slane %v6171_v10, 5  ;;  %v6200_v24 = vrot.slane %v6172_v11, 9  ;;  %v3375_v48 = vrot.slane %v6173_v20, 5  ;;  %v6186_v9 = vld [vmem:[%s7247_s13 + $0xbc] sm:$0x1] }
  0xd6   : > { %6820 = vmatmul.mubr.msk.bf16.gmra.mxu1 %vm383_vm1, %v6210_v7  ;;  %v7878_v17 = vsel %vm7306_vm6, %v3356_v32, %v3357_v31  ;;  %v7882_v45 = vsel %vm7306_vm6, %v6199_v19, %v3368_v34  ;;  %v3370_v46 = vrot.slane %v3368_v34, 4  ;;  %v3378_v54 = vrot.slane %v6174_v21, 5  ;;  %v6187_v20 = vld [vmem:[%s7247_s13 + $0xc0] sm:$0xe]  ;;  %v6385_v15 = vld [vmem:[%s7247_s13 + $0x18] sm:$0xe] }
  0xd7   : > { %6823 = vmatprep.mubr.msk.bf16.mxu1 %vm383_vm1, %v6211_v13  ;;  %v6214_v50 = vcombine.low %v7855_v30, %v7878_v17  ;;  %v7892_v51 = vsel %vm7306_vm6, %v3363_v38, %v3364_v28  ;;  %v6201_v57 = vrot.slane %v6175_v52, 9  ;;  %v7909_v0 = vsel %vm7306_vm6, %v6200_v24, %v3375_v48  ;;  %v6188_v28 = vld [vmem:[%s7247_s13 + $0xc4] sm:$0xf]  ;;  %v6309_v14 = vld [vmem:[%s7247_s13 + $0x2c] sm:$0x1] }
  0xd8   : > { %v6215_v58 = vcombine.low %v7868_v18, %v7892_v51  ;;  %v7903_v62 = vsel %vm7306_vm6, %v3370_v46, %v3371_v40  ;;  %v3377_v1 = vrot.slane %v3375_v48, 4  ;;  %v3382_v7 = vrot.slane %v6176_v35, 5  ;;  %v6310_v51 = vld [vmem:[%s7247_s13 + $0x30] sm:$0xf] }
  0xd9   : > { %v3385_v56 = vrot.slane %v7861_v36, 5  ;;  %v6202_v8 = vrot.slane %v6178_v37, 9  ;;  %v3389_v12 = vrot.slane %v6179_v41, 5  ;;  %v3392_v13 = vrot.slane %v6180_v43, 5  ;;  %v6189_v41 = vld [vmem:[%s7247_s13 + $0xc8] sm:$0x1] }
  0xda   : > { %v7923_v11 = vsel %vm7306_vm6, %v3377_v1, %v3378_v54  ;;  %v6203_v16 = vrot.slane %v6181_v44, 9  ;;  %v7932_v25 = vsel %vm7306_vm6, %v6201_v57, %v3382_v7  ;;  %v3384_v21 = vrot.slane %v3382_v7, 4  ;;  %v6304_v43 = vld [vmem:[%s7247_s13 + $0x18] sm:$0xf]  ;;  %v6305_v57 = vld [vmem:[%s7247_s13 + $0x1c] sm:$0xf] }
  0xdb   : > { %v3396_v27 = vrot.slane %v6182_v49, 5  ;;  %v7940_v52 = vsel %vm7306_vm6, %v6202_v8, %v3389_v12  ;;  %v3391_v32 = vrot.slane %v3389_v12, 4  ;;  %v3399_v34 = vrot.slane %v6183_v59, 5  ;;  %v7057_v8 = vld [vmem:[%s7247_s13 + $0x60] sm:$0xff]  }
  0xdc   : > { %6854 = vmatmul.mubr.msk.bf16.gmra.mxu0 %vm383_vm1, %v7054_v61  ;;  %v6204_v35 = vrot.slane %v6184_v60, 9  ;;  %v7947_v37 = vsel %vm7306_vm6, %v3384_v21, %v3385_v56  ;;  %v3403_v24 = vrot.slane %v6185_v2, 5  ;;  %v3406_v49 = vrot.slane %v6186_v9, 5  ;;  %v6306_v61 = vld [vmem:[%s7247_s13 + $0x20] sm:$0x1] }
  0xdd   : > { %v7857_v33 = vpop.f32.mrf.mxu0  ;;  %6857 = vmatprep.mubr.msk.bf16.mxu0 %vm383_vm1, %v7055_v4  ;;  %v7951_v38 = vsel %vm7306_vm6, %v6203_v16, %v3396_v27  ;;  %v3398_v40 = vrot.slane %v3396_v27, 4  ;;  %v7965_v48 = vsel %vm7306_vm6, %v3391_v32, %v3392_v13  ;;  %v6205_v54 = vrot.slane %v6187_v20, 9  ;;  %v6386_v56 = vld [vmem:[%s7247_s13 + $0x1c] sm:$0xf]  ;;  %v6387_v21 = vld [vmem:[%s7247_s13 + $0x20] sm:$0x1] }
  0xde   : > { %v7870_v39 = vpop.f32.mrf.mxu1  ;;  %6824 = vmatmul.mubr.msk.bf16.gmra.mxu1 %vm383_vm1, %v6212_v22  ;;  %v7982_v59 = vsel %vm7306_vm6, %v6204_v35, %v3403_v24  ;;  %v3405_v60 = vrot.slane %v3403_v24, 4  ;;  %v3410_v2 = vrot.slane %v6188_v28, 5  ;;  %v3413_v4 = vrot.slane %v6189_v41, 5 }
  0xdf   : > { %v7884_v47 = vpop.f32.mrf.mxu0  ;;  %6827 = vmatprep.mubr.msk.bf16.mxu1 %vm383_vm1, %v6213_v29  ;;  %v7978_v22 = vsel %vm7306_vm6, %v3398_v40, %v3399_v34  ;;  %v4248_v7 = vshrl.u32 %v6304_v43, 16  ;;  %v4251_v13 = vshll.u32 %v6304_v43, 16  ;;  %v4257_v16 = vshll.u32 %v6305_v57, 16 }
  0xe0   : > { %v7894_v53 = vpop.f32.mrf.mxu1  ;;  %v7997_v12 = vsel %vm7306_vm6, %v3405_v60, %v3406_v49  ;;  %v4261_v20 = vshrl.u32 %v6305_v57, 16  ;;  %v8006_v32 = vsel %vm7306_vm6, %v6205_v54, %v3410_v2  ;;  %v3412_v34 = vrot.slane %v3410_v2, 4  ;;  %v6307_v57 = vld [vmem:[%s7247_s13 + $0x24] sm:$0xf] }
  0xe1   : > { %v7905_v63 = vpop.f32.mrf.mxu0  ;;  %v4250_v35 = vrot.slane %v4248_v7, 4  ;;  %v4253_v24 = vrot.slane %v4251_v13, 5  ;;  %v4259_v41 = vrot.slane %v4257_v16, 5  ;;  %v4267_v49 = vshll.u32 %v6306_v61, 16  ;;  %v6308_v7 = vld [vmem:[%s7247_s13 + $0x28] sm:$0xf] }
  0xe2   : > { %v7915_v6 = vpop.f32.mrf.mxu1  ;;  %v4263_v43 = vrot.slane %v4261_v20, 4  ;;  %v8016_v28 = vsel %vm7306_vm6, %v3412_v34, %v3413_v4  ;;  %v6433_v54 = vrot.slane %v6385_v15, 9  ;;  %v5087_v29 = vrot.slane %v6386_v56, 5  ;;  %v6388_v34 = vld [vmem:[%s7247_s13 + $0x24] sm:$0xe] }
  0xe3   : > { %v7919_v10 = vpop.f32.mrf.mxu0  ;;  %v5090_v2 = vrot.slane %v6387_v21, 5  ;;  %v4269_v20 = vrot.slane %v4267_v49, 5  ;;  %v4275_v21 = vshll.u32 %v6307_v57, 16  ;;  %v6390_v49 = vld [vmem:[%s7247_s13 + $0x2c] sm:$0x1]  ;;  %v4291_v18 = vshll.u32 %v6309_v14, 16 }
  0xe4   : > { %v7926_v23 = vpop.f32.mrf.mxu1  ;;  %6858 = vmatmul.mubr.msk.bf16.gmra.mxu0 %vm383_vm1, %v7056_v26  ;;  %v4254_v26 = vor.u32 %v4253_v24, %v4250_v35  ;;  %v4264_v16 = vor.u32 %v4263_v43, %v4259_v41  ;;  %v8033_v4 = vsel %vm7306_vm6, %v6433_v54, %v5087_v29  ;;  %v5089_v56 = vrot.slane %v5087_v29, 4  ;;  %v6389_v35 = vld [vmem:[%s7247_s13 + $0x28] sm:$0xf]  ;;  %v7058_v29 = vld [vmem:[%s7247_s13 + $0x6c] sm:$0xff]  }
  0xe5   : > { %9035 = vst [vmem:[#allocation6_spill] sm:$0xff] %v7926_v23  ;;  %v7936_v19 = vpop.f32.mrf.mxu0  ;;  %6861 = vmatprep.mubr.msk.bf16.mxu0 %vm383_vm1, %v7057_v8  ;;  %v4272_v8 = vshrl.u32 %v6307_v57, 16  ;;  %v4281_v24 = vshll.u32 %v6308_v7, 16  ;;  %v4285_v43 = vshrl.u32 %v6308_v7, 16  ;;  %v4277_v44 = vrot.slane %v4275_v21, 5 }
  0xe6   : > { %v7943_v36 = vpop.f32.mrf.mxu1  ;;  %6828 = vmatmul.mubr.msk.bf16.gmra.mxu1 %vm383_vm1, %v6214_v50  ;;  %v4255_v17 = vrot.slane %v4254_v26, 4  ;;  %v4265_v50 = vrot.slane %v4264_v16, 4  ;;  %v8049_v57 = vsel %vm7306_vm6, %v5089_v56, %v5090_v2  ;;  %v6311_v2 = vld [vmem:[%s7247_s13 + $0x34] sm:$0xf] }
  0xe7   : > { %9036 = vst [vmem:[#allocation7_spill] sm:$0xff] %v7943_v36  ;;  %v7961_v46 = vpop.f32.mrf.mxu0  ;;  %6831 = vmatprep.mubr.msk.bf16.mxu1 %vm383_vm1, %v6215_v58  ;;  %v4274_v61 = vrot.slane %v4272_v8, 4  ;;  %v7059_v58 = vld [vmem:[%s7247_s13 + $0x78] sm:$0xff]   ;;  %v4283_v5 = vrot.slane %v4281_v24, 5  ;;  %v4287_v21 = vrot.slane %v4285_v43, 4 }
  0xe8   : > { %v7972_v3 = vpop.f32.mrf.mxu1  ;;  %v4260_v26 = vsel %vm7320_vm7, %v4255_v17, %v4259_v41  ;;  %v4270_v7 = vsel %vm7320_vm7, %v4265_v50, %v4269_v20  ;;  %v5094_v41 = vrot.slane %v6389_v35, 5  ;;  %v5097_v17 = vrot.slane %v6390_v49, 5  ;;  %v6312_v20 = vld [vmem:[%s7247_s13 + $0x38] sm:$0x1] }
  0xe9   : > { %9037 = vst [vmem:[#allocation8_spill] sm:$0xff] %v7972_v3  ;;  %v7987_v1 = vpop.f32.mrf.mxu0  ;;  %v8064_v8 = vcombine.low %v4260_v26, %v4270_v7  ;;  %v4278_v14 = vor.u32 %v4277_v44, %v4274_v61  ;;  %v4296_v50 = vshrl.u32 %v6310_v51, 16  ;;  %v4299_v26 = vshll.u32 %v6310_v51, 16  ;;  %v6391_v44 = vld [vmem:[%s7247_s13 + $0x30] sm:$0xe] }
  0xea   : > { %v7993_v9 = vpop.f32.mrf.mxu1  ;;  %v4305_v7 = vshll.u32 %v6311_v2, 16  ;;  %v5096_v35 = vrot.slane %v5094_v41, 4  ;;  %v4309_v49 = vshrl.u32 %v6311_v2, 16  ;;  %v9046_v2 = vcombine.low %v7909_v0, %v7923_v11 }
  0xeb   : > { %9038 = vst [vmem:[#allocation9_spill] sm:$0xff] %v7993_v9  ;;  %v8000_v27 = vpop.f32.mrf.mxu0  ;;  %v4279_v16 = vrot.slane %v4278_v14, 4  ;;  %v4298_v43 = vrot.slane %v4296_v50, 4 }
  0xec   : > { %v8008_v40 = vpop.f32.mrf.mxu1  ;;  %6862 = vmatmul.mubr.msk.bf16.gmra.mxu0 %vm383_vm1, %v7058_v29  ;;  %v6392_v29 = vld [vmem:[%s7247_s13 + $0x34] sm:$0xf] }
  0xed   : > { %9039 = vst [vmem:[#allocation10_spill] sm:$0xff] %v8008_v40  ;;  %v8012_v60 = vpop.f32.mrf.mxu0  ;;  %v4288_v40 = vor.u32 %v4287_v21, %v4283_v5  ;;  %6865 = vmatprep.mubr.msk.bf16.mxu0 %vm383_vm1, %v7059_v58  ;;  %v4284_v58 = vsel %vm7320_vm7, %v4279_v16, %v4283_v5  ;;  %v4301_v21 = vrot.slane %v4299_v26, 5  ;;  %v6435_v5 = vrot.slane %v6391_v44, 9  ;;  %v7060_v16 = vld [vmem:[%s7247_s13 + $0x84] sm:$0xff]  }
  0xee   : > { %v8020_v13 = vpop.f32.mrf.mxu1 }
  0xef   : > { %9040 = vst [vmem:[#allocation11_spill] sm:$0xff] %v8020_v13  ;;  %v8029_v15 = vpop.f32.mrf.mxu0  ;;  %v6434_v13 = vrot.slane %v6388_v34, 9  ;;  %v4289_v14 = vrot.slane %v4288_v40, 4  ;;  %v6313_v40 = vld [vmem:[%s7247_s13 + $0x3c] sm:$0xf]  ;;  %v4302_v11 = vor.u32 %v4301_v21, %v4298_v43 }
  0xf0   : > { %v8041_v30 = vpop.f32.mrf.mxu1 }
  0xf1   : > { %9041 = vst [vmem:[#allocation12_spill] sm:$0xff] %v8041_v30  ;;  %v8045_v54 = vpop.f32.mrf.mxu0  ;;  %v4293_v30 = vrot.slane %v4291_v18, 5  ;;  %v8078_v34 = vsel %vm7306_vm6, %v6434_v13, %v5094_v41  ;;  %v9045_v18 = vcombine.low %v7882_v45, %v7903_v62  ;;  %v4307_v13 = vrot.slane %v4305_v7, 5  ;;  %v6393_v41 = vld [vmem:[%s7247_s13 + $0x38] sm:$0x1] }
  0xf2   : > { %v8053_v31 = vpop.f32.mrf.mxu1  ;;  %v8098_v45 = vsel %vm7306_vm6, %v5096_v35, %v5097_v17  ;;  %v4311_v62 = vrot.slane %v4309_v49, 4  ;;  %v5104_v49 = vrot.slane %v6393_v41, 5  ;;  %v4303_v3 = vrot.slane %v4302_v11, 4  ;;  %v6394_v41 = vld [vmem:[%s7247_s13 + $0x3c] sm:$0xe] }
  0xf3   : > { %9042 = vst [vmem:[#allocation13_spill] sm:$0xff] %v8053_v31  ;;  %v8062_v56 = vpop.f32.mrf.mxu0  ;;  %6832 = vmatmul.mubr.msk.bf16.gmra.mxu1 %vm383_vm1, %v9045_v18  ;;  %v4315_v18 = vshll.u32 %v6312_v20, 16  ;;  %v4294_v7 = vsel %vm7320_vm7, %v4289_v14, %v4293_v30 }
  0xf4   : > { %v8066_v31 = vpop.f32.mrf.mxu1  ;;  %6835 = vmatprep.mubr.msk.bf16.mxu1 %vm383_vm1, %v9046_v2  ;;  %v5101_v2 = vrot.slane %v6392_v29, 5  ;;  %v8112_v20 = vcombine.low %v4284_v58, %v4294_v7  ;;  %v4312_v44 = vor.u32 %v4311_v62, %v4307_v13  ;;  %v4320_v29 = vshrl.u32 %v6313_v40, 16  ;;  %6866 = vmatmul.mubr.msk.bf16.gmra.mxu0 %vm383_vm1, %v7060_v16 }
  0xf5   : > { %9043 = vst [vmem:[#allocation14_spill] sm:$0xff] %v8066_v31  ;;  %v8070_v24 = vpop.f32.mrf.mxu0  ;;  %v4317_v35 = vrot.slane %v4315_v18, 5  ;;  %v6315_v31 = vld [vmem:[%s7247_s13 + $0x44] sm:$0x1]  ;;  %v4323_v58 = vshll.u32 %v6313_v40, 16  ;;  %v4308_v11 = vsel %vm7320_vm7, %v4303_v3, %v4307_v13  ;;  %v6436_v16 = vrot.slane %v6394_v41, 9 }
  0xf6   : > { %v8074_v61 = vpop.f32.mrf.mxu1  ;;  %v8119_v30 = vsel %vm7306_vm6, %v6435_v5, %v5101_v2  ;;  %v5103_v43 = vrot.slane %v5101_v2, 4  ;;  %v4313_v21 = vrot.slane %v4312_v44, 4  ;;  %v4322_v2 = vrot.slane %v4320_v29, 4  ;;  %v6316_v13 = vld [vmem:[%s7247_s13 + $0x48] sm:$0xf] }
  0xf7   : > { %9044 = vst [vmem:[#allocation15_spill] sm:$0xff] %v8074_v61  ;;  %v8085_v51 = vpop.f32.mrf.mxu0  ;;  %v7061_v61 = vld [vmem:[%s7247_s13 + $0x90] sm:$0xff]   ;;  %v4339_v0 = vshll.u32 %v6315_v31, 16  ;;  %v4325_v44 = vrot.slane %v4323_v58, 5 }
  0xf8   : > { %v8094_v50 = vpop.f32.mrf.mxu1  ;;  %v8129_v5 = vsel %vm7306_vm6, %v5103_v43, %v5104_v49  ;;  %6869 = vmatprep.mubr.msk.bf16.mxu0 %vm383_vm1, %v7061_v61  ;;  %v9050_v49 = vcombine.low %v7932_v25, %v7947_v37 }
  0xf9   : > { %9047 = vst [vmem:[#allocation16_spill] sm:$0xff] %v8094_v50  ;;  %v8102_v26 = vpop.f32.mrf.mxu0  ;;  %v6314_v50 = vld [vmem:[%s7247_s13 + $0x40] sm:$0xf]  ;;  %v4341_v29 = vrot.slane %v4339_v0, 5  ;;  %v4344_v0 = vshrl.u32 %v6316_v13, 16 }
  0xfa   : > { %v8110_v17 = vpop.f32.mrf.mxu1  ;;  %v4329_v7 = vshll.u32 %v6314_v50, 16  ;;  %v4333_v62 = vshrl.u32 %v6314_v50, 16  ;;  %v4318_v50 = vsel %vm7320_vm7, %v4313_v21, %v4317_v35  ;;  %v9051_v21 = vcombine.low %v7940_v52, %v7965_v48 }
  0xfb   : > { %9048 = vst [vmem:[#allocation17_spill] sm:$0xff] %v8110_v17  ;;  %v8115_v9 = vpop.f32.mrf.mxu0  ;;  %v6395_v17 = vld [vmem:[%s7247_s13 + $0x40] sm:$0xf]  ;;  %6836 = vmatmul.mubr.msk.bf16.gmra.mxu1 %vm383_vm1, %v9050_v49  ;;  %v8144_v43 = vcombine.low %v4308_v11, %v4318_v50  ;;  %v6317_v50 = vld [vmem:[%s7247_s13 + $0x4c] sm:$0xf] }
  0xfc   : > { %v8121_v14 = vpop.f32.mrf.mxu1  ;;  %v4331_v3 = vrot.slane %v4329_v7, 5  ;;  %v4335_v35 = vrot.slane %v4333_v62, 4  ;;  %6839 = vmatprep.mubr.msk.bf16.mxu1 %vm383_vm1, %v9051_v21  ;;  %v4326_v7 = vor.u32 %v4325_v44, %v4322_v2  ;;  %v5108_v25 = vrot.slane %v6395_v17, 5  ;;  %v7062_v49 = vld [vmem:[%s7247_s13 + $0x9c] sm:$0xff]   ;;  %v7063_v62 = vld [vmem:[%s7247_s13 + $0xa8] sm:$0xff]  }
  0xfd   : > { %9049 = vst [vmem:[#allocation18_spill] sm:$0xff] %v8121_v14  ;;  %v6715_v18 = vpop.f32.mrf.mxu0  ;;  %v6396_v14 = vld [vmem:[%s7247_s13 + $0x44] sm:$0x1]  ;;  %v4346_v44 = vrot.slane %v4344_v0, 4  ;;  %6870 = vmatmul.mubr.msk.bf16.gmra.mxu0 %vm383_vm1, %v7062_v49 }
  0xfe   : > { %v6681_v40 = vpop.f32.mrf.mxu1  ;;  %v5111_v37 = vrot.slane %v6396_v14, 5  ;;  %v4327_v52 = vrot.slane %v4326_v7, 4  ;;  %v8158_v48 = vsel %vm7306_vm6, %v6436_v16, %v5108_v25  ;;  %v5110_v17 = vrot.slane %v5108_v25, 4  ;;  %v6318_v16 = vld [vmem:[%s7247_s13 + $0x50] sm:$0x1]  ;;  %6873 = vmatprep.mubr.msk.bf16.mxu0 %vm383_vm1, %v7063_v62 }
  0xff   : > { %v1360_v31 = vadd.f32 %v6681_v40, %v7857_v33  ;;  %v1768_v61 = vpop.f32.mrf.mxu0  ;;  %v4336_v40 = vor.u32 %v4335_v35, %v4331_v3  ;;  %v4347_v14 = vshll.u32 %v6316_v13, 16  ;;  %v4353_v13 = vshll.u32 %v6317_v50, 16  ;;  %v6398_v25 = vld [vmem:[%s7247_s13 + $0x4c] sm:$0xf] }
 0x100   : > { %v1199_v58 = vpop.f32.mrf.mxu1  ;;  %v4332_v35 = vsel %vm7320_vm7, %v4327_v52, %v4331_v3  ;;  %v8167_v21 = vsel %vm7306_vm6, %v5110_v17, %v5111_v37  ;;  %v6399_v37 = vld [vmem:[%s7247_s13 + $0x50] sm:$0x1]  ;;  %v6319_v17 = vld [vmem:[%s7247_s13 + $0x54] sm:$0xf]  ;;  %v4363_v62 = vshll.u32 %v6318_v16, 16 }
 0x101   : > { %v8151_v36 = vadd.f32 %v6715_v18, %v1360_v31  ;;  %v1358_v33 = vadd.f32 %v1199_v58, %v7884_v47  ;;  %v6716_v11 = vpop.f32.mrf.mxu0  ;;  %v4337_v2 = vrot.slane %v4336_v40, 4  ;;  %v4349_v58 = vrot.slane %v4347_v14, 5 }
 0x102   : > { %v6682_v23 = vpop.f32.mrf.mxu1  ;;  %v6453_v3 = vcombine.low %v8158_v48, %v8167_v21  ;;  %v4355_v49 = vrot.slane %v4353_v13, 5  ;;  %v4365_v16 = vrot.slane %v4363_v62, 5  ;;  %v6320_v13 = vld [vmem:[%s7247_s13 + $0x58] sm:$0xf] }
 0x103   : > { %v8160_v41 = vadd.f32 %v1768_v61, %v1358_v33  ;;  %v1361_v18 = vadd.f32 %v6682_v23, %v7905_v63  ;;  %v1771_v47 = vpop.f32.mrf.mxu0  ;;  %v6397_v61 = vld [vmem:[%s7247_s13 + $0x48] sm:$0xe]  ;;  %v4342_v7 = vsel %vm7320_vm7, %v4337_v2, %v4341_v29  ;;  %v4350_v52 = vor.u32 %v4349_v58, %v4346_v44  ;;  %v7064_v58 = vld [vmem:[%s7247_s13 + $0xb4] sm:$0xff]  }
 0x104   : > { %v1202_v31 = vpop.f32.mrf.mxu1  ;;  %v8182_v0 = vcombine.low %v4332_v35, %v4342_v7  ;;  %v9053_v2 = vcombine.low %v7982_v59, %v7997_v12 }
 0x105   : > { %v8172_v63 = vadd.f32 %v6716_v11, %v1361_v18  ;;  %v1359_v23 = vadd.f32 %v1202_v31, %v7919_v10  ;;  %v6719_v40 = vpop.f32.mrf.mxu0  ;;  %v4357_v11 = vshrl.u32 %v6317_v50, 16  ;;  %v9052_v10 = vcombine.low %v7951_v38, %v7978_v22  ;;  %6874 = vmatmul.mubr.msk.bf16.gmra.mxu0 %vm383_vm1, %v7064_v58 }
 0x106   : > { %v6685_v33 = vpop.f32.mrf.mxu1  ;;  %v6437_v18 = vrot.slane %v6397_v61, 9  ;;  %v4351_v31 = vrot.slane %v4350_v52, 4  ;;  %v5115_v38 = vrot.slane %v6398_v25, 5  ;;  %v5118_v22 = vrot.slane %v6399_v37, 5  ;;  %v6321_v52 = vld [vmem:[%s7247_s13 + $0x5c] sm:$0x1] }
 0x107   : > { %6840 = vmatmul.mubr.msk.bf16.gmra.mxu1 %vm383_vm1, %v9052_v10  ;;  %v8189_v29 = vadd.f32 %v1771_v47, %v1359_v23  ;;  %v1364_v14 = vadd.f32 %v6685_v33, %v7936_v19  ;;  %v1784_v44 = vpop.f32.mrf.mxu0  ;;  %v4359_v35 = vrot.slane %v4357_v11, 4  ;;  %v4368_v61 = vshrl.u32 %v6319_v17, 16  ;;  %v7065_v23 = vld [vmem:[%s7247_s13 + $0xc0] sm:$0xff]  }
 0x108   : > { %6843 = vmatprep.mubr.msk.bf16.mxu1 %vm383_vm1, %v9053_v2  ;;  %v1215_v50 = vpop.f32.mrf.mxu1  ;;  %v4356_v7 = vsel %vm7320_vm7, %v4351_v31, %v4355_v49  ;;  %v8206_v25 = vsel %vm7306_vm6, %v6437_v18, %v5115_v38  ;;  %v5117_v37 = vrot.slane %v5115_v38, 4  ;;  %v4371_v10 = vshll.u32 %v6319_v17, 16  ;;  %v6401_v31 = vld [vmem:[%s7247_s13 + $0x58] sm:$0xf]  ;;  %v6402_v38 = vld [vmem:[%s7247_s13 + $0x5c] sm:$0x1]  ;;  %6877 = vmatprep.mubr.msk.bf16.mxu0 %vm383_vm1, %v7065_v23 }
 0x109   : > { %v8197_v47 = vadd.f32 %v6719_v40, %v1364_v14  ;;  %v1362_v19 = vadd.f32 %v1215_v50, %v7961_v46  ;;  %v6720_v12 = vpop.f32.mrf.mxu0  ;;  %v4360_v33 = vor.u32 %v4359_v35, %v4355_v49  ;;  %v4370_v11 = vrot.slane %v4368_v61, 4  ;;  %v6400_v14 = vld [vmem:[%s7247_s13 + $0x54] sm:$0xe] }
 0x10a   : > { %v6686_v59 = vpop.f32.mrf.mxu1  ;;  %v8215_v49 = vsel %vm7306_vm6, %v5117_v37, %v5118_v22  ;;  %v4377_v50 = vshll.u32 %v6320_v13, 16  ;;  %v4381_v18 = vshrl.u32 %v6320_v13, 16  ;;  %v4373_v35 = vrot.slane %v4371_v10, 5 }
 0x10b   : > { %v8208_v40 = vadd.f32 %v1784_v44, %v1362_v19  ;;  %v1365_v46 = vadd.f32 %v6686_v59, %v7987_v1  ;;  %v4361_v2 = vrot.slane %v4360_v33, 4  ;;  %v6454_v17 = vcombine.low %v8206_v25, %v8215_v49  ;;  %v6322_v19 = vld [vmem:[%s7247_s13 + $0x60] sm:$0xf]  ;;  %v1787_v22 = vpop.f32.mrf.mxu0 }
 0x10c   : > { %v1218_v62 = vpop.f32.mrf.mxu1  ;;  %v4379_v61 = vrot.slane %v4377_v50, 5  ;;  %v4383_v59 = vrot.slane %v4381_v18, 4  ;;  %v4387_v58 = vshll.u32 %v6321_v52, 16  ;;  %v6438_v23 = vrot.slane %v6400_v14, 9 }
 0x10d   : > { %v8219_v44 = vadd.f32 %v6720_v12, %v1365_v46  ;;  %v1363_v1 = vadd.f32 %v1218_v62, %v8000_v27  ;;  %v4366_v13 = vsel %vm7320_vm7, %v4361_v2, %v4365_v16  ;;  %v6323_v12 = vld [vmem:[%s7247_s13 + $0x64] sm:$0xf]  ;;  %v9054_v27 = vcombine.low %v8006_v32, %v8016_v28  ;;  %v7066_v2 = vld [vmem:[%s7247_s13 + $0xcc] sm:$0xff]  }
 0x10e   : > { %v8236_v37 = vcombine.low %v4356_v7, %v4366_v13  ;;  %v4374_v46 = vor.u32 %v4373_v35, %v4370_v11  ;;  %v4384_v10 = vor.u32 %v4383_v59, %v4379_v61  ;;  %v4389_v16 = vrot.slane %v4387_v58, 5  ;;  %v6403_v59 = vld [vmem:[%s7247_s13 + $0x60] sm:$0xe]  ;;  %6878 = vmatmul.mubr.msk.bf16.gmra.mxu0 %vm383_vm1, %v7066_v2 }
 0x10f   : > { %6844 = vmatmul.mubr.msk.bf16.gmra.mxu1 %vm383_vm1, %v9054_v27  ;;  %v8234_v33 = vadd.f32 %v1787_v22, %v1363_v1  ;;  %v5122_v62 = vrot.slane %v6401_v31, 5  ;;  %v5125_v52 = vrot.slane %v6402_v38, 5  ;;  %v4392_v28 = vshrl.u32 %v6322_v19, 16  ;;  %v6689_v1 = vpop.f32.mrf.mxu1  ;;  %v6723_v22 = vpop.f32.mrf.mxu0  ;;  %v6324_v38 = vld [vmem:[%s7247_s13 + $0x68] sm:$0x1] }
 0x110   : > { %6883 = vmatprep.mubr.msk.bf16.mxu1 %vm383_vm1, %v8064_v8  ;;  %v4375_v50 = vrot.slane %v4374_v46, 4  ;;  %v4395_v32 = vshll.u32 %v6322_v19, 16  ;;  %v4401_v18 = vshll.u32 %v6323_v12, 16  ;;  %v4385_v7 = vrot.slane %v4384_v10, 4 }
 0x111   : > { %v8243_v11 = vsel %vm7306_vm6, %v6438_v23, %v5122_v62  ;;  %v5124_v8 = vrot.slane %v5122_v62, 4  ;;  %v4405_v14 = vshrl.u32 %v6323_v12, 16  ;;  %v1368_v31 = vadd.f32 %v6689_v1, %v8012_v60  ;;  %v1231_v46 = vpop.f32.mrf.mxu1  ;;  %v1800_v23 = vpop.f32.mrf.mxu0  ;;  %v6404_v60 = vld [vmem:[%s7247_s13 + $0x64] sm:$0xf]  ;;  %v6405_v62 = vld [vmem:[%s7247_s13 + $0x68] sm:$0x1] }
 0x112   : > { %v4380_v35 = vsel %vm7320_vm7, %v4375_v50, %v4379_v61  ;;  %v4394_v13 = vrot.slane %v4392_v28, 4  ;;  %v4397_v19 = vrot.slane %v4395_v32, 5  ;;  %v4390_v58 = vsel %vm7320_vm7, %v4385_v7, %v4389_v16  ;;  %v6325_v32 = vld [vmem:[%s7247_s13 + $0x6c] sm:$0xf] }
 0x113   : > { %v8254_v27 = vsel %vm7306_vm6, %v5124_v8, %v5125_v52  ;;  %v4403_v12 = vrot.slane %v4401_v18, 5  ;;  %v4407_v10 = vrot.slane %v4405_v14, 4  ;;  %v8259_v61 = vadd.f32 %v6723_v22, %v1368_v31  ;;  %v6690_v18 = vpop.f32.mrf.mxu1  ;;  %v6724_v1 = vpop.f32.mrf.mxu0 }
 0x114   : > { %v8261_v50 = vcombine.low %v4380_v35, %v4390_v58  ;;  %v6455_v28 = vcombine.low %v8243_v11, %v8254_v27  ;;  %v1366_v16 = vadd.f32 %v1231_v46, %v8029_v15  ;;  %v9055_v52 = vcombine.low %v8033_v4, %v8049_v57 }
 0x115   : > { %v4398_v7 = vor.u32 %v4397_v19, %v4394_v13  ;;  %v4408_v2 = vor.u32 %v4407_v10, %v4403_v12  ;;  %v4411_v22 = vshll.u32 %v6324_v38, 16  ;;  %v6439_v8 = vrot.slane %v6403_v59, 9  ;;  %v1234_v57 = vpop.f32.mrf.mxu1  ;;  %v6326_v19 = vld [vmem:[%s7247_s13 + $0x70] sm:$0xf]  ;;  %v1803_v10 = vpop.f32.mrf.mxu0 }
 0x116   : > { %6917 = vmatprep.mubr.msk.bf16.mxu0 %vm383_vm1, %v9055_v52  ;;  %v8273_v14 = vadd.f32 %v1800_v23, %v1366_v16  ;;  %v1369_v15 = vadd.f32 %v6690_v18, %v8045_v54  ;;  %v5129_v31 = vrot.slane %v6404_v60, 5  ;;  %v5132_v4 = vrot.slane %v6405_v62, 5  ;;  %v6327_v23 = vld [vmem:[%s7247_s13 + $0x74] sm:$0x1]  ;;  %v6407_v18 = vld [vmem:[%s7247_s13 + $0x70] sm:$0xf] }
 0x117   : > { %6884 = vmatmul.mubr.msk.bf16.vlgmr.msra.gmra.mxu1 %vm383_vm1, %v8112_v20  ;;  %v4399_v35 = vrot.slane %v4398_v7, 4  ;;  %v4409_v13 = vrot.slane %v4408_v2, 4  ;;  %v4413_v38 = vrot.slane %v4411_v22, 5  ;;  %v4416_v59 = vshrl.u32 %v6325_v32, 16 }
 0x118   : > { %6887 = vmatprep.mubr.msk.bf16.mxu1 %vm383_vm1, %v8144_v43  ;;  %v8279_v20 = vadd.f32 %v6724_v1, %v1369_v15  ;;  %v1367_v58 = vadd.f32 %v1234_v57, %v8062_v56  ;;  %v8284_v54 = vsel %vm7306_vm6, %v6439_v8, %v5129_v31  ;;  %v5131_v46 = vrot.slane %v5129_v31, 4  ;;  %v6406_v43 = vld [vmem:[%s7247_s13 + $0x6c] sm:$0xe]  ;;  %v6408_v56 = vld [vmem:[%s7247_s13 + $0x74] sm:$0x1] }
 0x119   : > { %v4404_v60 = vsel %vm7320_vm7, %v4399_v35, %v4403_v12  ;;  %v4414_v62 = vsel %vm7320_vm7, %v4409_v13, %v4413_v38  ;;  %v4418_v16 = vrot.slane %v4416_v59, 4  ;;  %v4419_v52 = vshll.u32 %v6325_v32, 16  ;;  %v6328_v8 = vld [vmem:[%s7247_s13 + $0x78] sm:$0xf] }
 0x11a   : > { %v8294_v1 = vadd.f32 %v1803_v10, %v1367_v58  ;;  %v8296_v7 = vcombine.low %v4404_v60, %v4414_v62  ;;  %v8300_v2 = vsel %vm7306_vm6, %v5131_v46, %v5132_v4  ;;  %v4425_v22 = vshll.u32 %v6326_v19, 16  ;;  %v6329_v58 = vld [vmem:[%s7247_s13 + $0x7c] sm:$0xf]  ;;  %v6693_v46 = vpop.f32.mrf.mxu1  ;;  %v6727_v10 = vpop.f32.mrf.mxu0 }
 0x11b   : > { %v6456_v12 = vcombine.low %v8284_v54, %v8300_v2  ;;  %v4421_v15 = vrot.slane %v4419_v52, 5  ;;  %v4429_v31 = vshrl.u32 %v6326_v19, 16  ;;  %v4435_v57 = vshll.u32 %v6327_v23, 16 }
 0x11c   : > { %v9056_v32 = vcombine.low %v8078_v34, %v8098_v45  ;;  %v4427_v35 = vrot.slane %v4425_v22, 5  ;;  %v6440_v13 = vrot.slane %v6406_v43, 9  ;;  %v5136_v38 = vrot.slane %v6407_v18, 5  ;;  %v1247_v52 = vpop.f32.mrf.mxu1  ;;  %v1816_v18 = vpop.f32.mrf.mxu0 }
 0x11d   : > { %v5139_v59 = vrot.slane %v6408_v56, 5  ;;  %v9057_v4 = vcombine.low %v8119_v30, %v8129_v5  ;;  %v4422_v19 = vor.u32 %v4421_v15, %v4418_v16  ;;  %v4431_v23 = vrot.slane %v4429_v31, 4  ;;  %v6330_v56 = vld [vmem:[%s7247_s13 + $0x80] sm:$0x1] }
 0x11e   : > { %6918 = vmatmul.mubr.msk.bf16.vlgmr.msra.gmra.mxu0 %vm383_vm1, %v9056_v32  ;;  %v4437_v60 = vrot.slane %v4435_v57, 5  ;;  %v4440_v62 = vshrl.u32 %v6328_v8, 16  ;;  %v1372_v34 = vadd.f32 %v6693_v46, %v8070_v24  ;;  %v8319_v45 = vsel %vm7306_vm6, %v6440_v13, %v5136_v38  ;;  %v6409_v57 = vld [vmem:[%s7247_s13 + $0x78] sm:$0xe]  ;;  %v6410_v32 = vld [vmem:[%s7247_s13 + $0x7c] sm:$0xf]  ;;  %v6728_v46 = vpop.f32.mrf.mxu0 }
 0x11f   : > { %6921 = vmatprep.mubr.msk.bf16.mxu0 %vm383_vm1, %v9057_v4  ;;  %6888 = vmatmul.mubr.msk.bf16.gmra.mxu1 %vm383_vm1, %v8182_v0  ;;  %v5138_v30 = vrot.slane %v5136_v38, 4  ;;  %v4443_v5 = vshll.u32 %v6328_v8, 16  ;;  %v4423_v43 = vrot.slane %v4422_v19, 4  ;;  %v4432_v16 = vor.u32 %v4431_v23, %v4427_v35  ;;  %v6694_v4 = vpop.f32.mrf.mxu1 }
 0x120   : > { %6891 = vmatprep.mubr.msk.bf16.mxu1 %vm383_vm1, %v8236_v37  ;;  %v4442_v22 = vrot.slane %v4440_v62, 4  ;;  %v4449_v0 = vshll.u32 %v6329_v58, 16  ;;  %v8324_v15 = vadd.f32 %v6727_v10, %v1372_v34  ;;  %v1370_v31 = vadd.f32 %v1247_v52, %v8085_v51  ;;  %v6411_v62 = vld [vmem:[%s7247_s13 + $0x80] sm:$0x1] }
 0x121   : > { %v8328_v24 = vsel %vm7306_vm6, %v5138_v30, %v5139_v59  ;;  %v4445_v8 = vrot.slane %v4443_v5, 5  ;;  %v4428_v37 = vsel %vm7320_vm7, %v4423_v43, %v4427_v35  ;;  %v4433_v13 = vrot.slane %v4432_v16, 4  ;;  %v1250_v34 = vpop.f32.mrf.mxu1  ;;  %v6331_v16 = vld [vmem:[%s7247_s13 + $0x84] sm:$0xf] }
 0x122   : > { %v6457_v38 = vcombine.low %v8319_v45, %v8328_v24  ;;  %v4451_v10 = vrot.slane %v4449_v0, 5  ;;  %v8337_v19 = vadd.f32 %v1816_v18, %v1370_v31  ;;  %v1373_v59 = vadd.f32 %v6694_v4, %v8102_v26  ;;  %v6412_v31 = vld [vmem:[%s7247_s13 + $0x84] sm:$0xe]  ;;  %v6414_v4 = vld [vmem:[%s7247_s13 + $0x8c] sm:$0x1] }
 0x123   : > { %v4446_v51 = vor.u32 %v4445_v8, %v4442_v22  ;;  %v4453_v23 = vshrl.u32 %v6329_v58, 16  ;;  %v4438_v35 = vsel %vm7320_vm7, %v4433_v13, %v4437_v60  ;;  %v4459_v30 = vshll.u32 %v6330_v56, 16  ;;  %v6332_v22 = vld [vmem:[%s7247_s13 + $0x88] sm:$0xf]  ;;  %v6333_v60 = vld [vmem:[%s7247_s13 + $0x8c] sm:$0x1]  ;;  %v1819_v56 = vpop.f32.mrf.mxu0 }
 0x124   : > { %v6441_v5 = vrot.slane %v6409_v57, 9  ;;  %v5143_v43 = vrot.slane %v6410_v32, 5  ;;  %v6360_v52 = vcombine.low %v4428_v37, %v4438_v35  ;;  %v8348_v26 = vadd.f32 %v6728_v46, %v1373_v59  ;;  %v6413_v8 = vld [vmem:[%s7247_s13 + $0x88] sm:$0xf] }
 0x125   : > { %v1371_v58 = vadd.f32 %v1250_v34, %v8115_v9  ;;  %v4447_v18 = vrot.slane %v4446_v51, 4  ;;  %v4455_v0 = vrot.slane %v4453_v23, 4  ;;  %v4461_v48 = vrot.slane %v4459_v30, 5  ;;  %v6334_v23 = vld [vmem:[%s7247_s13 + $0x90] sm:$0xf]  ;;  %v6697_v34 = vpop.f32.mrf.mxu1 }
 0x126   : > { %6922 = vmatmul.mubr.msk.bf16.gmra.mxu0 %vm383_vm1, %v6453_v3  ;;  %v8359_v21 = vsel %vm7306_vm6, %v6441_v5, %v5143_v43  ;;  %v5145_v3 = vrot.slane %v5143_v43, 4  ;;  %v5146_v49 = vrot.slane %v6411_v62, 5  ;;  %v4467_v32 = vshll.u32 %v6331_v16, 16 }
 0x127   : > { %6925 = vmatprep.mubr.msk.bf16.mxu0 %vm383_vm1, %v6454_v17  ;;  %6892 = vmatmul.mubr.msk.bf16.gmra.mxu1 %vm383_vm1, %v8261_v50  ;;  %v8364_v9 = vadd.f32 %v1819_v56, %v1371_v58  ;;  %v4452_v25 = vsel %vm7320_vm7, %v4447_v18, %v4451_v10  ;;  %v4464_v17 = vshrl.u32 %v6331_v16, 16  ;;  %v4456_v57 = vor.u32 %v4455_v0, %v4451_v10  ;;  %v1263_v56 = vpop.f32.mrf.mxu1 }
 0x128   : > { %6895 = vmatprep.mubr.msk.bf16.mxu1 %vm383_vm1, %v8296_v7  ;;  %v4473_v37 = vshll.u32 %v6332_v22, 16  ;;  %v4477_v13 = vshrl.u32 %v6332_v22, 16  ;;  %v8374_v50 = vsel %vm7306_vm6, %v5145_v3, %v5146_v49  ;;  %v4483_v59 = vshll.u32 %v6333_v60, 16  ;;  %v6731_v7 = vpop.f32.mrf.mxu0  ;;  %v6335_v3 = vld [vmem:[%s7247_s13 + $0x94] sm:$0xf] }
 0x129   : > { %v4466_v46 = vrot.slane %v4464_v17, 4  ;;  %v6442_v51 = vrot.slane %v6412_v31, 9  ;;  %v4457_v62 = vrot.slane %v4456_v57, 4  ;;  %v6458_v35 = vcombine.low %v8359_v21, %v8374_v50  ;;  %v6698_v27 = vpop.f32.mrf.mxu1  ;;  %v6419_v21 = vld [vmem:[%s7247_s13 + $0xa0] sm:$0xf] }
 0x12a   : > { %v4469_v10 = vrot.slane %v4467_v32, 5  ;;  %v4475_v30 = vrot.slane %v4473_v37, 5  ;;  %v1376_v5 = vadd.f32 %v6697_v34, %v7870_v39  ;;  %v4479_v43 = vrot.slane %v4477_v13, 4  ;;  %v1832_v0 = vpop.f32.mrf.mxu0  ;;  %v6336_v13 = vld [vmem:[%s7247_s13 + $0x98] sm:$0x1]  ;;  %v9058_v34 = vld [vmem:[#allocation6_spill] sm:$0xff] }
 0x12b   : > { %v4485_v16 = vrot.slane %v4483_v59, 5  ;;  %v5150_v58 = vrot.slane %v6413_v8, 5  ;;  %v4462_v18 = vsel %vm7320_vm7, %v4457_v62, %v4461_v48  ;;  %v5153_v60 = vrot.slane %v6414_v4, 5  ;;  %v6415_v59 = vld [vmem:[%s7247_s13 + $0x90] sm:$0xe] }
 0x12c   : > { %v4470_v22 = vor.u32 %v4469_v10, %v4466_v46  ;;  %v4488_v31 = vshrl.u32 %v6334_v23, 16  ;;  %v6361_v49 = vcombine.low %v4452_v25, %v4462_v18  ;;  %v8387_v39 = vadd.f32 %v6731_v7, %v1376_v5  ;;  %v6417_v10 = vld [vmem:[%s7247_s13 + $0x98] sm:$0x1]  ;;  %v6420_v50 = vld [vmem:[%s7247_s13 + $0xa4] sm:$0x1] }
 0x12d   : > { %v4480_v17 = vor.u32 %v4479_v43, %v4475_v30  ;;  %v8391_v8 = vsel %vm7306_vm6, %v6442_v51, %v5150_v58  ;;  %v5152_v57 = vrot.slane %v5150_v58, 4  ;;  %v1374_v11 = vadd.f32 %v1263_v56, %v7894_v53 }
 0x12e   : > { %6926 = vmatmul.mubr.msk.bf16.gmra.mxu0 %vm383_vm1, %v6455_v28  ;;  %v4471_v48 = vrot.slane %v4470_v22, 4  ;;  %v6732_v28 = vpop.f32.mrf.mxu0  ;;  %v4490_v25 = vrot.slane %v4488_v31, 4  ;;  %v1377_v37 = vadd.f32 %v6698_v27, %v7915_v6  ;;  %v4491_v54 = vshll.u32 %v6334_v23, 16  ;;  %v6416_v6 = vld [vmem:[%s7247_s13 + $0x94] sm:$0xf] }
 0x12f   : > { %6929 = vmatprep.mubr.msk.bf16.mxu0 %vm383_vm1, %v6456_v12  ;;  %6896 = vmatmul.mubr.msk.bf16.gmra.mxu1 %vm383_vm1, %v6360_v52  ;;  %v4481_v32 = vrot.slane %v4480_v17, 4  ;;  %v4497_v2 = vshll.u32 %v6335_v3, 16  ;;  %v8406_v12 = vsel %vm7306_vm6, %v5152_v57, %v5153_v60  ;;  %v8408_v4 = vadd.f32 %v1832_v0, %v1374_v11  ;;  %v1266_v52 = vpop.f32.mrf.mxu1 }
 0x130   : > { %6899 = vmatprep.mubr.msk.bf16.mxu1 %vm383_vm1, %v6361_v49  ;;  %v4476_v53 = vsel %vm7320_vm7, %v4471_v48, %v4475_v30  ;;  %v4501_v46 = vshrl.u32 %v6335_v3, 16  ;;  %v6459_v23 = vcombine.low %v8391_v8, %v8406_v12  ;;  %v8416_v62 = vadd.f32 %v6732_v28, %v1377_v37  ;;  %v6337_v30 = vld [vmem:[%s7247_s13 + $0x9c] sm:$0xf]  ;;  %v1835_v43 = vpop.f32.mrf.mxu0  ;;  %v6338_v3 = vld [vmem:[%s7247_s13 + $0xa0] sm:$0xf] }
 0x131   : > { %v4486_v51 = vsel %vm7320_vm7, %v4481_v32, %v4485_v16  ;;  %v1375_v7 = vadd.f32 %v1266_v52, %v9058_v34  ;;  %v4493_v58 = vrot.slane %v4491_v54, 5  ;;  %v4499_v18 = vrot.slane %v4497_v2, 5  ;;  %v6339_v28 = vld [vmem:[%s7247_s13 + $0xa4] sm:$0x1]  ;;  %v6418_v54 = vld [vmem:[%s7247_s13 + $0x9c] sm:$0xe] }
 0x132   : > { %v6362_v5 = vcombine.low %v4476_v53, %v4486_v51  ;;  %v4503_v22 = vrot.slane %v4501_v46, 4  ;;  %v4507_v56 = vshll.u32 %v6336_v13, 16  ;;  %v6443_v0 = vrot.slane %v6415_v59, 9  ;;  %v6701_v13 = vpop.f32.mrf.mxu1  ;;  %v6735_v45 = vpop.f32.mrf.mxu0  ;;  %v9059_v53 = vld [vmem:[#allocation7_spill] sm:$0xff] }
 0x133   : > { %v8421_v60 = vadd.f32 %v1835_v43, %v1375_v7  ;;  %v5157_v16 = vrot.slane %v6416_v6, 5  ;;  %v4494_v31 = vor.u32 %v4493_v58, %v4490_v25  ;;  %v5160_v17 = vrot.slane %v6417_v10, 5 }
 0x134   : > { %v4504_v49 = vor.u32 %v4503_v22, %v4499_v18  ;;  %v4512_v48 = vshrl.u32 %v6337_v30, 16  ;;  %v4509_v57 = vrot.slane %v4507_v56, 5  ;;  %v4515_v32 = vshll.u32 %v6337_v30, 16  ;;  %v1279_v7 = vpop.f32.mrf.mxu1  ;;  %v1848_v10 = vpop.f32.mrf.mxu0  ;;  %v6340_v22 = vld [vmem:[%s7247_s13 + $0xa8] sm:$0xf] }
 0x135   : > { %v5158_v11 = vsel %vm7306_vm6, %v6443_v0, %v5157_v16  ;;  %v5159_v27 = vrot.slane %v5157_v16, 4  ;;  %v4495_v25 = vrot.slane %v4494_v31, 4  ;;  %v1380_v52 = vadd.f32 %v6701_v13, %v9059_v53  ;;  %v6341_v13 = vld [vmem:[%s7247_s13 + $0xac] sm:$0xf]  ;;  %v6342_v53 = vld [vmem:[%s7247_s13 + $0xb0] sm:$0x1] }
 0x136   : > { %6930 = vmatmul.mubr.msk.bf16.gmra.mxu0 %vm383_vm1, %v6457_v38  ;;  %v4505_v37 = vrot.slane %v4504_v49, 4  ;;  %v4514_v24 = vrot.slane %v4512_v48, 4  ;;  %v4521_v38 = vshll.u32 %v6338_v3, 16  ;;  %v4517_v46 = vrot.slane %v4515_v32, 5  ;;  %v6702_v31 = vpop.f32.mrf.mxu1  ;;  %v9060_v48 = vld [vmem:[#allocation8_spill] sm:$0xff] }
 0x137   : > { %6933 = vmatprep.mubr.msk.bf16.mxu0 %vm383_vm1, %v6458_v35  ;;  %6900 = vmatmul.mubr.msk.bf16.gmra.mxu1 %vm383_vm1, %v6362_v5  ;;  %v5161_v2 = vsel %vm7306_vm6, %v5159_v27, %v5160_v17  ;;  %v4525_v59 = vshrl.u32 %v6338_v3, 16  ;;  %v4500_v35 = vsel %vm7320_vm7, %v4495_v25, %v4499_v18  ;;  %v8446_v5 = vadd.f32 %v6735_v45, %v1380_v52  ;;  %v6736_v18 = vpop.f32.mrf.mxu0 }
 0x138   : > { %v4510_v6 = vsel %vm7320_vm7, %v4505_v37, %v4509_v57  ;;  %v6460_v51 = vcombine.low %v5158_v11, %v5161_v2  ;;  %v4523_v34 = vrot.slane %v4521_v38, 5  ;;  %v4518_v43 = vor.u32 %v4517_v46, %v4514_v24  ;;  %v9061_v11 = vld [vmem:[#allocation9_spill] sm:$0xff]  ;;  %v9062_v46 = vld [vmem:[#allocation10_spill] sm:$0xff] }
 0x139   : > { %v6363_v30 = vcombine.low %v4500_v35, %v4510_v6  ;;  %v4527_v58 = vrot.slane %v4525_v59, 4  ;;  %v4531_v56 = vshll.u32 %v6339_v28, 16  ;;  %v6444_v0 = vrot.slane %v6418_v54, 9  ;;  %v1282_v28 = vpop.f32.mrf.mxu1  ;;  %v1851_v12 = vpop.f32.mrf.mxu0 }
 0x13a   : > { %v5164_v16 = vrot.slane %v6419_v21, 5  ;;  %v5167_v3 = vrot.slane %v6420_v50, 5  ;;  %v4519_v49 = vrot.slane %v4518_v43, 4  ;;  %v1378_v57 = vadd.f32 %v1279_v7, %v9060_v48  ;;  %v6421_v21 = vld [vmem:[%s7247_s13 + $0xa8] sm:$0xe] }
 0x13b   : > { %6903 = vmatprep.mubr.msk.bf16.mxu1 %vm383_vm1, %v6363_v30  ;;  %v4528_v17 = vor.u32 %v4527_v58, %v4523_v34  ;;  %v1381_v27 = vadd.f32 %v6702_v31, %v9061_v11  ;;  %v4533_v32 = vrot.slane %v4531_v56, 5  ;;  %v4536_v45 = vshrl.u32 %v6340_v22, 16  ;;  %v6422_v50 = vld [vmem:[%s7247_s13 + $0xac] sm:$0xf]  ;;  %v6343_v30 = vld [vmem:[%s7247_s13 + $0xb4] sm:$0xf]  ;;  %v6705_v48 = vpop.f32.mrf.mxu1 }
 0x13c   : > { %v5165_v25 = vsel %vm7306_vm6, %v6444_v0, %v5164_v16  ;;  %v5166_v37 = vrot.slane %v5164_v16, 4  ;;  %v4524_v24 = vsel %vm7320_vm7, %v4519_v49, %v4523_v34  ;;  %v8461_v54 = vadd.f32 %v1848_v10, %v1378_v57  ;;  %v6423_v10 = vld [vmem:[%s7247_s13 + $0xb0] sm:$0x1]  ;;  %v6344_v31 = vld [vmem:[%s7247_s13 + $0xb8] sm:$0xf]  ;;  %v6739_v57 = vpop.f32.mrf.mxu0 }
 0x13d   : > { %v4529_v38 = vrot.slane %v4528_v17, 4  ;;  %v8463_v2 = vadd.f32 %v6736_v18, %v1381_v27  ;;  %v1379_v8 = vadd.f32 %v1282_v28, %v9062_v46  ;;  %v4539_v59 = vshll.u32 %v6340_v22, 16  ;;  %v1295_v46 = vpop.f32.mrf.mxu1 }
 0x13e   : > { %6934 = vmatmul.mubr.msk.bf16.gmra.mxu0 %vm383_vm1, %v6459_v23  ;;  %v5168_v52 = vsel %vm7306_vm6, %v5166_v37, %v5167_v3  ;;  %v4538_v23 = vrot.slane %v4536_v45, 4  ;;  %v4545_v34 = vshll.u32 %v6341_v13, 16  ;;  %v4549_v7 = vshrl.u32 %v6341_v13, 16  ;;  %v9063_v37 = vld [vmem:[#allocation11_spill] sm:$0xff]  ;;  %v6345_v13 = vld [vmem:[%s7247_s13 + $0xbc] sm:$0x1] }
 0x13f   : > { %6937 = vmatprep.mubr.msk.bf16.mxu0 %vm383_vm1, %v6460_v51  ;;  %v4534_v35 = vsel %vm7320_vm7, %v4529_v38, %v4533_v32  ;;  %v6461_v6 = vcombine.low %v5165_v25, %v5168_v52  ;;  %v8476_v43 = vadd.f32 %v1851_v12, %v1379_v8  ;;  %v4541_v58 = vrot.slane %v4539_v59, 5  ;;  %v6424_v52 = vld [vmem:[%s7247_s13 + $0xb4] sm:$0xe]  ;;  %v1864_v8 = vpop.f32.mrf.mxu0 }
 0x140   : > { %v6364_v51 = vcombine.low %v4524_v24, %v4534_v35  ;;  %v4555_v56 = vshll.u32 %v6342_v53, 16  ;;  %v4547_v0 = vrot.slane %v4545_v34, 5  ;;  %v4551_v16 = vrot.slane %v4549_v7, 4  ;;  %v6426_v35 = vld [vmem:[%s7247_s13 + $0xbc] sm:$0x1] }
 0x141   : > { %v6445_v22 = vrot.slane %v6421_v21, 9  ;;  %v5171_v3 = vrot.slane %v6422_v50, 5  ;;  %v4542_v18 = vor.u32 %v4541_v58, %v4538_v23  ;;  %v5174_v17 = vrot.slane %v6423_v10, 5  ;;  %v6425_v50 = vld [vmem:[%s7247_s13 + $0xb8] sm:$0xf]  ;;  %v6740_v58 = vpop.f32.mrf.mxu0 }
 0x142   : > { %6904 = vmatmul.mubr.msk.bf16.gmra.mxu1 %vm383_vm1, %v6364_v51  ;;  %v4557_v49 = vrot.slane %v4555_v56, 5  ;;  %v4560_v11 = vshrl.u32 %v6343_v30, 16  ;;  %v4552_v27 = vor.u32 %v4551_v16, %v4547_v0  ;;  %v1384_v28 = vadd.f32 %v6705_v48, %v9063_v37  ;;  %v6706_v51 = vpop.f32.mrf.mxu1  ;;  %v6346_v48 = vld [vmem:[%s7247_s13 + $0xc0] sm:$0xf] }
 0x143   : > { %v5172_v32 = vsel %vm7306_vm6, %v6445_v22, %v5171_v3  ;;  %v5173_v25 = vrot.slane %v5171_v3, 4  ;;  %v4543_v45 = vrot.slane %v4542_v18, 4  ;;  %v4563_v38 = vshll.u32 %v6343_v30, 16 }
 0x144   : > { %v4562_v24 = vrot.slane %v4560_v11, 4  ;;  %v4569_v53 = vshll.u32 %v6344_v31, 16  ;;  %v4553_v12 = vrot.slane %v4552_v27, 4  ;;  %v8488_v59 = vadd.f32 %v6739_v57, %v1384_v28  ;;  %v9064_v27 = vld [vmem:[#allocation12_spill] sm:$0xff] }
 0x145   : > { %v5175_v23 = vsel %vm7306_vm6, %v5173_v25, %v5174_v17  ;;  %v4573_v21 = vshrl.u32 %v6344_v31, 16  ;;  %v4548_v34 = vsel %vm7320_vm7, %v4543_v45, %v4547_v0  ;;  %v4565_v10 = vrot.slane %v4563_v38, 5  ;;  %v1298_v0 = vpop.f32.mrf.mxu1  ;;  %v9065_v25 = vld [vmem:[#allocation13_spill] sm:$0xff]  ;;  %v9066_v45 = vld [vmem:[#allocation14_spill] sm:$0xff]  ;;  %v1867_v38 = vpop.f32.mrf.mxu0 }
 0x146   : > { %6938 = vmatmul.mubr.msk.bf16.gmra.mxu0 %vm383_vm1, %v6461_v6  ;;  %v6462_v7 = vcombine.low %v5172_v32, %v5175_v23  ;;  %v4571_v30 = vrot.slane %v4569_v53, 5  ;;  %v4558_v6 = vsel %vm7320_vm7, %v4553_v12, %v4557_v49  ;;  %v4579_v16 = vshll.u32 %v6345_v13, 16  ;;  %v6347_v53 = vld [vmem:[%s7247_s13 + $0xc4] sm:$0xf] }
 0x147   : > { %v4575_v56 = vrot.slane %v4573_v21, 4  ;;  %v6446_v22 = vrot.slane %v6424_v52, 9  ;;  %v6365_v3 = vcombine.low %v4548_v34, %v4558_v6  ;;  %v4566_v31 = vor.u32 %v4565_v10, %v4562_v24  ;;  %v6429_v6 = vld [vmem:[%s7247_s13 + $0xc8] sm:$0x1] }
 0x148   : > { %6941 = vmatprep.mubr.msk.bf16.mxu0 %vm383_vm1, %v6462_v7  ;;  %v5178_v18 = vrot.slane %v6425_v50, 5  ;;  %v5181_v17 = vrot.slane %v6426_v35, 5  ;;  %v4581_v11 = vrot.slane %v4579_v16, 5  ;;  %v1382_v32 = vadd.f32 %v1295_v46, %v9064_v27  ;;  %v6348_v46 = vld [vmem:[%s7247_s13 + $0xc8] sm:$0x1] }
 0x149   : > { %v4576_v57 = vor.u32 %v4575_v56, %v4571_v30  ;;  %v1385_v49 = vadd.f32 %v6706_v51, %v9065_v25  ;;  %6907 = vmatprep.mubr.msk.bf16.mxu1 %vm383_vm1, %v6365_v3  ;;  %v4567_v37 = vrot.slane %v4566_v31, 4  ;;  %v1383_v24 = vadd.f32 %v1298_v0, %v9066_v45  ;;  %v6427_v50 = vld [vmem:[%s7247_s13 + $0xc0] sm:$0xe]  ;;  %v6428_v51 = vld [vmem:[%s7247_s13 + $0xc4] sm:$0xf]  ;;  %v6743_v0 = vpop.f32.mrf.mxu0 }
 0x14a   : > { %v5179_v28 = vsel %vm7306_vm6, %v6446_v22, %v5178_v18  ;;  %v5180_v13 = vrot.slane %v5178_v18, 4  ;;  %v8505_v12 = vadd.f32 %v1864_v8, %v1382_v32  ;;  %v4584_v21 = vshrl.u32 %v6346_v48, 16  ;;  %v6709_v18 = vpop.f32.mrf.mxu1  ;;  %v6350_v25 = vld [vmem:[%s7247_s13 + $0xd0] sm:$0xf] }
 0x14b   : > { %v4577_v52 = vrot.slane %v4576_v57, 4  ;;  %v8507_v23 = vadd.f32 %v6740_v58, %v1385_v49  ;;  %v4572_v35 = vsel %vm7320_vm7, %v4567_v37, %v4571_v30  ;;  %v8515_v7 = vadd.f32 %v1867_v38, %v1383_v24  ;;  %v6349_v57 = vld [vmem:[%s7247_s13 + $0xcc] sm:$0xf]  ;;  %v1880_v24 = vpop.f32.mrf.mxu0 }
 0x14c   : > { %v5182_v34 = vsel %vm7306_vm6, %v5180_v13, %v5181_v17  ;;  %v4587_v10 = vshll.u32 %v6346_v48, 16  ;;  %v4586_v56 = vrot.slane %v4584_v21, 4  ;;  %v4593_v16 = vshll.u32 %v6347_v53, 16  ;;  %v1311_v45 = vpop.f32.mrf.mxu1 }
 0x14d   : > { %v4582_v8 = vsel %vm7320_vm7, %v4577_v52, %v4581_v11  ;;  %v6463_v58 = vcombine.low %v5179_v28, %v5182_v34  ;;  %v4597_v31 = vshrl.u32 %v6347_v53, 16  ;;  %v4603_v30 = vshll.u32 %v6348_v46, 16  ;;  %v9067_v28 = vld [vmem:[#allocation15_spill] sm:$0xff]  ;;  %v6351_v52 = vld [vmem:[%s7247_s13 + $0xd4] sm:$0x1] }
 0x14e   : > { %v6366_v22 = vcombine.low %v4572_v35, %v4582_v8  ;;  %v4589_v3 = vrot.slane %v4587_v10, 5  ;;  %v4595_v17 = vrot.slane %v4593_v16, 5  ;;  %v6447_v48 = vrot.slane %v6427_v50, 9  ;;  %v6710_v8 = vpop.f32.mrf.mxu1 }
 0x14f   : > { %6942 = vmatmul.mubr.msk.bf16.gmra.mxu0 %vm383_vm1, %v6463_v58  ;;  %v5185_v27 = vrot.slane %v6428_v51, 5  ;;  %v5188_v32 = vrot.slane %v6429_v6, 5  ;;  %v4599_v49 = vrot.slane %v4597_v31, 4  ;;  %v4605_v37 = vrot.slane %v4603_v30, 5  ;;  %v6430_v51 = vld [vmem:[%s7247_s13 + $0xcc] sm:$0xe]  ;;  %v6744_v58 = vpop.f32.mrf.mxu0 }
 0x150   : > { %6908 = vmatmul.mubr.msk.bf16.gmra.mxu1 %vm383_vm1, %v6366_v22  ;;  %v4590_v11 = vor.u32 %v4589_v3, %v4586_v56  ;;  %v1388_v13 = vadd.f32 %v6709_v18, %v9067_v28  ;;  %v4608_v46 = vshrl.u32 %v6349_v57, 16  ;;  %v4611_v21 = vshll.u32 %v6349_v57, 16  ;;  %v6431_v6 = vld [vmem:[%s7247_s13 + $0xd0] sm:$0xf]  ;;  %v6432_v31 = vld [vmem:[%s7247_s13 + $0xd4] sm:$0x1] }
 0x151   : > { %v5186_v38 = vsel %vm7306_vm6, %v6447_v48, %v5185_v27  ;;  %v5187_v53 = vrot.slane %v5185_v27, 4  ;;  %v4600_v35 = vor.u32 %v4599_v49, %v4595_v17  ;;  %v4617_v10 = vshll.u32 %v6350_v25, 16 }
 0x152   : > { %v4591_v50 = vrot.slane %v4590_v11, 4  ;;  %v8529_v34 = vadd.f32 %v6743_v0, %v1388_v13  ;;  %v4610_v16 = vrot.slane %v4608_v46, 4  ;;  %v4613_v22 = vrot.slane %v4611_v21, 5  ;;  %v1314_v0 = vpop.f32.mrf.mxu1  ;;  %v1883_v13 = vpop.f32.mrf.mxu0 }
 0x153   : > { %v5189_v56 = vsel %vm7306_vm6, %v5187_v53, %v5188_v32  ;;  %v4621_v3 = vshrl.u32 %v6350_v25, 16  ;;  %v4601_v18 = vrot.slane %v4600_v35, 4  ;;  %v4619_v48 = vrot.slane %v4617_v10, 5  ;;  %v9069_v53 = vld [vmem:[#allocation16_spill] sm:$0xff] }
 0x154   : > { %9068 = vst [vmem:[#allocation6_spill] sm:$0xff] %v8529_v34  ;;  %v4596_v30 = vsel %vm7320_vm7, %v4591_v50, %v4595_v17  ;;  %v6464_v57 = vcombine.low %v5186_v38, %v5189_v56  ;;  %v4614_v27 = vor.u32 %v4613_v22, %v4610_v16  ;;  %v4627_v49 = vshll.u32 %v6351_v52, 16  ;;  %v6749_v21 = vpop.f32.mrf.mxu1  ;;  %v9070_v56 = vld [vmem:[#allocation17_spill] sm:$0xff]  ;;  %v9071_v22 = vld [vmem:[#allocation18_spill] sm:$0xff] }
 0x155   : > { %v4623_v11 = vrot.slane %v4621_v3, 4  ;;  %v6448_v28 = vrot.slane %v6430_v51, 9  ;;  %v4606_v34 = vsel %vm7320_vm7, %v4601_v18, %v4605_v37  ;;  %v5192_v32 = vrot.slane %v6431_v6, 5 }
 0x156   : > { %6945 = vmatprep.mubr.msk.bf16.mxu0 %vm383_vm1, %v6464_v57  ;;  %v5195_v25 = vrot.slane %v6432_v31, 5  ;;  %v1386_v46 = vadd.f32 %v1311_v45, %v9069_v53  ;;  %v6367_v17 = vcombine.low %v4596_v30, %v4606_v34  ;;  %v4615_v50 = vrot.slane %v4614_v27, 4  ;;  %v2194_v37 = vpop.f32.mrf.mxu1  ;;  %v6783_v31 = vpop.f32.mrf.mxu0 }
 0x157   : > { %v4624_v38 = vor.u32 %v4623_v11, %v4619_v48  ;;  %v4629_v35 = vrot.slane %v4627_v49, 5  ;;  %v5193_v10 = vsel %vm7306_vm6, %v6448_v28, %v5192_v32  ;;  %v5194_v52 = vrot.slane %v5192_v32, 4 }
 0x158   : > { %v8544_v51 = vadd.f32 %v1880_v24, %v1386_v46  ;;  %v1389_v16 = vadd.f32 %v6710_v8, %v9070_v56  ;;  %6911 = vmatprep.mubr.msk.bf16.mxu1 %vm383_vm1, %v6367_v17  ;;  %v4620_v6 = vsel %vm7320_vm7, %v4615_v50, %v4619_v48  ;;  %v1387_v34 = vadd.f32 %v1314_v0, %v9071_v22  ;;  %v6750_v8 = vpop.f32.mrf.mxu1  ;;  %v2984_v0 = vpop.f32.mrf.mxu0 }
 0x159   : > { %v4625_v45 = vrot.slane %v4624_v38, 4  ;;  %v2355_v3 = vadd.f32 %v6749_v21, %v8151_v36  ;;  %v5196_v30 = vsel %vm7306_vm6, %v5194_v52, %v5195_v25  ;;  %v2353_v24 = vadd.f32 %v2194_v37, %v8160_v41 }
 0x15a   : > { %v8554_v18 = vadd.f32 %v6744_v58, %v1389_v16  ;;  %v6465_v27 = vcombine.low %v5193_v10, %v5196_v30  ;;  %v8559_v11 = vadd.f32 %v1883_v13, %v1387_v34  ;;  %v2356_v42 = vadd.f32 %v6750_v8, %v8172_v63  ;;  %v2197_v28 = vpop.f32.mrf.mxu1  ;;  %v6784_v58 = vpop.f32.mrf.mxu0 }
 0x15b   : > { %v4630_v57 = vsel %vm7320_vm7, %v4625_v45, %v4629_v35  ;;  %v8561_v48 = vadd.f32 %v6783_v31, %v2355_v3  ;;  %v8563_v36 = vadd.f32 %v2984_v0, %v2353_v24  ;;  %v2354_v41 = vadd.f32 %v2197_v28, %v8189_v29 }
 0x15c   : > { %v6368_v49 = vcombine.low %v4620_v6, %v4630_v57  ;;  %6946 = vmatmul.mubr.msk.bf16.gmra.mxu0 %vm383_vm1, %v6465_v27  ;;  %v8569_v55 = vadd.f32 %v6784_v58, %v2356_v42  ;;  %v6753_v13 = vpop.f32.mrf.mxu1  ;;  %v2987_v32 = vpop.f32.mrf.mxu0 }
 0x15d   : > { %v2359_v25 = vadd.f32 %v6753_v13, %v8197_v47  ;;  %v8572_v53 = vadd.f32 %v2987_v32, %v2354_v41 }
 0x15e   : > { %6912 = vmatmul.mubr.msk.bf16.gmra.mxu1 %vm383_vm1, %v6368_v49  ;;  %v2210_v46 = vpop.f32.mrf.mxu1  ;;  %v6787_v21 = vpop.f32.mrf.mxu0 }
 0x15f   : > { %v2357_v63 = vadd.f32 %v2210_v46, %v8208_v40  ;;  %v8575_v17 = vadd.f32 %v6787_v21, %v2359_v25 }
 0x160   : > { %v6754_v50 = vpop.f32.mrf.mxu1  ;;  %v3000_v38 = vpop.f32.mrf.mxu0 }
 0x161   : > { %v2360_v29 = vadd.f32 %v6754_v50, %v8219_v44  ;;  %v8578_v35 = vadd.f32 %v3000_v38, %v2357_v63 }
 0x162   : > { %v2213_v10 = vpop.f32.mrf.mxu1  ;;  %v6788_v52 = vpop.f32.mrf.mxu0 }
 0x163   : > { %v2358_v56 = vadd.f32 %v2213_v10, %v8234_v33  ;;  %v8581_v16 = vadd.f32 %v6788_v52, %v2360_v29 }
 0x164   : > { %v6757_v47 = vpop.f32.mrf.mxu1  ;;  %v3003_v37 = vpop.f32.mrf.mxu0 }
 0x165   : > { %v2363_v6 = vadd.f32 %v6757_v47, %v8259_v61  ;;  %v8584_v45 = vadd.f32 %v3003_v37, %v2358_v56 }
 0x166   : > { %v2226_v40 = vpop.f32.mrf.mxu1  ;;  %v6791_v3 = vpop.f32.mrf.mxu0 }
 0x167   : > { %v2361_v22 = vadd.f32 %v2226_v40, %v8273_v14  ;;  %v8588_v31 = vadd.f32 %v6791_v3, %v2363_v6 }
 0x168   : > { %v6758_v34 = vpop.f32.mrf.mxu1  ;;  %v3016_v24 = vpop.f32.mrf.mxu0 }
 0x169   : > { %v2364_v44 = vadd.f32 %v6758_v34, %v8279_v20  ;;  %v8591_v8 = vadd.f32 %v3016_v24, %v2361_v22 }
 0x16a   : > { %v2229_v30 = vpop.f32.mrf.mxu1  ;;  %v6792_v27 = vpop.f32.mrf.mxu0 }
 0x16b   : > { %v2362_v33 = vadd.f32 %v2229_v30, %v8294_v1  ;;  %v8594_v0 = vadd.f32 %v6792_v27, %v2364_v44 }
 0x16c   : > { %v6761_v57 = vpop.f32.mrf.mxu1  ;;  %v3019_v14 = vpop.f32.mrf.mxu0 }
 0x16d   : > { %v2367_v61 = vadd.f32 %v6761_v57, %v8324_v15  ;;  %v8597_v28 = vadd.f32 %v3019_v14, %v2362_v33 }
 0x16e   : > { %v2242_v49 = vpop.f32.mrf.mxu1  ;;  %v6795_v58 = vpop.f32.mrf.mxu0 }
 0x16f   : > { %v2365_v42 = vadd.f32 %v2242_v49, %v8337_v19  ;;  %v8600_v13 = vadd.f32 %v6795_v58, %v2367_v61 }
 0x170   : > { %v6762_v20 = vpop.f32.mrf.mxu1  ;;  %v3032_v32 = vpop.f32.mrf.mxu0 }
 0x171   : > { %v2368_v41 = vadd.f32 %v6762_v20, %v8348_v26  ;;  %v8603_v46 = vadd.f32 %v3032_v32, %v2365_v42 }
 0x172   : > { %v2245_v1 = vpop.f32.mrf.mxu1  ;;  %v6796_v21 = vpop.f32.mrf.mxu0 }
 0x173   : > { %v2366_v25 = vadd.f32 %v2245_v1, %v8364_v9  ;;  %v8606_v50 = vadd.f32 %v6796_v21, %v2368_v41 }
 0x174   : > { %v6765_v15 = vpop.f32.mrf.mxu1  ;;  %v3035_v38 = vpop.f32.mrf.mxu0 }
 0x175   : > { %v2371_v63 = vadd.f32 %v6765_v15, %v8387_v39  ;;  %9072 = vst [vmem:[#allocation7_spill] sm:$0xff] %v8606_v50  ;;  %v8609_v10 = vadd.f32 %v3035_v38, %v2366_v25 }
 0x176   : > { %v2258_v19 = vpop.f32.mrf.mxu1  ;;  %v6799_v52 = vpop.f32.mrf.mxu0 }
 0x177   : > { %v2369_v29 = vadd.f32 %v2258_v19, %v8408_v4  ;;  %9073 = vst [vmem:[#allocation8_spill] sm:$0xff] %v8609_v10  ;;  %v8612_v47 = vadd.f32 %v6799_v52, %v2371_v63 }
 0x178   : > { %v6766_v26 = vpop.f32.mrf.mxu1  ;;  %v3048_v37 = vpop.f32.mrf.mxu0 }
 0x179   : > { %v2372_v56 = vadd.f32 %v6766_v26, %v8416_v62  ;;  %9074 = vst [vmem:[#allocation9_spill] sm:$0xff] %v8612_v47  ;;  %v8615_v40 = vadd.f32 %v3048_v37, %v2369_v29 }
 0x17a   : > { %v2261_v9 = vpop.f32.mrf.mxu1  ;;  %v6800_v22 = vpop.f32.mrf.mxu0 }
 0x17b   : > { %v2370_v6 = vadd.f32 %v2261_v9, %v8421_v60  ;;  %9075 = vst [vmem:[#allocation10_spill] sm:$0xff] %v8615_v40  ;;  %v8618_v3 = vadd.f32 %v6800_v22, %v2372_v56 }
 0x17c   : > { %v6769_v39 = vpop.f32.mrf.mxu1  ;;  %v3051_v44 = vpop.f32.mrf.mxu0 }
 0x17d   : > { %v2375_v34 = vadd.f32 %v6769_v39, %v8446_v5  ;;  %9076 = vst [vmem:[#allocation11_spill] sm:$0xff] %v8618_v3  ;;  %v8621_v24 = vadd.f32 %v3051_v44, %v2370_v6 }
 0x17e   : > { %v2274_v4 = vpop.f32.mrf.mxu1  ;;  %v6803_v33 = vpop.f32.mrf.mxu0 }
 0x17f   : > { %v2373_v30 = vadd.f32 %v2274_v4, %v8461_v54  ;;  %9077 = vst [vmem:[#allocation12_spill] sm:$0xff] %v8621_v24  ;;  %v8624_v27 = vadd.f32 %v6803_v33, %v2375_v34 }
 0x180   : > { %v6770_v62 = vpop.f32.mrf.mxu1  ;;  %v3064_v61 = vpop.f32.mrf.mxu0 }
 0x181   : > { %v2376_v57 = vadd.f32 %v6770_v62, %v8463_v2  ;;  %9078 = vst [vmem:[#allocation13_spill] sm:$0xff] %v8624_v27  ;;  %v8627_v14 = vadd.f32 %v3064_v61, %v2373_v30 }
 0x182   : > { %v2277_v60 = vpop.f32.mrf.mxu1  ;;  %v6804_v42 = vpop.f32.mrf.mxu0 }
 0x183   : > { %v2374_v49 = vadd.f32 %v2277_v60, %v8476_v43  ;;  %9079 = vst [vmem:[#allocation14_spill] sm:$0xff] %v8627_v14  ;;  %v8630_v58 = vadd.f32 %v6804_v42, %v2376_v57 }
 0x184   : > { %v6773_v5 = vpop.f32.mrf.mxu1  ;;  %v3067_v41 = vpop.f32.mrf.mxu0 }
 0x185   : > { %v2379_v20 = vadd.f32 %v6773_v5, %v8488_v59  ;;  %9080 = vst [vmem:[#allocation15_spill] sm:$0xff] %v8630_v58  ;;  %v8633_v32 = vadd.f32 %v3067_v41, %v2374_v49  ;;  %v9082_v59 = vld [vmem:[#allocation6_spill] sm:$0xff] }
 0x186   : > { %v2290_v54 = vpop.f32.mrf.mxu1  ;;  %v6807_v21 = vpop.f32.mrf.mxu0 }
 0x187   : > { %v2377_v1 = vadd.f32 %v2290_v54, %v8505_v12  ;;  %9081 = vst [vmem:[#allocation16_spill] sm:$0xff] %v8633_v32  ;;  %v8637_v63 = vadd.f32 %v6807_v21, %v2379_v20 }
 0x188   : > { %v6774_v2 = vpop.f32.mrf.mxu1  ;;  %v3080_v38 = vpop.f32.mrf.mxu0 }
 0x189   : > { %v2380_v25 = vadd.f32 %v6774_v2, %v8507_v23  ;;  %v8640_v26 = vadd.f32 %v3080_v38, %v2377_v1 }
 0x18a   : > { %v2293_v15 = vpop.f32.mrf.mxu1  ;;  %v6808_v56 = vpop.f32.mrf.mxu0 }
 0x18b   : > { %v2378_v43 = vadd.f32 %v2293_v15, %v8515_v7  ;;  %v8643_v9 = vadd.f32 %v6808_v56, %v2380_v25 }
 0x18c   : > { %v6777_v19 = vpop.f32.mrf.mxu1  ;;  %v3083_v23 = vpop.f32.mrf.mxu0 }
 0x18d   : > { %v2383_v29 = vadd.f32 %v6777_v19, %v9082_v59  ;;  %v8646_v39 = vadd.f32 %v3083_v23, %v2378_v43 }
 0x18e   : > { %v2306_v52 = vpop.f32.mrf.mxu1  ;;  %v6811_v22 = vpop.f32.mrf.mxu0 }
 0x18f   : > { %v2381_v12 = vadd.f32 %v2306_v52, %v8544_v51  ;;  %v8649_v4 = vadd.f32 %v6811_v22, %v2383_v29 }
 0x190   : > { %v6778_v37 = vpop.f32.mrf.mxu1  ;;  %v3096_v30 = vpop.f32.mrf.mxu0 }
 0x191   : > { %v2384_v6 = vadd.f32 %v6778_v37, %v8554_v18  ;;  %v8653_v62 = vadd.f32 %v3096_v30, %v2381_v12 }
 0x192   : > { %v2309_v7 = vpop.f32.mrf.mxu1  ;;  %v6812_v33 = vpop.f32.mrf.mxu0 }
 0x193   : > { %v2382_v34 = vadd.f32 %v2309_v7, %v8559_v11  ;;  %v8657_v57 = vadd.f32 %v6812_v33, %v2384_v6 }
 0x194   : > { %v8651_v44 = vpop.f32.mrf.mxu1  ;;  %v3099_v18 = vpop.f32.mrf.mxu0 }
 0x195   : > { %v8661_v61 = vadd.f32 %v3099_v18, %v2382_v34 }
 0x196   : > { %v8655_v51 = vpop.f32.mrf.mxu1  ;;  %v8665_v11 = vpop.f32.mrf.mxu0 }
 0x198   : > { %v8659_v60 = vpop.f32.mrf.mxu1  ;;  %v8667_v5 = vpop.f32.mrf.mxu0 }
 0x19a   : > { %v8663_v49 = vpop.f32.mrf.mxu1  ;;  %v8671_v20 = vpop.f32.mrf.mxu0 }
 0x19c   : > { %v8669_v42 = vpop.f32.mrf.mxu1  ;;  %v8675_v41 = vpop.f32.mrf.mxu0 }
 0x19e   : > { %v8673_v54 = vpop.f32.mrf.mxu1  ;;  %v8679_v2 = vpop.f32.mrf.mxu0 }
 0x1a0   : > { %v8677_v1 = vpop.f32.mrf.mxu1  ;;  %v8683_v15 = vpop.f32.mrf.mxu0 }
 0x1a2   : > { %v8681_v25 = vpop.f32.mrf.mxu1  ;;  %v8687_v43 = vpop.f32.mrf.mxu0 }
 0x1a4   : > { %v8685_v21 = vpop.f32.mrf.mxu1  ;;  %v8691_v38 = vpop.f32.mrf.mxu0 }
 0x1a6   : > { %v8689_v19 = vpop.f32.mrf.mxu1  ;;  %v8695_v29 = vpop.f32.mrf.mxu0 }
 0x1a8   : > { %v8693_v59 = vpop.f32.mrf.mxu1  ;;  %v8699_v56 = vpop.f32.mrf.mxu0 }
 0x1aa   : > { %v8697_v52 = vpop.f32.mrf.mxu1  ;;  %v8703_v37 = vpop.f32.mrf.mxu0 }
 0x1ac   : > { %v8701_v12 = vpop.f32.mrf.mxu1  ;;  %v8707_v6 = vpop.f32.mrf.mxu0 }
 0x1ae   : > { %v8705_v23 = vpop.f32.mrf.mxu1  ;;  %v8711_v22 = vpop.f32.mrf.mxu0 }
 0x1b0   : > { %v8709_v7 = vpop.f32.mrf.mxu1  ;;  %v8715_v30 = vpop.f32.mrf.mxu0 }
 0x1b1   : > { %9083 = vst [vmem:[#allocation17_spill] sm:$0xff] %v8709_v7  ;;  %9085 = vst [vmem:[#allocation6_spill] sm:$0xff] %v8715_v30 }
 0x1b2   : > { %v8713_v34 = vpop.f32.mrf.mxu1  ;;  %v8719_v18 = vpop.f32.mrf.mxu0 }
 0x1b3   : > { %9084 = vst [vmem:[#allocation18_spill] sm:$0xff] %v8713_v34  ;;  %9087 = vst [vmem:[#allocation20_spill] sm:$0xff] %v8719_v18 }
 0x1b4   : > { %v8717_v33 = vpop.f32.mrf.mxu1  ;;  %v8723_v58 = vpop.f32.mrf.mxu0 }
 0x1b5   : > { %9086 = vst [vmem:[#allocation19_spill] sm:$0xff] %v8717_v33  ;;  %9089 = vst [vmem:[#allocation22_spill] sm:$0xff] %v8723_v58 }
 0x1b6   : > { %v8721_v32 = vpop.f32.mrf.mxu1  ;;  %v8727_v27 = vpop.f32.mrf.mxu0 }
 0x1b7   : > { %9088 = vst [vmem:[#allocation21_spill] sm:$0xff] %v8721_v32  ;;  %9091 = vst [vmem:[#allocation24_spill] sm:$0xff] %v8727_v27 }
 0x1b8   : > { %v8725_v14 = vpop.f32.mrf.mxu1  ;;  %v8731_v3 = vpop.f32.mrf.mxu0 }
 0x1b9   : > { %9090 = vst [vmem:[#allocation23_spill] sm:$0xff] %v8725_v14  ;;  %9093 = vst [vmem:[#allocation26_spill] sm:$0xff] %v8731_v3 }
 0x1ba   : > { %v8729_v24 = vpop.f32.mrf.mxu1  ;;  %v8735_v47 = vpop.f32.mrf.mxu0 }
 0x1bb   : > { %9092 = vst [vmem:[#allocation25_spill] sm:$0xff] %v8729_v24  ;;  %9095 = vst [vmem:[#allocation28_spill] sm:$0xff] %v8735_v47 }
 0x1bc   : > { %v8733_v40 = vpop.f32.mrf.mxu1  ;;  %v8739_v33 = vpop.f32.mrf.mxu0 }
 0x1bd   : > { %9094 = vst [vmem:[#allocation27_spill] sm:$0xff] %v8733_v40  ;;  %9097 = vst [vmem:[#allocation30_spill] sm:$0xff] %v8739_v33 }
 0x1be   : > { %v8737_v34 = vpop.f32.mrf.mxu1  ;;  %v8743_v32 = vpop.f32.mrf.mxu0 }
 0x1bf   : > { %9096 = vst [vmem:[#allocation29_spill] sm:$0xff] %v8737_v34  ;;  %9099 = vst [vmem:[#allocation32_spill] sm:$0xff] %v8743_v32 }
 0x1c0   : > { %v8741_v18 = vpop.f32.mrf.mxu1  ;;  %v8747_v14 = vpop.f32.mrf.mxu0 }
 0x1c1   : > { %9098 = vst [vmem:[#allocation31_spill] sm:$0xff] %v8741_v18  ;;  %9101 = vst [vmem:[#allocation34_spill] sm:$0xff] %v8747_v14 }
 0x1c2   : > { %v8745_v58 = vpop.f32.mrf.mxu1  ;;  %v8750_v3 = vpop.f32.mrf.mxu0 }
 0x1c3   : > { %9100 = vst [vmem:[#allocation33_spill] sm:$0xff] %v8745_v58  ;;  %9102 = vst [vmem:[#allocation35_spill] sm:$0xff] %v8750_v3 }
 0x1c4   : > { %v8753_v10 = vpop.f32.mrf.mxu0 }
 0x1c5   : > { %9103 = vst [vmem:[#allocation36_spill] sm:$0xff] %v8753_v10 }
 0x1c6   : > { %v6875_v18 = vpop.f32.mrf.mxu0 }
 0x1c7   : > { %v6841_v27 = vpop.f32.mrf.mxu1 }
 0x1c8   : > { %v3735_v24 = vadd.f32 %v6841_v27, %v8637_v63  ;;  %v4072_v14 = vpop.f32.mrf.mxu0 }
 0x1c9   : > { %v3646_v40 = vpop.f32.mrf.mxu1 }
 0x1ca   : > { %v3733_v47 = vadd.f32 %v3646_v40, %v8640_v26  ;;  %v8756_v32 = vadd.f32 %v6875_v18, %v3735_v24  ;;  %v6876_v63 = vpop.f32.mrf.mxu0  ;;  %v3711_v24 = vadd.f32 %v8651_v44, %v8561_v48  ;;  %v3712_v48 = vadd.f32 %v8659_v60, %v8569_v55 }
 0x1cb   : > { %v6842_v34 = vpop.f32.mrf.mxu1 }
 0x1cc   : > { %v3736_v33 = vadd.f32 %v6842_v34, %v8643_v9  ;;  %v8759_v50 = vadd.f32 %v4072_v14, %v3733_v47  ;;  %v4075_v10 = vpop.f32.mrf.mxu0  ;;  %v3709_v14 = vadd.f32 %v8655_v51, %v8563_v36  ;;  %v3710_v36 = vadd.f32 %v8663_v49, %v8572_v53  ;;  %v8796_v53 = vld [vmem:[%s9026_s2] ss:$0 sm:$0xff] }
 0x1cd   : > { %v3649_v30 = vpop.f32.mrf.mxu1 }
 0x1ce   : > { %v3734_v58 = vadd.f32 %v3649_v30, %v8646_v39  ;;  %v8762_v40 = vadd.f32 %v6876_v63, %v3736_v33  ;;  %v6879_v30 = vpop.f32.mrf.mxu0  ;;  %v3715_v63 = vadd.f32 %v8669_v42, %v8575_v17  ;;  %v3716_v17 = vadd.f32 %v8677_v1, %v8581_v16  ;;  %v8804_v42 = vld [vmem:[%s9027_s3] ss:$0 sm:$0xff] }
 0x1cf   : > { %v6845_v7 = vpop.f32.mrf.mxu1  ;;  %v3714_v16 = vadd.f32 %v8681_v25, %v8584_v45 }
 0x1d0   : > { %v3739_v27 = vadd.f32 %v6845_v7, %v8649_v4  ;;  %v8767_v34 = vadd.f32 %v4075_v10, %v3734_v58  ;;  %v4088_v33 = vpop.f32.mrf.mxu0 }
 0x1d1   : > { %v3662_v3 = vpop.f32.mrf.mxu1 }
 0x1d2   : > { %v3737_v26 = vadd.f32 %v3662_v3, %v8653_v62  ;;  %v8772_v4 = vadd.f32 %v6879_v30, %v3739_v27  ;;  %v4137_v62 = vadd.f32 %v8665_v11, %v3711_v24  ;;  %v6880_v58 = vpop.f32.mrf.mxu0  ;;  %v4138_v11 = vadd.f32 %v8671_v20, %v3712_v48 }
 0x1d3   : > { %v6846_v9 = vpop.f32.mrf.mxu1  ;;  %v4136_v20 = vadd.f32 %v8675_v41, %v3710_v36 }
 0x1d4   : > { %v3740_v39 = vadd.f32 %v6846_v9, %v8657_v57  ;;  %v8778_v10 = vadd.f32 %v4088_v33, %v3737_v26  ;;  %v4135_v57 = vadd.f32 %v8667_v5, %v3709_v14  ;;  %v4091_v18 = vpop.f32.mrf.mxu0  ;;  %v3713_v5 = vadd.f32 %v8673_v54, %v8578_v35 }
 0x1d5   : > { %v3665_v47 = vpop.f32.mrf.mxu1 }
 0x1d6   : > { %v3738_v7 = vadd.f32 %v3665_v47, %v8661_v61  ;;  %v8783_v51 = vadd.f32 %v6880_v58, %v3740_v39  ;;  %v4141_v39 = vadd.f32 %v8679_v2, %v3715_v63  ;;  %v4139_v14 = vadd.f32 %v8683_v15, %v3713_v5 }
 0x1d7   : > { %v6885_v3 = vpop.f32.mrf.mxu1  ;;  %v4142_v2 = vadd.f32 %v8687_v43, %v3716_v17  ;;  %v3719_v58 = vadd.f32 %v8685_v21, %v8588_v31 }
 0x1d8   : > { %v4927_v61 = vadd.f32 %v6885_v3, %v4137_v62  ;;  %v8788_v55 = vadd.f32 %v4091_v18, %v3738_v7  ;;  %v4140_v18 = vadd.f32 %v8691_v38, %v3714_v16  ;;  %v3723_v16 = vadd.f32 %v8701_v12, %v8600_v13 }
 0x1d9   : > { %v4766_v44 = vpop.f32.mrf.mxu1  ;;  %v4145_v38 = vadd.f32 %v8695_v29, %v3719_v58 }
 0x1da   : > { %v4925_v60 = vadd.f32 %v4766_v44, %v4135_v57 }
 0x1db   : > { %v6886_v27 = vpop.f32.mrf.mxu1 }
 0x1dc   : > { %v4928_v24 = vadd.f32 %v6886_v27, %v4138_v11  ;;  %v3717_v27 = vadd.f32 %v8689_v19, %v8591_v8  ;;  %v3720_v8 = vadd.f32 %v8693_v59, %v8594_v0 }
 0x1dd   : > { %v4769_v49 = vpop.f32.mrf.mxu1 }
 0x1de   : > { %v6919_v26 = vpop.f32.mrf.mxu0  ;;  %v4926_v41 = vadd.f32 %v4769_v49, %v4136_v20 }
 0x1df   : > { %v5493_v9 = vadd.f32 %v6919_v26, %v4927_v61  ;;  %v6889_v54 = vpop.f32.mrf.mxu1 }
 0x1e0   : > { %v5332_v35 = vpop.f32.mrf.mxu0  ;;  %v4931_v48 = vadd.f32 %v6889_v54, %v4141_v39  ;;  %v3718_v54 = vadd.f32 %v8697_v52, %v8597_v28 }
 0x1e1   : > { %v5596_v30 = vmul.f32 %v8796_v53, %v5493_v9  ;;  %v5491_v47 = vadd.f32 %v5332_v35, %v4925_v60  ;;  %v4782_v7 = vpop.f32.mrf.mxu1  ;;  %v4143_v35 = vadd.f32 %v8699_v56, %v3717_v27 }
 0x1e2   : > { %v6920_v1 = vpop.f32.mrf.mxu0  ;;  %v4929_v57 = vadd.f32 %v4782_v7, %v4139_v14  ;;  %v4146_v14 = vadd.f32 %v8703_v37, %v3720_v8 }
 0x1e3   : > { %v5635_v33 = vadd.f32 %v8804_v42, %v5596_v30  ;;  %v5594_v3 = vmul.f32 %v8796_v53, %v5491_v47  ;;  %v5494_v62 = vadd.f32 %v6920_v1, %v4928_v24  ;;  %v6890_v36 = vpop.f32.mrf.mxu1 }
 0x1e4   : > { %v5335_v44 = vpop.f32.mrf.mxu0  ;;  %v4932_v63 = vadd.f32 %v6890_v36, %v4142_v2  ;;  %v4149_v36 = vadd.f32 %v8711_v22, %v3723_v16  ;;  %v9113_v16 = vld [vmem:[#allocation10_spill] sm:$0xff] }
 0x1e5   : > { %v5667_v15 = vmax.f32 %v5635_v33, 0.0  ;;  %v5633_v61 = vadd.f32 %v8804_v42, %v5594_v3  ;;  %v5597_v45 = vmul.f32 %v8796_v53, %v5494_v62  ;;  %v5492_v25 = vadd.f32 %v5335_v44, %v4926_v41  ;;  %v4785_v43 = vpop.f32.mrf.mxu1 }
 0x1e6   : > { %v6923_v11 = vpop.f32.mrf.mxu0  ;;  %v4930_v26 = vadd.f32 %v4785_v43, %v4140_v18  ;;  %v4144_v62 = vadd.f32 %v8707_v6, %v3718_v54 }
 0x1e7   : > { %5699 = vst [vmem:[%s8823_s22 + $0x10] sm:$0xff] %v5667_v15  ;;  %v5665_v31 = vmax.f32 %v5633_v61, 0.0  ;;  %v5636_v21 = vadd.f32 %v8804_v42, %v5597_v45  ;;  %v5595_v60 = vmul.f32 %v8796_v53, %v5492_v25  ;;  %v5497_v5 = vadd.f32 %v6923_v11, %v4931_v48  ;;  %v6893_v49 = vpop.f32.mrf.mxu1  ;;  %v9104_v15 = vld [vmem:[#allocation7_spill] sm:$0xff]  ;;  %v9105_v61 = vld [vmem:[#allocation17_spill] sm:$0xff] }
 0x1e8   : > { %v5348_v19 = vpop.f32.mrf.mxu0  ;;  %v4935_v39 = vadd.f32 %v6893_v49, %v4145_v38  ;;  %v3721_v48 = vadd.f32 %v8705_v23, %v8603_v46  ;;  %v3724_v45 = vadd.f32 %v9105_v61, %v9104_v15 }
 0x1e9   : > { %5697 = vst [vmem:[%s8823_s22] sm:$0xff] %v5665_v31  ;;  %v5668_v20 = vmax.f32 %v5636_v21, 0.0  ;;  %v5634_v9 = vadd.f32 %v8804_v42, %v5595_v60  ;;  %v5600_v24 = vmul.f32 %v8796_v53, %v5497_v5  ;;  %v5495_v17 = vadd.f32 %v5348_v19, %v4929_v57  ;;  %v4798_v30 = vpop.f32.mrf.mxu1  ;;  %v9107_v31 = vld [vmem:[#allocation8_spill] sm:$0xff]  ;;  %v9108_v21 = vld [vmem:[#allocation18_spill] sm:$0xff] }
 0x1ea   : > { %v6924_v29 = vpop.f32.mrf.mxu0  ;;  %v4933_v1 = vadd.f32 %v4798_v30, %v4143_v35  ;;  %v3722_v60 = vadd.f32 %v9108_v21, %v9107_v31 }
 0x1eb   : > { %5700 = vst [vmem:[%s8823_s22 + $0x18] sm:$0xff] %v5668_v20  ;;  %v5666_v0 = vmax.f32 %v5634_v9, 0.0  ;;  %v5639_v59 = vadd.f32 %v8804_v42, %v5600_v24  ;;  %v5598_v47 = vmul.f32 %v8796_v53, %v5495_v17  ;;  %v5498_v41 = vadd.f32 %v6924_v29, %v4932_v63  ;;  %v6894_v7 = vpop.f32.mrf.mxu1  ;;  %v9106_v63 = vld [vmem:[#allocation6_spill] sm:$0xff]  ;;  %v9109_v20 = vld [vmem:[#allocation20_spill] sm:$0xff]  ;;  %v9110_v24 = vld [vmem:[#allocation9_spill] sm:$0xff] }
 0x1ec   : > { %v5351_v56 = vpop.f32.mrf.mxu0  ;;  %v4936_v2 = vadd.f32 %v6894_v7, %v4146_v14  ;;  %v4147_v43 = vadd.f32 %v9106_v63, %v3721_v48  ;;  %v4150_v9 = vadd.f32 %v9109_v20, %v3724_v45  ;;  %v9111_v17 = vld [vmem:[#allocation19_spill] sm:$0xff] }
 0x1ed   : > { %5698 = vst [vmem:[%s8823_s22 + $0x8] sm:$0xff] %v5666_v0  ;;  %v5671_v28 = vmax.f32 %v5639_v59, 0.0  ;;  %v5637_v52 = vadd.f32 %v8804_v42, %v5598_v47  ;;  %v5601_v33 = vmul.f32 %v8796_v53, %v5498_v41  ;;  %v5496_v3 = vadd.f32 %v5351_v56, %v4930_v26  ;;  %v4801_v58 = vpop.f32.mrf.mxu1  ;;  %v9112_v41 = vld [vmem:[#allocation22_spill] sm:$0xff]  ;;  %v9114_v56 = vld [vmem:[#allocation21_spill] sm:$0xff] }
 0x1ee   : > { %v6927_v37 = vpop.f32.mrf.mxu0  ;;  %v4934_v25 = vadd.f32 %v4801_v58, %v4144_v62  ;;  %v3727_v35 = vadd.f32 %v9111_v17, %v9110_v24  ;;  %v4148_v14 = vadd.f32 %v9112_v41, %v3722_v60  ;;  %v9116_v58 = vld [vmem:[#allocation11_spill] sm:$0xff]  ;;  %v9122_v17 = vld [vmem:[#allocation30_spill] sm:$0xff] }
 0x1ef   : > { %5703 = vst [vmem:[%s8823_s22 + $0x30] sm:$0xff] %v5671_v28  ;;  %v5669_v13 = vmax.f32 %v5637_v52, 0.0  ;;  %v5640_v12 = vadd.f32 %v8804_v42, %v5601_v33  ;;  %v5599_v44 = vmul.f32 %v8796_v53, %v5496_v3  ;;  %v5501_v57 = vadd.f32 %v6927_v37, %v4935_v39  ;;  %v6897_v18 = vpop.f32.mrf.mxu1  ;;  %v9115_v37 = vld [vmem:[#allocation24_spill] sm:$0xff] }
 0x1f0   : > { %v5364_v6 = vpop.f32.mrf.mxu0  ;;  %v4939_v5 = vadd.f32 %v6897_v18, %v4149_v36 }
 0x1f1   : > { %5701 = vst [vmem:[%s8823_s22 + $0x20] sm:$0xff] %v5669_v13  ;;  %v5672_v46 = vmax.f32 %v5640_v12, 0.0  ;;  %v5638_v23 = vadd.f32 %v8804_v42, %v5599_v44  ;;  %v5604_v27 = vmul.f32 %v8796_v53, %v5501_v57  ;;  %v5499_v11 = vadd.f32 %v5364_v6, %v4933_v1  ;;  %v4814_v38 = vpop.f32.mrf.mxu1  ;;  %v9117_v13 = vld [vmem:[#allocation23_spill] sm:$0xff] }
 0x1f2   : > { %v6928_v22 = vpop.f32.mrf.mxu0  ;;  %v4937_v29 = vadd.f32 %v4814_v38, %v4147_v43  ;;  %v3725_v1 = vadd.f32 %v9114_v56, %v9113_v16  ;;  %v3728_v12 = vadd.f32 %v9117_v13, %v9116_v58  ;;  %v9125_v56 = vld [vmem:[#allocation14_spill] sm:$0xff]  ;;  %v9128_v58 = vld [vmem:[#allocation15_spill] sm:$0xff] }
 0x1f3   : > { %5704 = vst [vmem:[%s8823_s22 + $0x38] sm:$0xff] %v5672_v46  ;;  %v5670_v8 = vmax.f32 %v5638_v23, 0.0  ;;  %v5643_v19 = vadd.f32 %v8804_v42, %v5604_v27  ;;  %v5602_v26 = vmul.f32 %v8796_v53, %v5499_v11  ;;  %v5502_v49 = vadd.f32 %v6928_v22, %v4936_v2  ;;  %v6898_v39 = vpop.f32.mrf.mxu1  ;;  %v9119_v46 = vld [vmem:[#allocation12_spill] sm:$0xff]  ;;  %v9120_v23 = vld [vmem:[#allocation25_spill] sm:$0xff]  ;;  %v9129_v13 = vld [vmem:[#allocation31_spill] sm:$0xff] }
 0x1f4   : > { %v5367_v54 = vpop.f32.mrf.mxu0  ;;  %v4940_v28 = vadd.f32 %v6898_v39, %v4150_v9  ;;  %v4153_v2 = vadd.f32 %v9115_v37, %v3727_v35  ;;  %v3726_v27 = vadd.f32 %v9120_v23, %v9119_v46  ;;  %v9127_v37 = vld [vmem:[#allocation32_spill] sm:$0xff]  ;;  %v9132_v46 = vld [vmem:[#allocation33_spill] sm:$0xff] }
 0x1f5   : > { %5702 = vst [vmem:[%s8823_s22 + $0x28] sm:$0xff] %v5670_v8  ;;  %v5675_v30 = vmax.f32 %v5643_v19, 0.0  ;;  %v5641_v0 = vadd.f32 %v8804_v42, %v5602_v26  ;;  %v5605_v59 = vmul.f32 %v8796_v53, %v5502_v49  ;;  %v5500_v47 = vadd.f32 %v5367_v54, %v4934_v25  ;;  %v4817_v52 = vpop.f32.mrf.mxu1  ;;  %v9118_v25 = vld [vmem:[#allocation26_spill] sm:$0xff]  ;;  %v9123_v54 = vld [vmem:[#allocation13_spill] sm:$0xff] }
 0x1f6   : > { %v6931_v7 = vpop.f32.mrf.mxu0  ;;  %v4938_v57 = vadd.f32 %v4817_v52, %v4148_v14  ;;  %v4151_v18 = vadd.f32 %v9118_v25, %v3725_v1  ;;  %v4152_v35 = vadd.f32 %v9122_v17, %v3726_v27  ;;  %v9126_v1 = vld [vmem:[#allocation29_spill] sm:$0xff] }
 0x1f7   : > { %5707 = vst [vmem:[%s8823_s22 + $0x50] sm:$0xff] %v5675_v30  ;;  %v5673_v33 = vmax.f32 %v5641_v0, 0.0  ;;  %v5644_v3 = vadd.f32 %v8804_v42, %v5605_v59  ;;  %v5603_v62 = vmul.f32 %v8796_v53, %v5500_v47  ;;  %v5505_v48 = vadd.f32 %v6931_v7, %v4939_v5  ;;  %v6901_v36 = vpop.f32.mrf.mxu1  ;;  %v9121_v5 = vld [vmem:[#allocation28_spill] sm:$0xff] }
 0x1f8   : > { %v5380_v44 = vpop.f32.mrf.mxu0  ;;  %v4943_v63 = vadd.f32 %v6901_v36, %v4153_v2  ;;  %v4154_v38 = vadd.f32 %v9121_v5, %v3728_v12  ;;  %v3729_v7 = vadd.f32 %v9126_v1, %v9125_v56  ;;  %v3732_v12 = vadd.f32 %v9129_v13, %v9128_v58 }
 0x1f9   : > { %5705 = vst [vmem:[%s8823_s22 + $0x40] sm:$0xff] %v5673_v33  ;;  %v5676_v15 = vmax.f32 %v5644_v3, 0.0  ;;  %v5642_v61 = vadd.f32 %v8804_v42, %v5603_v62  ;;  %v5608_v45 = vmul.f32 %v8796_v53, %v5505_v48  ;;  %v5503_v6 = vadd.f32 %v5380_v44, %v4937_v29  ;;  %v4830_v43 = vpop.f32.mrf.mxu1  ;;  %v9124_v29 = vld [vmem:[#allocation27_spill] sm:$0xff] }
 0x1fa   : > { %v6932_v11 = vpop.f32.mrf.mxu0  ;;  %v4941_v19 = vadd.f32 %v4830_v43, %v4151_v18  ;;  %v3731_v39 = vadd.f32 %v9124_v29, %v9123_v54  ;;  %v9131_v18 = vld [vmem:[#allocation16_spill] sm:$0xff] }
 0x1fb   : > { %5708 = vst [vmem:[%s8823_s22 + $0x58] sm:$0xff] %v5676_v15  ;;  %v5674_v31 = vmax.f32 %v5642_v61, 0.0  ;;  %v5647_v21 = vadd.f32 %v8804_v42, %v5608_v45  ;;  %v5606_v60 = vmul.f32 %v8796_v53, %v5503_v6  ;;  %v5506_v22 = vadd.f32 %v6932_v11, %v4940_v28  ;;  %v6902_v26 = vpop.f32.mrf.mxu1  ;;  %v9130_v6 = vld [vmem:[#allocation34_spill] sm:$0xff] }
 0x1fc   : > { %v5383_v8 = vpop.f32.mrf.mxu0  ;;  %v4944_v0 = vadd.f32 %v6902_v26, %v4154_v38  ;;  %v4157_v2 = vadd.f32 %v9127_v37, %v3731_v39  ;;  %v4155_v25 = vadd.f32 %v9130_v6, %v3729_v7  ;;  %v3730_v23 = vadd.f32 %v9132_v46, %v9131_v18 }
 0x1fd   : > { %5706 = vst [vmem:[%s8823_s22 + $0x48] sm:$0xff] %v5674_v31  ;;  %v5679_v49 = vmax.f32 %v5647_v21, 0.0  ;;  %v5645_v20 = vadd.f32 %v8804_v42, %v5606_v60  ;;  %v5609_v9 = vmul.f32 %v8796_v53, %v5506_v22  ;;  %v5504_v24 = vadd.f32 %v5383_v8, %v4938_v57  ;;  %v4833_v59 = vpop.f32.mrf.mxu1  ;;  %v9133_v22 = vld [vmem:[#allocation35_spill] sm:$0xff] }
 0x1fe   : > { %v6935_v30 = vpop.f32.mrf.mxu0  ;;  %v4942_v52 = vadd.f32 %v4833_v59, %v4152_v35  ;;  %v4158_v5 = vadd.f32 %v9133_v22, %v3732_v12 }
 0x1ff   : > { %5711 = vst [vmem:[%s8823_s22 + $0x70] sm:$0xff] %v5679_v49  ;;  %v5677_v47 = vmax.f32 %v5645_v20, 0.0  ;;  %v5648_v41 = vadd.f32 %v8804_v42, %v5609_v9  ;;  %v5607_v14 = vmul.f32 %v8796_v53, %v5504_v24  ;;  %v5509_v16 = vadd.f32 %v6935_v30, %v4943_v63  ;;  %v9134_v24 = vld [vmem:[#allocation36_spill] sm:$0xff] }
 0x200   : > { %v5396_v28 = vpop.f32.mrf.mxu0  ;;  %v4156_v17 = vadd.f32 %v9134_v24, %v3730_v23 }
 0x201   : > { %5709 = vst [vmem:[%s8823_s22 + $0x60] sm:$0xff] %v5677_v47  ;;  %v5680_v33 = vmax.f32 %v5648_v41, 0.0  ;;  %v5646_v3 = vadd.f32 %v8804_v42, %v5607_v14  ;;  %v5612_v62 = vmul.f32 %v8796_v53, %v5509_v16  ;;  %v5507_v48 = vadd.f32 %v5396_v28, %v4941_v19 }
 0x202   : > { %v6936_v44 = vpop.f32.mrf.mxu0  ;;  %v6905_v45 = vpop.f32.mrf.mxu1 }
 0x203   : > { %5712 = vst [vmem:[%s8823_s22 + $0x78] sm:$0xff] %v5680_v33  ;;  %v5678_v57 = vmax.f32 %v5646_v3, 0.0  ;;  %v5651_v36 = vadd.f32 %v8804_v42, %v5612_v62  ;;  %v5610_v15 = vmul.f32 %v8796_v53, %v5507_v48  ;;  %v5510_v61 = vadd.f32 %v6936_v44, %v4944_v0 }
 0x204   : > { %v5399_v27 = vpop.f32.mrf.mxu0  ;;  %v4947_v11 = vadd.f32 %v6905_v45, %v4157_v2  ;;  %v4846_v60 = vpop.f32.mrf.mxu1 }
 0x205   : > { %5710 = vst [vmem:[%s8823_s22 + $0x68] sm:$0xff] %v5678_v57  ;;  %v5683_v63 = vmax.f32 %v5651_v36, 0.0  ;;  %v5649_v43 = vadd.f32 %v8804_v42, %v5610_v15  ;;  %v5613_v31 = vmul.f32 %v8796_v53, %v5510_v61  ;;  %v5508_v21 = vadd.f32 %v5399_v27, %v4942_v52 }
 0x206   : > { %v6939_v38 = vpop.f32.mrf.mxu0  ;;  %v4945_v8 = vadd.f32 %v4846_v60, %v4155_v25  ;;  %v6906_v9 = vpop.f32.mrf.mxu1 }
 0x207   : > { %5715 = vst [vmem:[%s8823_s22 + $0x90] sm:$0xff] %v5683_v63  ;;  %v5681_v19 = vmax.f32 %v5649_v43, 0.0  ;;  %v5652_v26 = vadd.f32 %v8804_v42, %v5613_v31  ;;  %v5611_v49 = vmul.f32 %v8796_v53, %v5508_v21  ;;  %v5513_v20 = vadd.f32 %v6939_v38, %v4947_v11 }
 0x208   : > { %v5412_v35 = vpop.f32.mrf.mxu0  ;;  %v4948_v54 = vadd.f32 %v6906_v9, %v4158_v5  ;;  %v4849_v59 = vpop.f32.mrf.mxu1 }
 0x209   : > { %5713 = vst [vmem:[%s8823_s22 + $0x80] sm:$0xff] %v5681_v19  ;;  %v5684_v29 = vmax.f32 %v5652_v26, 0.0  ;;  %v5650_v39 = vadd.f32 %v8804_v42, %v5611_v49  ;;  %v5616_v30 = vmul.f32 %v8796_v53, %v5513_v20  ;;  %v5511_v0 = vadd.f32 %v5412_v35, %v4945_v8 }
 0x20a   : > { %v6940_v47 = vpop.f32.mrf.mxu0  ;;  %v4946_v41 = vadd.f32 %v4849_v59, %v4156_v17 }
 0x20b   : > { %5716 = vst [vmem:[%s8823_s22 + $0x98] sm:$0xff] %v5684_v29  ;;  %v5682_v14 = vmax.f32 %v5650_v39, 0.0  ;;  %v5655_v16 = vadd.f32 %v8804_v42, %v5616_v30  ;;  %v5614_v56 = vmul.f32 %v8796_v53, %v5511_v0  ;;  %v5514_v1 = vadd.f32 %v6940_v47, %v4948_v54 }
 0x20c   : > { %v5415_v7 = vpop.f32.mrf.mxu0 }
 0x20d   : > { %5714 = vst [vmem:[%s8823_s22 + $0x88] sm:$0xff] %v5682_v14  ;;  %v5687_v28 = vmax.f32 %v5655_v16, 0.0  ;;  %v5653_v52 = vadd.f32 %v8804_v42, %v5614_v56  ;;  %v5617_v33 = vmul.f32 %v8796_v53, %v5514_v1  ;;  %v5512_v3 = vadd.f32 %v5415_v7, %v4946_v41 }
 0x20f   : > { %5719 = vst [vmem:[%s8823_s22 + $0xb0] sm:$0xff] %v5687_v28  ;;  %v5685_v62 = vmax.f32 %v5653_v52, 0.0  ;;  %v5656_v48 = vadd.f32 %v8804_v42, %v5617_v33  ;;  %v5615_v37 = vmul.f32 %v8796_v53, %v5512_v3  ;;  %v6943_v2 = vpop.f32.mrf.mxu0 }
 0x210   : > { %v6909_v12 = vpop.f32.mrf.mxu1 }
 0x211   : > { %5717 = vst [vmem:[%s8823_s22 + $0xa0] sm:$0xff] %v5685_v62  ;;  %v5688_v58 = vmax.f32 %v5656_v48, 0.0  ;;  %v5654_v13 = vadd.f32 %v8804_v42, %v5615_v37  ;;  %v4951_v44 = vadd.f32 %v6909_v12, %v8756_v32  ;;  %v5428_v57 = vpop.f32.mrf.mxu0 }
 0x212   : > { %v4862_v15 = vpop.f32.mrf.mxu1 }
 0x213   : > { %5720 = vst [vmem:[%s8823_s22 + $0xb8] sm:$0xff] %v5688_v58  ;;  %v5686_v36 = vmax.f32 %v5654_v13, 0.0  ;;  %v5517_v61 = vadd.f32 %v6943_v2, %v4951_v44  ;;  %v4949_v45 = vadd.f32 %v4862_v15, %v8759_v50  ;;  %v6944_v25 = vpop.f32.mrf.mxu0 }
 0x214   : > { %v6910_v6 = vpop.f32.mrf.mxu1 }
 0x215   : > { %5718 = vst [vmem:[%s8823_s22 + $0xa8] sm:$0xff] %v5686_v36  ;;  %v5620_v18 = vmul.f32 %v8796_v53, %v5517_v61  ;;  %v5515_v46 = vadd.f32 %v5428_v57, %v4949_v45  ;;  %v4952_v23 = vadd.f32 %v6910_v6, %v8762_v40  ;;  %v5431_v50 = vpop.f32.mrf.mxu0 }
 0x216   : > { %v4865_v27 = vpop.f32.mrf.mxu1 }
 0x217   : > { %v5659_v32 = vadd.f32 %v8804_v42, %v5620_v18  ;;  %v5618_v11 = vmul.f32 %v8796_v53, %v5515_v46  ;;  %v5518_v63 = vadd.f32 %v6944_v25, %v4952_v23  ;;  %v4950_v43 = vadd.f32 %v4865_v27, %v8767_v34 }
 0x219   : > { %v5691_v31 = vmax.f32 %v5659_v32, 0.0  ;;  %v5657_v21 = vadd.f32 %v8804_v42, %v5618_v11  ;;  %v5621_v60 = vmul.f32 %v8796_v53, %v5518_v63  ;;  %v5516_v22 = vadd.f32 %v5431_v50, %v4950_v43 }
 0x21b   : > { %5723 = vst [vmem:[%s8823_s22 + $0xd0] sm:$0xff] %v5691_v31  ;;  %v5689_v5 = vmax.f32 %v5657_v21, 0.0  ;;  %v5660_v40 = vadd.f32 %v8804_v42, %v5621_v60  ;;  %v5619_v38 = vmul.f32 %v8796_v53, %v5516_v22 }
 0x21c   : > { %v6947_v26 = vpop.f32.mrf.mxu0 }
 0x21d   : > { %5721 = vst [vmem:[%s8823_s22 + $0xc0] sm:$0xff] %v5689_v5  ;;  %v5692_v8 = vmax.f32 %v5660_v40, 0.0  ;;  %v5658_v19 = vadd.f32 %v8804_v42, %v5619_v38 }
 0x21e   : > { %v6913_v34 = vpop.f32.mrf.mxu1  ;;  %v5444_v9 = vpop.f32.mrf.mxu0 }
 0x21f   : > { %5724 = vst [vmem:[%s8823_s22 + $0xd8] sm:$0xff] %v5692_v8  ;;  %v5690_v49 = vmax.f32 %v5658_v19, 0.0  ;;  %v4955_v20 = vadd.f32 %v6913_v34, %v8772_v4 }
 0x220   : > { %v4878_v24 = vpop.f32.mrf.mxu1  ;;  %v6948_v29 = vpop.f32.mrf.mxu0 }
 0x221   : > { %5722 = vst [vmem:[%s8823_s22 + $0xc8] sm:$0xff] %v5690_v49  ;;  %v5521_v17 = vadd.f32 %v6947_v26, %v4955_v20  ;;  %v4953_v35 = vadd.f32 %v4878_v24, %v8778_v10 }
 0x222   : > { %v6914_v54 = vpop.f32.mrf.mxu1  ;;  %v5447_v10 = vpop.f32.mrf.mxu0 }
 0x223   : > { %v5624_v39 = vmul.f32 %v8796_v53, %v5521_v17  ;;  %v5519_v30 = vadd.f32 %v5444_v9, %v4953_v35  ;;  %v4956_v0 = vadd.f32 %v6914_v54, %v8783_v51 }
 0x224   : > { %v4881_v59 = vpop.f32.mrf.mxu1 }
 0x225   : > { %v5663_v4 = vadd.f32 %v8804_v42, %v5624_v39  ;;  %v5622_v47 = vmul.f32 %v8796_v53, %v5519_v30  ;;  %v5522_v41 = vadd.f32 %v6948_v29, %v4956_v0  ;;  %v4954_v14 = vadd.f32 %v4881_v59, %v8788_v55 }
 0x227   : > { %v5695_v16 = vmax.f32 %v5663_v4, 0.0  ;;  %v5661_v56 = vadd.f32 %v8804_v42, %v5622_v47  ;;  %v5625_v1 = vmul.f32 %v8796_v53, %v5522_v41  ;;  %v5520_v51 = vadd.f32 %v5447_v10, %v4954_v14 }
 0x229   : > { %5727 = vst [vmem:[%s8823_s22 + $0xf0] sm:$0xff] %v5695_v16  ;;  %v5693_v7 = vmax.f32 %v5661_v56, 0.0  ;;  %v5664_v28 = vadd.f32 %v8804_v42, %v5625_v1  ;;  %v5623_v52 = vmul.f32 %v8796_v53, %v5520_v51 }
 0x22b   : > { %5725 = vst [vmem:[%s8823_s22 + $0xe0] sm:$0xff] %v5693_v7  ;;  %v5696_v55 = vmax.f32 %v5664_v28, 0.0  ;;  %v5662_v33 = vadd.f32 %v8804_v42, %v5623_v52 }
 0x22d   : > { %5728 = vst [vmem:[%s8823_s22 + $0xf8] sm:$0xff] %v5696_v55  ;;  %v5694_v3 = vmax.f32 %v5662_v33, 0.0 }
 0x22f   : > { %5726 = vst [vmem:[%s8823_s22 + $0xe8] sm:$0xff] %v5694_v3 }
 0x230   : > { %7080 = shalt.err (!%p7077_p5)
}
 0x231   : > { %s7081_s10 = scalar_lea.hbm %s8971_s5, 4096  ;;  %s7085_s13 = scalar_lea.hbm %s9028_s4, 8192 }
 0x232   : > { %p7082_p6 = scmp.ne.s32.totalorder %s8971_s5, %s7081_s10  ;;  %p7086_p10 = scmp.lt.s32.totalorder %s8971_s5, %s9028_s4 }
 0x233   : > { %p7087_p11 = scmp.lt.s32.totalorder %s7085_s13, %s7081_s10 }
 0x234   : > { %p7083_p7 = pnand %p7082_p6, %p7213_p4 }
 0x235   : > { %p7088_p12 = por %p7087_p11, %p7086_p10 }
 0x236   : > { %p7084_p9 = pneg %p7083_p7 }
 0x238   : > { %p7089_p13 = pnand %p7088_p12, %p7084_p9 }
 0x23a   : > { %7092 = shalt.err (!%p7089_p13)
}
 0x23b   : > { %s7146_s22 = smov 128   ;;  %s7147_s24 = smov 8  }
 0x23c   : > { %6962 = dma.vmem_to_hbm [thread:$0]  (%p7213_p4), %s8973_s26, 4096, %s8971_s5, %s8979_s18, %s7146_s22, %s7146_s22, %s7147_s24  }
 0x23d PF: > { %p6968_p0 = scmp.ge.s32.totalorder %s7143_s20, 2  ;;  %s5761_s29 = sand.u32 1, %s7123_s15  }
 0x23e   : > { %s5762_s30 = scalar_lea.sflag [#allocation4], %s5761_s29 }
 0x23f   : > { %p6965_p1 = pnand %p6968_p0, %p7220_p8 }
 0x241   : > { %p6966_p2 = pneg %p6965_p1 }
 0x243   : > { %7118 = dma.done.wait (%p6966_p2), %s5762_s30, 4096  }
 0x244   : > { %7120 = vsyncadd (%p6966_p2), %s5762_s30, 4294963200  ;;  %s17_s20 = sadd.s32 1, %s7143_s20   ;;  %s9135_s15 = smov %s7127_s16 }
 0x245   : > { %p14_p3 = scmp.ge.s32.totalorder %s17_s20, 4   ;;  %s9136_s16 = smov %s7131_s17 }
 0x246   : > { %s9137_s17 = smov %s7226_s28  ;;  %s9138_s18 = smov %s7139_s19 }
 0x247   : > { %s9139_s19 = smov %s9141_s23  ;;  %16 = sbr.rel (!%p14_p3) target bundleno = 4 (0x4), region = 91 }
 0x24c   :  { %5767 = vsyncpa [#allocation4], 1 }
 0x24d   :  { %5769 = vsyncpa [#allocation4 + $0x1], 1 }

</bundles_post_ra>
